<compile_context>
chip_gen: v5e
topology: v5e:2x2
jax: 0.10.0
libtpu: 0.0.40
codegen_flags: <defaults>
</compile_context>

<pallas_src>
import jax
import jax.numpy as jnp
from jax.experimental import pallas as pl
from jax.experimental.pallas import tpu as pltpu

NEG_SLOPE = 0.2   # GATv2Conv default negative_slope
GN_EPS = 1e-5     # GraphNorm default eps
NEG_INF = -1e30


def build_edge_types(src_names, tgt_names):
    """Same edge-type construction as RelationEmbedding (embeddings themselves unused in forward)."""
    edge_types = []
    for s in src_names:
        for t in tgt_names:
            edge_types.append((s, "to", t))
    for t in tgt_names:
        for s in src_names:
            if s != t:
                edge_types.append((t, "to", s))
    return edge_types


def _pad2_bytes(shape2d, itemsize):
    r, c = shape2d
    return (-(-r // 8) * 8) * (-(-c // 128) * 128) * itemsize


# ----------------------------- fused kernel builder ------------------------------

def build_hetero_gnn(node_types, edge_types, num_nodes, dim, length):
    """Returns (pack_inputs, forward).

    pack_inputs(conv_params, gn_params, adj_dict, ea_dict) -> packed arrays (one-time, hoisted).
    forward(x_dict, packed) -> dict of per-node-type outputs, computed by ONE pallas_call that
    runs all (length-1) message-passing iterations with everything resident in VMEM.
    """
    node_types = list(node_types)
    ets = [tuple(et) for et in edge_types]
    n_iters = length - 1
    C = dim
    n_et = len(ets)
    nt_idx = {nt: i for i, nt in enumerate(node_types)}
    N = {nt: int(num_nodes[nt]) for nt in node_types}
    off, total_N = {}, 0
    for nt in node_types:
        off[nt] = total_N
        total_N += N[nt]

    src_groups, dst_groups = {}, {}
    for e, (s, _, d) in enumerate(ets):
        src_groups.setdefault(s, []).append(e)
        dst_groups.setdefault(d, []).append(e)
    if set(dst_groups) != set(node_types):
        raise ValueError("every node type must receive messages each iteration "
                         "(the torch forward drops non-destination node types)")
    # node types feeding at least one linear transform (lin_l as src and/or lin_r as dst)
    lin_nts = [nt for nt in node_types if src_groups.get(nt) or dst_groups.get(nt)]

    # ------------------ one-time input packing (hoisted out of forward) ------------------
    def pack_inputs(conv_params, gn_params, adj_dict, ea_dict):
        packed = {}
        # GraphNorm params of all node types -> one (3*n_nt, C) array; rows per nt: [w, b, mean_scale]
        packed["gn"] = jnp.concatenate(
            [jnp.concatenate([gn_params[nt]["weight"], gn_params[nt]["bias"],
                              gn_params[nt]["mean_scale"]], axis=0) for nt in node_types], axis=0)
        # per-edge-type (1,C) vectors -> one (3*n_et, C) array; rows per edge: [att, we, bias]
        packed["evec"] = jnp.concatenate(
            [jnp.concatenate([conv_params[et]["att"], conv_params[et]["we"],
                              conv_params[et]["bias"]], axis=0) for et in ets], axis=0)
        # per node type: ONE fused lane-packed weight [Wl of edges with src=nt | Wr with dst=nt],
        # pre-cast to bf16 (MXU operand); biases stay f32 and are added to the f32 accumulator.
        packed["W"], packed["b"] = [], []
        for nt in lin_nts:
            Ws = ([conv_params[ets[e]]["Wl"] for e in src_groups.get(nt, [])]
                  + [conv_params[ets[e]]["Wr"] for e in dst_groups.get(nt, [])])
            bs = ([conv_params[ets[e]]["bl"] for e in src_groups.get(nt, [])]
                  + [conv_params[ets[e]]["br"] for e in dst_groups.get(nt, [])])
            packed["W"].append(jnp.concatenate(Ws, axis=1).astype(jnp.bfloat16))
            packed["b"].append(jnp.concatenate(bs, axis=1))
        # adjacency + scalar edge attribute, stacked along sublanes -> (2*Nd, Ns), lane-dense in Ns
        packed["graph"] = [jnp.concatenate([adj_dict[et], ea_dict[et]], axis=0) for et in ets]
        return packed

    # --------------------------------- fused kernel ---------------------------------
    def kernel(*refs):
        it = iter(refs)
        x0_ref = next(it)                        # (total_N, C)        f32
        gn_ref = next(it)                        # (3*n_nt, C)         f32
        ev_ref = next(it)                        # (3*n_et, C)         f32
        W_ref = [next(it) for _ in lin_nts]      # (C, (ks+kd)*C)      bf16
        b_ref = [next(it) for _ in lin_nts]      # (1, (ks+kd)*C)      f32
        g_ref = [next(it) for _ in ets]          # (2*Nd, Ns) = [adj ; ea]
        out_ref = next(it)                       # (total_N, C)        f32

        # ---- loop-invariant hoists (emitted once; the iteration loop below is unrolled) ----
        x0_all = x0_ref[...]
        x0 = {nt: x0_all[off[nt]:off[nt] + N[nt], :] for nt in node_types}
        gn = gn_ref[...]
        gn_w = {nt: gn[3 * nt_idx[nt] + 0:3 * nt_idx[nt] + 1, :] for nt in node_types}
        gn_b = {nt: gn[3 * nt_idx[nt] + 1:3 * nt_idx[nt] + 2, :] for nt in node_types}
        gn_m = {nt: gn[3 * nt_idx[nt] + 2:3 * nt_idx[nt] + 3, :] for nt in node_types}
        ev = ev_ref[...]
        W = [W_ref[i][...] for i in range(len(lin_nts))]
        b = [b_ref[i][...] for i in range(len(lin_nts))]
        adj, addmask, ea_we, att3, bo = {}, {}, {}, {}, {}
        for e, (s, _, d) in enumerate(ets):
            r = 3 * e
            att3[e] = ev[r + 0:r + 1, :][None, :, :]                    # (1,1,C)
            we_row = ev[r + 1:r + 2, :]                                 # (1,C)
            bo[e] = ev[r + 2:r + 3, :]                                  # (1,C)
            g = g_ref[e][...]
            adj[e] = g[:N[d], :]                                        # (Nd,Ns)
            addmask[e] = jnp.where(adj[e] > 0, 0.0, NEG_INF)            # additive mask, hoisted
            ea_we[e] = g[N[d]:, :][:, :, None] * we_row[None, :, :]     # (Nd,Ns,C), hoisted

        cur = dict(x0)
        for _ in range(n_iters):
            # ---- fused lin_l|lin_r: ONE lane-packed bf16 MXU matmul per node type ----
            xl, xr = {}, {}
            for i, nt in enumerate(lin_nts):
                z = jnp.dot(cur[nt].astype(jnp.bfloat16), W[i],
                            preferred_element_type=jnp.float32) + b[i]
                ks = src_groups.get(nt, [])
                kd = dst_groups.get(nt, [])
                for k, e in enumerate(ks):
                    xl[e] = z[:, k * C:(k + 1) * C]
                base = len(ks) * C
                for k, e in enumerate(kd):
                    xr[e] = z[:, base + k * C:base + (k + 1) * C]

            # ---- GATv2 attention per edge type (vectorized; masked dense softmax, f32) ----
            agg = {}
            for e, (s, _, d) in enumerate(ets):
                t = xl[e][None, :, :] + xr[e][:, None, :] + ea_we[e]    # (Nd,Ns,C)
                t = jnp.where(t > 0, t, NEG_SLOPE * t)                  # leaky_relu
                scores = jnp.sum(t * att3[e], axis=-1)                  # (Nd,Ns)
                sm = scores + addmask[e]
                m = jnp.max(sm, axis=1, keepdims=True)
                p = jnp.exp(sm - m) * adj[e]                            # zero rows w/o edges
                denom = jnp.sum(p, axis=1, keepdims=True)
                alpha = p * pl.reciprocal(jnp.maximum(denom, 1e-30), approx=True)
                o_e = jnp.dot(alpha.astype(jnp.bfloat16), xl[e].astype(jnp.bfloat16),
                              preferred_element_type=jnp.float32) + bo[e]
                agg[d] = o_e if d not in agg else agg[d] + o_e          # HeteroConv aggr='sum'

            # ---- relu -> (h + x0)/2 -> GraphNorm (stats over node axis; single graph) ----
            nxt = {}
            for nt in node_types:
                h = jnp.maximum(agg[nt], 0.0)
                h = (h + x0[nt]) * 0.5
                mean = jnp.mean(h, axis=0, keepdims=True)
                centered = h - mean * gn_m[nt]
                var = jnp.mean(centered * centered, axis=0, keepdims=True)
                nxt[nt] = gn_w[nt] * centered * jax.lax.rsqrt(var + GN_EPS) + gn_b[nt]
            cur = nxt

        # single sublane-packed store (split back per node type in the wrapper)
        out_ref[...] = jnp.concatenate([cur[nt] for nt in node_types], axis=0)

    # ------------------------------------ wrapper ------------------------------------
    def forward(x_dict, packed):
        x0_all = jnp.concatenate([x_dict[nt] for nt in node_types], axis=0)
        args = ([x0_all, packed["gn"], packed["evec"]]
                + list(packed["W"]) + list(packed["b"]) + list(packed["graph"]))

        # advisory scoped-VMEM limit sized from the resident footprint (+ temporaries, 2x slack)
        io_bytes = sum(_pad2_bytes(a.shape, a.dtype.itemsize) for a in args)
        io_bytes += _pad2_bytes((total_N, C), 4)
        tmp_bytes = sum(6 * N[d] * (-(-N[s] // 8) * 8) * (-(-C // 128) * 128) * 4
                        for (s, _, d) in ets)
        vmem_limit = int(min(100 << 20, max(8 << 20, 2 * (io_bytes + tmp_bytes))))

        vspec = pl.BlockSpec(memory_space=pltpu.MemorySpace.VMEM)
        out = pl.pallas_call(
            kernel,
            out_shape=jax.ShapeDtypeStruct((total_N, C), jnp.float32),
            in_specs=[vspec] * len(args),
            out_specs=vspec,
            compiler_params=pltpu.CompilerParams(vmem_limit_bytes=vmem_limit),
        )(*args)
        return {nt: out[off[nt]:off[nt] + N[nt], :] for nt in node_types}

    return pack_inputs, forward


# ------------------------- pure-JAX reference (module semantics, f32) ------------------------

def _gatv2_ref(x_src, x_dst, adj, ea, p):
    xl = x_src @ p["Wl"] + p["bl"]
    xr = x_dst @ p["Wr"] + p["br"]
    t = xl[None, :, :] + xr[:, None, :] + ea[:, :, None] * p["we"][None, :, :]
    t = jnp.where(t > 0, t, NEG_SLOPE * t)
    scores = jnp.sum(t * p["att"][None, :, :], axis=-1)
    sm = jnp.where(adj > 0, scores, NEG_INF)
    m = jnp.max(sm, axis=1, keepdims=True)
    pe = jnp.exp(sm - m) * adj
    denom = jnp.sum(pe, axis=1, keepdims=True)
    alpha = pe / jnp.where(denom > 0, denom, 1.0)
    return alpha @ xl + p["bias"]


def _postproc_ref(agg, x0, gn):
    h = jnp.maximum(agg, 0.0)
    h = (h + x0) * 0.5
    mean = jnp.mean(h, axis=0, keepdims=True)
    centered = h - mean * gn["mean_scale"]
    var = jnp.mean(centered * centered, axis=0, keepdims=True)
    return gn["weight"] * centered / jnp.sqrt(var + GN_EPS) + gn["bias"]


def _forward_ref(x_dict, adj_dict, ea_dict, conv_params, gn_params, length):
    out_dict = dict(x_dict)
    for _ in range(length - 1):
        agg = {}
        for et, p in conv_params.items():
            src, _, dst = et
            o = _gatv2_ref(out_dict[src], out_dict[dst], adj_dict[et], ea_dict[et], p)
            agg[dst] = o if dst not in agg else agg[dst] + o
        out_dict = {k: _postproc_ref(v, x_dict[k], gn_params[k]) for k, v in agg.items()}
    return out_dict


# ------------------------------- setup / main --------------------------------

def init_conv_params(edge_types, dim, key):
    params = {}
    scale = 1.0 / jnp.sqrt(jnp.float32(dim))
    for i, et in enumerate(edge_types):
        ks = jax.random.split(jax.random.fold_in(key, i), 7)
        params[et] = {
            "Wl":   jax.random.normal(ks[0], (dim, dim), jnp.float32) * scale,
            "bl":   jax.random.normal(ks[1], (1, dim), jnp.float32) * 0.1,
            "Wr":   jax.random.normal(ks[2], (dim, dim), jnp.float32) * scale,
            "br":   jax.random.normal(ks[3], (1, dim), jnp.float32) * 0.1,
            "att":  jax.random.normal(ks[4], (1, dim), jnp.float32) * scale,
            "we":   jax.random.normal(ks[5], (1, dim), jnp.float32) * scale,   # lin_edge (edge_dim=1)
            "bias": jax.random.normal(ks[6], (1, dim), jnp.float32) * 0.1,
        }
    return params


if __name__ == "__main__":
    src_names = ["A"]
    tgt_names = ["A", "B"]
    num_nodes = {"A": 8, "B": 8}
    dim = 32
    length = 3          # -> 2 message-passing iterations, as in the torch forward

    key = jax.random.PRNGKey(0)
    edge_types = build_edge_types(src_names, tgt_names)
    node_types = sorted(num_nodes)
    conv_params = init_conv_params(edge_types, dim, jax.random.fold_in(key, 100))

    # node features
    x_dict = {}
    for i, nt in enumerate(node_types):
        x_dict[nt] = jax.random.normal(jax.random.fold_in(key, 200 + i),
                                       (num_nodes[nt], dim), jnp.float32)

    # dense graph per edge type: adjacency mask + scalar edge attribute (both (Nd, Ns))
    adj_dict, ea_dict = {}, {}
    for i, et in enumerate(edge_types):
        s, _, t = et
        ka = jax.random.fold_in(key, 300 + i)
        ke = jax.random.fold_in(key, 400 + i)
        adj_dict[et] = (jax.random.uniform(ka, (num_nodes[t], num_nodes[s])) < 0.5).astype(jnp.float32)
        ea_dict[et] = jax.random.normal(ke, (num_nodes[t], num_nodes[s]), jnp.float32)

    # GraphNorm is freshly constructed inside forward in the torch code -> default init
    gn_params = {k: {"weight": jnp.ones((1, dim), jnp.float32),
                     "bias": jnp.zeros((1, dim), jnp.float32),
                     "mean_scale": jnp.ones((1, dim), jnp.float32)} for k in x_dict}

    pack_inputs, forward = build_hetero_gnn(node_types, edge_types, num_nodes, dim, length)
    packed = pack_inputs(conv_params, gn_params, adj_dict, ea_dict)   # one-time packing (hoisted)

    out = forward(x_dict, packed)
    out = {k: jax.block_until_ready(v) for k, v in out.items()}

    # f32 reference = module semantics; kernel uses bf16 MXU operands -> loose tolerance.
    ref = _forward_ref(x_dict, adj_dict, ea_dict, conv_params, gn_params, length)
    for k in out:
        assert out[k].shape == x_dict[k].shape, (k, out[k].shape)
        assert bool(jnp.all(jnp.isfinite(out[k]))), k
        err = float(jnp.max(jnp.abs(out[k] - ref[k])))
        assert bool(jnp.allclose(out[k], ref[k], atol=5e-2, rtol=5e-2)), (k, err)

    print("KERNEL_OK")
</pallas_src>

<mosaic_0001>
module attributes {stable_mosaic.version = 11 : i64} {
  func.func @kernel(%arg0: memref<16x32xf32, #tpu.memory_space<vmem>>, %arg1: memref<6x32xf32, #tpu.memory_space<vmem>>, %arg2: memref<9x32xf32, #tpu.memory_space<vmem>>, %arg3: memref<32x128xbf16, #tpu.memory_space<vmem>>, %arg4: memref<32x64xbf16, #tpu.memory_space<vmem>>, %arg5: memref<1x128xf32, #tpu.memory_space<vmem>>, %arg6: memref<1x64xf32, #tpu.memory_space<vmem>>, %arg7: memref<16x8xf32, #tpu.memory_space<vmem>>, %arg8: memref<16x8xf32, #tpu.memory_space<vmem>>, %arg9: memref<16x8xf32, #tpu.memory_space<vmem>>, %arg10: memref<16x32xf32, #tpu.memory_space<vmem>>) attributes {dimension_semantics = [], scalar_prefetch = 0 : i64, scratch_operands = 0 : i64, tpu.core_type = #tpu.core_type<tc>} {
    %c0 = arith.constant 0 : index
    %c0_0 = arith.constant 0 : index
    %0 = vector.load %arg0[%c0, %c0_0] : memref<16x32xf32, #tpu.memory_space<vmem>>, vector<16x32xf32>
    %1 = vector.extract_strided_slice %0 {offsets = [0, 0], sizes = [8, 32], strides = [1, 1]} : vector<16x32xf32> to vector<8x32xf32>
    %2 = vector.extract_strided_slice %0 {offsets = [8, 0], sizes = [8, 32], strides = [1, 1]} : vector<16x32xf32> to vector<8x32xf32>
    %c0_1 = arith.constant 0 : index
    %c0_2 = arith.constant 0 : index
    %3 = vector.load %arg1[%c0_1, %c0_2] : memref<6x32xf32, #tpu.memory_space<vmem>>, vector<6x32xf32>
    %4 = vector.extract_strided_slice %3 {offsets = [0, 0], sizes = [1, 32], strides = [1, 1]} : vector<6x32xf32> to vector<1x32xf32>
    %5 = vector.extract_strided_slice %3 {offsets = [3, 0], sizes = [1, 32], strides = [1, 1]} : vector<6x32xf32> to vector<1x32xf32>
    %6 = vector.extract_strided_slice %3 {offsets = [1, 0], sizes = [1, 32], strides = [1, 1]} : vector<6x32xf32> to vector<1x32xf32>
    %7 = vector.extract_strided_slice %3 {offsets = [4, 0], sizes = [1, 32], strides = [1, 1]} : vector<6x32xf32> to vector<1x32xf32>
    %8 = vector.extract_strided_slice %3 {offsets = [2, 0], sizes = [1, 32], strides = [1, 1]} : vector<6x32xf32> to vector<1x32xf32>
    %9 = vector.extract_strided_slice %3 {offsets = [5, 0], sizes = [1, 32], strides = [1, 1]} : vector<6x32xf32> to vector<1x32xf32>
    %c0_3 = arith.constant 0 : index
    %c0_4 = arith.constant 0 : index
    %10 = vector.load %arg2[%c0_3, %c0_4] : memref<9x32xf32, #tpu.memory_space<vmem>>, vector<9x32xf32>
    %c0_5 = arith.constant 0 : index
    %c0_6 = arith.constant 0 : index
    %11 = vector.load %arg3[%c0_5, %c0_6] : memref<32x128xbf16, #tpu.memory_space<vmem>>, vector<32x128xbf16>
    %c0_7 = arith.constant 0 : index
    %c0_8 = arith.constant 0 : index
    %12 = vector.load %arg4[%c0_7, %c0_8] : memref<32x64xbf16, #tpu.memory_space<vmem>>, vector<32x64xbf16>
    %c0_9 = arith.constant 0 : index
    %c0_10 = arith.constant 0 : index
    %13 = vector.load %arg5[%c0_9, %c0_10] : memref<1x128xf32, #tpu.memory_space<vmem>>, vector<1x128xf32>
    %c0_11 = arith.constant 0 : index
    %c0_12 = arith.constant 0 : index
    %14 = vector.load %arg6[%c0_11, %c0_12] : memref<1x64xf32, #tpu.memory_space<vmem>>, vector<1x64xf32>
    %15 = vector.extract_strided_slice %10 {offsets = [0, 0], sizes = [1, 32], strides = [1, 1]} : vector<9x32xf32> to vector<1x32xf32>
    %16 = vector.shape_cast %15 : vector<1x32xf32> to vector<1x1x32xf32>
    %17 = vector.extract_strided_slice %10 {offsets = [1, 0], sizes = [1, 32], strides = [1, 1]} : vector<9x32xf32> to vector<1x32xf32>
    %18 = vector.extract_strided_slice %10 {offsets = [2, 0], sizes = [1, 32], strides = [1, 1]} : vector<9x32xf32> to vector<1x32xf32>
    %c0_13 = arith.constant 0 : index
    %c0_14 = arith.constant 0 : index
    %19 = vector.load %arg7[%c0_13, %c0_14] : memref<16x8xf32, #tpu.memory_space<vmem>>, vector<16x8xf32>
    %20 = vector.extract_strided_slice %19 {offsets = [0, 0], sizes = [8, 8], strides = [1, 1]} : vector<16x8xf32> to vector<8x8xf32>
    %cst = arith.constant 0.000000e+00 : f32
    %21 = vector.broadcast %cst : f32 to vector<8x8xf32>
    %22 = arith.cmpf ogt, %20, %21 : vector<8x8xf32>
    %cst_15 = arith.constant 0.000000e+00 : f32
    %cst_16 = arith.constant -1.000000e+30 : f32
    %23 = vector.broadcast %cst_15 : f32 to vector<8x8xf32>
    %24 = vector.broadcast %cst_16 : f32 to vector<8x8xf32>
    %25 = arith.select %22, %23, %24 : vector<8x8xi1>, vector<8x8xf32>
    %26 = vector.extract_strided_slice %19 {offsets = [8, 0], sizes = [8, 8], strides = [1, 1]} : vector<16x8xf32> to vector<8x8xf32>
    %27 = vector.shape_cast %26 : vector<8x8xf32> to vector<8x8x1xf32>
    %28 = vector.shape_cast %17 : vector<1x32xf32> to vector<1x1x32xf32>
    %29 = vector.broadcast %27 : vector<8x8x1xf32> to vector<8x8x32xf32>
    %30 = vector.broadcast %28 : vector<1x1x32xf32> to vector<8x8x32xf32>
    %31 = arith.mulf %29, %30 : vector<8x8x32xf32>
    %32 = vector.extract_strided_slice %10 {offsets = [3, 0], sizes = [1, 32], strides = [1, 1]} : vector<9x32xf32> to vector<1x32xf32>
    %33 = vector.shape_cast %32 : vector<1x32xf32> to vector<1x1x32xf32>
    %34 = vector.extract_strided_slice %10 {offsets = [4, 0], sizes = [1, 32], strides = [1, 1]} : vector<9x32xf32> to vector<1x32xf32>
    %35 = vector.extract_strided_slice %10 {offsets = [5, 0], sizes = [1, 32], strides = [1, 1]} : vector<9x32xf32> to vector<1x32xf32>
    %c0_17 = arith.constant 0 : index
    %c0_18 = arith.constant 0 : index
    %36 = vector.load %arg8[%c0_17, %c0_18] : memref<16x8xf32, #tpu.memory_space<vmem>>, vector<16x8xf32>
    %37 = vector.extract_strided_slice %36 {offsets = [0, 0], sizes = [8, 8], strides = [1, 1]} : vector<16x8xf32> to vector<8x8xf32>
    %cst_19 = arith.constant 0.000000e+00 : f32
    %38 = vector.broadcast %cst_19 : f32 to vector<8x8xf32>
    %39 = arith.cmpf ogt, %37, %38 : vector<8x8xf32>
    %cst_20 = arith.constant 0.000000e+00 : f32
    %cst_21 = arith.constant -1.000000e+30 : f32
    %40 = vector.broadcast %cst_20 : f32 to vector<8x8xf32>
    %41 = vector.broadcast %cst_21 : f32 to vector<8x8xf32>
    %42 = arith.select %39, %40, %41 : vector<8x8xi1>, vector<8x8xf32>
    %43 = vector.extract_strided_slice %36 {offsets = [8, 0], sizes = [8, 8], strides = [1, 1]} : vector<16x8xf32> to vector<8x8xf32>
    %44 = vector.shape_cast %43 : vector<8x8xf32> to vector<8x8x1xf32>
    %45 = vector.shape_cast %34 : vector<1x32xf32> to vector<1x1x32xf32>
    %46 = vector.broadcast %44 : vector<8x8x1xf32> to vector<8x8x32xf32>
    %47 = vector.broadcast %45 : vector<1x1x32xf32> to vector<8x8x32xf32>
    %48 = arith.mulf %46, %47 : vector<8x8x32xf32>
    %49 = vector.extract_strided_slice %10 {offsets = [6, 0], sizes = [1, 32], strides = [1, 1]} : vector<9x32xf32> to vector<1x32xf32>
    %50 = vector.shape_cast %49 : vector<1x32xf32> to vector<1x1x32xf32>
    %51 = vector.extract_strided_slice %10 {offsets = [7, 0], sizes = [1, 32], strides = [1, 1]} : vector<9x32xf32> to vector<1x32xf32>
    %52 = vector.extract_strided_slice %10 {offsets = [8, 0], sizes = [1, 32], strides = [1, 1]} : vector<9x32xf32> to vector<1x32xf32>
    %c0_22 = arith.constant 0 : index
    %c0_23 = arith.constant 0 : index
    %53 = vector.load %arg9[%c0_22, %c0_23] : memref<16x8xf32, #tpu.memory_space<vmem>>, vector<16x8xf32>
    %54 = vector.extract_strided_slice %53 {offsets = [0, 0], sizes = [8, 8], strides = [1, 1]} : vector<16x8xf32> to vector<8x8xf32>
    %cst_24 = arith.constant 0.000000e+00 : f32
    %55 = vector.broadcast %cst_24 : f32 to vector<8x8xf32>
    %56 = arith.cmpf ogt, %54, %55 : vector<8x8xf32>
    %cst_25 = arith.constant 0.000000e+00 : f32
    %cst_26 = arith.constant -1.000000e+30 : f32
    %57 = vector.broadcast %cst_25 : f32 to vector<8x8xf32>
    %58 = vector.broadcast %cst_26 : f32 to vector<8x8xf32>
    %59 = arith.select %56, %57, %58 : vector<8x8xi1>, vector<8x8xf32>
    %60 = vector.extract_strided_slice %53 {offsets = [8, 0], sizes = [8, 8], strides = [1, 1]} : vector<16x8xf32> to vector<8x8xf32>
    %61 = vector.shape_cast %60 : vector<8x8xf32> to vector<8x8x1xf32>
    %62 = vector.shape_cast %51 : vector<1x32xf32> to vector<1x1x32xf32>
    %63 = vector.broadcast %61 : vector<8x8x1xf32> to vector<8x8x32xf32>
    %64 = vector.broadcast %62 : vector<1x1x32xf32> to vector<8x8x32xf32>
    %65 = arith.mulf %63, %64 : vector<8x8x32xf32>
    %66 = arith.truncf %1 : vector<8x32xf32> to vector<8x32xbf16>
    %cst_27 = arith.constant dense<0.000000e+00> : vector<8x128xf32>
    %67 = tpu.matmul %66, %11, %cst_27 {dimension_numbers = #tpu.dot_dimension_numbers<[1], [0], [0], [1], [0, 0, 1, 1], [], []>} : vector<8x32xbf16>, vector<32x128xbf16>, vector<8x128xf32> -> vector<8x128xf32>
    %68 = vector.broadcast %13 : vector<1x128xf32> to vector<8x128xf32>
    %69 = arith.addf %67, %68 : vector<8x128xf32>
    %70 = vector.extract_strided_slice %69 {offsets = [0, 0], sizes = [8, 32], strides = [1, 1]} : vector<8x128xf32> to vector<8x32xf32>
    %71 = vector.extract_strided_slice %69 {offsets = [0, 32], sizes = [8, 32], strides = [1, 1]} : vector<8x128xf32> to vector<8x32xf32>
    %72 = vector.extract_strided_slice %69 {offsets = [0, 64], sizes = [8, 32], strides = [1, 1]} : vector<8x128xf32> to vector<8x32xf32>
    %73 = vector.extract_strided_slice %69 {offsets = [0, 96], sizes = [8, 32], strides = [1, 1]} : vector<8x128xf32> to vector<8x32xf32>
    %74 = arith.truncf %2 : vector<8x32xf32> to vector<8x32xbf16>
    %cst_28 = arith.constant dense<0.000000e+00> : vector<8x64xf32>
    %75 = tpu.matmul %74, %12, %cst_28 {dimension_numbers = #tpu.dot_dimension_numbers<[1], [0], [0], [1], [0, 0, 1, 1], [], []>} : vector<8x32xbf16>, vector<32x64xbf16>, vector<8x64xf32> -> vector<8x64xf32>
    %76 = vector.broadcast %14 : vector<1x64xf32> to vector<8x64xf32>
    %77 = arith.addf %75, %76 : vector<8x64xf32>
    %78 = vector.extract_strided_slice %77 {offsets = [0, 0], sizes = [8, 32], strides = [1, 1]} : vector<8x64xf32> to vector<8x32xf32>
    %79 = vector.extract_strided_slice %77 {offsets = [0, 32], sizes = [8, 32], strides = [1, 1]} : vector<8x64xf32> to vector<8x32xf32>
    %80 = vector.shape_cast %70 : vector<8x32xf32> to vector<1x8x32xf32>
    %81 = vector.shape_cast %72 : vector<8x32xf32> to vector<8x1x32xf32>
    %82 = vector.broadcast %80 : vector<1x8x32xf32> to vector<8x8x32xf32>
    %83 = vector.broadcast %81 : vector<8x1x32xf32> to vector<8x8x32xf32>
    %84 = arith.addf %82, %83 : vector<8x8x32xf32>
    %85 = arith.addf %84, %31 : vector<8x8x32xf32>
    %cst_29 = arith.constant 0.000000e+00 : f32
    %86 = vector.broadcast %cst_29 : f32 to vector<8x8x32xf32>
    %87 = arith.cmpf ogt, %85, %86 : vector<8x8x32xf32>
    %cst_30 = arith.constant 2.000000e-01 : f32
    %88 = vector.broadcast %cst_30 : f32 to vector<8x8x32xf32>
    %89 = arith.mulf %88, %85 : vector<8x8x32xf32>
    %90 = arith.select %87, %85, %89 : vector<8x8x32xi1>, vector<8x8x32xf32>
    %91 = vector.broadcast %16 : vector<1x1x32xf32> to vector<8x8x32xf32>
    %92 = arith.mulf %90, %91 : vector<8x8x32xf32>
    %cst_31 = arith.constant dense<0.000000e+00> : vector<8x8xf32>
    %93 = vector.multi_reduction <add>, %92, %cst_31 [2] : vector<8x8x32xf32> to vector<8x8xf32>
    %94 = arith.addf %93, %25 : vector<8x8xf32>
    %cst_32 = arith.constant dense<0xFF800000> : vector<8xf32>
    %95 = vector.multi_reduction <maximumf>, %94, %cst_32 [1] : vector<8x8xf32> to vector<8xf32>
    %96 = vector.shape_cast %95 : vector<8xf32> to vector<8x1xf32>
    %97 = vector.broadcast %96 : vector<8x1xf32> to vector<8x8xf32>
    %98 = arith.subf %94, %97 : vector<8x8xf32>
    %99 = math.exp %98 : vector<8x8xf32>
    %100 = arith.mulf %99, %20 : vector<8x8xf32>
    %cst_33 = arith.constant dense<0.000000e+00> : vector<8xf32>
    %101 = vector.multi_reduction <add>, %100, %cst_33 [1] : vector<8x8xf32> to vector<8xf32>
    %102 = vector.shape_cast %101 : vector<8xf32> to vector<8x1xf32>
    %cst_34 = arith.constant 1.000000e-30 : f32
    %103 = vector.broadcast %cst_34 : f32 to vector<8x1xf32>
    %104 = arith.maximumf %102, %103 : vector<8x1xf32>
    %105 = tpu.reciprocal %104 {approx = true} : vector<8x1xf32> -> vector<8x1xf32>
    %106 = vector.broadcast %105 : vector<8x1xf32> to vector<8x8xf32>
    %107 = arith.mulf %100, %106 : vector<8x8xf32>
    %108 = arith.truncf %107 : vector<8x8xf32> to vector<8x8xbf16>
    %109 = arith.truncf %70 : vector<8x32xf32> to vector<8x32xbf16>
    %cst_35 = arith.constant dense<0.000000e+00> : vector<8x32xf32>
    %110 = tpu.matmul %108, %109, %cst_35 {dimension_numbers = #tpu.dot_dimension_numbers<[1], [0], [0], [1], [0, 0, 1, 1], [], []>} : vector<8x8xbf16>, vector<8x32xbf16>, vector<8x32xf32> -> vector<8x32xf32>
    %111 = vector.broadcast %18 : vector<1x32xf32> to vector<8x32xf32>
    %112 = arith.addf %110, %111 : vector<8x32xf32>
    %113 = vector.shape_cast %71 : vector<8x32xf32> to vector<1x8x32xf32>
    %114 = vector.shape_cast %79 : vector<8x32xf32> to vector<8x1x32xf32>
    %115 = vector.broadcast %113 : vector<1x8x32xf32> to vector<8x8x32xf32>
    %116 = vector.broadcast %114 : vector<8x1x32xf32> to vector<8x8x32xf32>
    %117 = arith.addf %115, %116 : vector<8x8x32xf32>
    %118 = arith.addf %117, %48 : vector<8x8x32xf32>
    %cst_36 = arith.constant 0.000000e+00 : f32
    %119 = vector.broadcast %cst_36 : f32 to vector<8x8x32xf32>
    %120 = arith.cmpf ogt, %118, %119 : vector<8x8x32xf32>
    %cst_37 = arith.constant 2.000000e-01 : f32
    %121 = vector.broadcast %cst_37 : f32 to vector<8x8x32xf32>
    %122 = arith.mulf %121, %118 : vector<8x8x32xf32>
    %123 = arith.select %120, %118, %122 : vector<8x8x32xi1>, vector<8x8x32xf32>
    %124 = vector.broadcast %33 : vector<1x1x32xf32> to vector<8x8x32xf32>
    %125 = arith.mulf %123, %124 : vector<8x8x32xf32>
    %cst_38 = arith.constant dense<0.000000e+00> : vector<8x8xf32>
    %126 = vector.multi_reduction <add>, %125, %cst_38 [2] : vector<8x8x32xf32> to vector<8x8xf32>
    %127 = arith.addf %126, %42 : vector<8x8xf32>
    %cst_39 = arith.constant dense<0xFF800000> : vector<8xf32>
    %128 = vector.multi_reduction <maximumf>, %127, %cst_39 [1] : vector<8x8xf32> to vector<8xf32>
    %129 = vector.shape_cast %128 : vector<8xf32> to vector<8x1xf32>
    %130 = vector.broadcast %129 : vector<8x1xf32> to vector<8x8xf32>
    %131 = arith.subf %127, %130 : vector<8x8xf32>
    %132 = math.exp %131 : vector<8x8xf32>
    %133 = arith.mulf %132, %37 : vector<8x8xf32>
    %cst_40 = arith.constant dense<0.000000e+00> : vector<8xf32>
    %134 = vector.multi_reduction <add>, %133, %cst_40 [1] : vector<8x8xf32> to vector<8xf32>
    %135 = vector.shape_cast %134 : vector<8xf32> to vector<8x1xf32>
    %cst_41 = arith.constant 1.000000e-30 : f32
    %136 = vector.broadcast %cst_41 : f32 to vector<8x1xf32>
    %137 = arith.maximumf %135, %136 : vector<8x1xf32>
    %138 = tpu.reciprocal %137 {approx = true} : vector<8x1xf32> -> vector<8x1xf32>
    %139 = vector.broadcast %138 : vector<8x1xf32> to vector<8x8xf32>
    %140 = arith.mulf %133, %139 : vector<8x8xf32>
    %141 = arith.truncf %140 : vector<8x8xf32> to vector<8x8xbf16>
    %142 = arith.truncf %71 : vector<8x32xf32> to vector<8x32xbf16>
    %cst_42 = arith.constant dense<0.000000e+00> : vector<8x32xf32>
    %143 = tpu.matmul %141, %142, %cst_42 {dimension_numbers = #tpu.dot_dimension_numbers<[1], [0], [0], [1], [0, 0, 1, 1], [], []>} : vector<8x8xbf16>, vector<8x32xbf16>, vector<8x32xf32> -> vector<8x32xf32>
    %144 = vector.broadcast %35 : vector<1x32xf32> to vector<8x32xf32>
    %145 = arith.addf %143, %144 : vector<8x32xf32>
    %146 = vector.shape_cast %78 : vector<8x32xf32> to vector<1x8x32xf32>
    %147 = vector.shape_cast %73 : vector<8x32xf32> to vector<8x1x32xf32>
    %148 = vector.broadcast %146 : vector<1x8x32xf32> to vector<8x8x32xf32>
    %149 = vector.broadcast %147 : vector<8x1x32xf32> to vector<8x8x32xf32>
    %150 = arith.addf %148, %149 : vector<8x8x32xf32>
    %151 = arith.addf %150, %65 : vector<8x8x32xf32>
    %cst_43 = arith.constant 0.000000e+00 : f32
    %152 = vector.broadcast %cst_43 : f32 to vector<8x8x32xf32>
    %153 = arith.cmpf ogt, %151, %152 : vector<8x8x32xf32>
    %cst_44 = arith.constant 2.000000e-01 : f32
    %154 = vector.broadcast %cst_44 : f32 to vector<8x8x32xf32>
    %155 = arith.mulf %154, %151 : vector<8x8x32xf32>
    %156 = arith.select %153, %151, %155 : vector<8x8x32xi1>, vector<8x8x32xf32>
    %157 = vector.broadcast %50 : vector<1x1x32xf32> to vector<8x8x32xf32>
    %158 = arith.mulf %156, %157 : vector<8x8x32xf32>
    %cst_45 = arith.constant dense<0.000000e+00> : vector<8x8xf32>
    %159 = vector.multi_reduction <add>, %158, %cst_45 [2] : vector<8x8x32xf32> to vector<8x8xf32>
    %160 = arith.addf %159, %59 : vector<8x8xf32>
    %cst_46 = arith.constant dense<0xFF800000> : vector<8xf32>
    %161 = vector.multi_reduction <maximumf>, %160, %cst_46 [1] : vector<8x8xf32> to vector<8xf32>
    %162 = vector.shape_cast %161 : vector<8xf32> to vector<8x1xf32>
    %163 = vector.broadcast %162 : vector<8x1xf32> to vector<8x8xf32>
    %164 = arith.subf %160, %163 : vector<8x8xf32>
    %165 = math.exp %164 : vector<8x8xf32>
    %166 = arith.mulf %165, %54 : vector<8x8xf32>
    %cst_47 = arith.constant dense<0.000000e+00> : vector<8xf32>
    %167 = vector.multi_reduction <add>, %166, %cst_47 [1] : vector<8x8xf32> to vector<8xf32>
    %168 = vector.shape_cast %167 : vector<8xf32> to vector<8x1xf32>
    %cst_48 = arith.constant 1.000000e-30 : f32
    %169 = vector.broadcast %cst_48 : f32 to vector<8x1xf32>
    %170 = arith.maximumf %168, %169 : vector<8x1xf32>
    %171 = tpu.reciprocal %170 {approx = true} : vector<8x1xf32> -> vector<8x1xf32>
    %172 = vector.broadcast %171 : vector<8x1xf32> to vector<8x8xf32>
    %173 = arith.mulf %166, %172 : vector<8x8xf32>
    %174 = arith.truncf %173 : vector<8x8xf32> to vector<8x8xbf16>
    %175 = arith.truncf %78 : vector<8x32xf32> to vector<8x32xbf16>
    %cst_49 = arith.constant dense<0.000000e+00> : vector<8x32xf32>
    %176 = tpu.matmul %174, %175, %cst_49 {dimension_numbers = #tpu.dot_dimension_numbers<[1], [0], [0], [1], [0, 0, 1, 1], [], []>} : vector<8x8xbf16>, vector<8x32xbf16>, vector<8x32xf32> -> vector<8x32xf32>
    %177 = vector.broadcast %52 : vector<1x32xf32> to vector<8x32xf32>
    %178 = arith.addf %176, %177 : vector<8x32xf32>
    %179 = arith.addf %112, %178 : vector<8x32xf32>
    %cst_50 = arith.constant 0.000000e+00 : f32
    %180 = vector.broadcast %cst_50 : f32 to vector<8x32xf32>
    %181 = arith.maximumf %179, %180 : vector<8x32xf32>
    %182 = arith.addf %181, %1 : vector<8x32xf32>
    %cst_51 = arith.constant 5.000000e-01 : f32
    %183 = vector.broadcast %cst_51 : f32 to vector<8x32xf32>
    %184 = arith.mulf %182, %183 : vector<8x32xf32>
    %cst_52 = arith.constant dense<0.000000e+00> : vector<32xf32>
    %185 = vector.multi_reduction <add>, %184, %cst_52 [0] : vector<8x32xf32> to vector<32xf32>
    %186 = vector.shape_cast %185 : vector<32xf32> to vector<1x32xf32>
    %cst_53 = arith.constant 8.000000e+00 : f32
    %187 = vector.broadcast %cst_53 : f32 to vector<1x32xf32>
    %188 = arith.divf %186, %187 : vector<1x32xf32>
    %189 = arith.mulf %188, %8 : vector<1x32xf32>
    %190 = vector.broadcast %189 : vector<1x32xf32> to vector<8x32xf32>
    %191 = arith.subf %184, %190 : vector<8x32xf32>
    %192 = arith.mulf %191, %191 : vector<8x32xf32>
    %cst_54 = arith.constant dense<0.000000e+00> : vector<32xf32>
    %193 = vector.multi_reduction <add>, %192, %cst_54 [0] : vector<8x32xf32> to vector<32xf32>
    %194 = vector.shape_cast %193 : vector<32xf32> to vector<1x32xf32>
    %cst_55 = arith.constant 8.000000e+00 : f32
    %195 = vector.broadcast %cst_55 : f32 to vector<1x32xf32>
    %196 = arith.divf %194, %195 : vector<1x32xf32>
    %197 = vector.broadcast %4 : vector<1x32xf32> to vector<8x32xf32>
    %198 = arith.mulf %197, %191 : vector<8x32xf32>
    %cst_56 = arith.constant 9.99999974E-6 : f32
    %199 = vector.broadcast %cst_56 : f32 to vector<1x32xf32>
    %200 = arith.addf %196, %199 : vector<1x32xf32>
    %201 = math.rsqrt %200 : vector<1x32xf32>
    %202 = vector.broadcast %201 : vector<1x32xf32> to vector<8x32xf32>
    %203 = arith.mulf %198, %202 : vector<8x32xf32>
    %204 = vector.broadcast %6 : vector<1x32xf32> to vector<8x32xf32>
    %205 = arith.addf %203, %204 : vector<8x32xf32>
    %cst_57 = arith.constant 0.000000e+00 : f32
    %206 = vector.broadcast %cst_57 : f32 to vector<8x32xf32>
    %207 = arith.maximumf %145, %206 : vector<8x32xf32>
    %208 = arith.addf %207, %2 : vector<8x32xf32>
    %cst_58 = arith.constant 5.000000e-01 : f32
    %209 = vector.broadcast %cst_58 : f32 to vector<8x32xf32>
    %210 = arith.mulf %208, %209 : vector<8x32xf32>
    %cst_59 = arith.constant dense<0.000000e+00> : vector<32xf32>
    %211 = vector.multi_reduction <add>, %210, %cst_59 [0] : vector<8x32xf32> to vector<32xf32>
    %212 = vector.shape_cast %211 : vector<32xf32> to vector<1x32xf32>
    %cst_60 = arith.constant 8.000000e+00 : f32
    %213 = vector.broadcast %cst_60 : f32 to vector<1x32xf32>
    %214 = arith.divf %212, %213 : vector<1x32xf32>
    %215 = arith.mulf %214, %9 : vector<1x32xf32>
    %216 = vector.broadcast %215 : vector<1x32xf32> to vector<8x32xf32>
    %217 = arith.subf %210, %216 : vector<8x32xf32>
    %218 = arith.mulf %217, %217 : vector<8x32xf32>
    %cst_61 = arith.constant dense<0.000000e+00> : vector<32xf32>
    %219 = vector.multi_reduction <add>, %218, %cst_61 [0] : vector<8x32xf32> to vector<32xf32>
    %220 = vector.shape_cast %219 : vector<32xf32> to vector<1x32xf32>
    %cst_62 = arith.constant 8.000000e+00 : f32
    %221 = vector.broadcast %cst_62 : f32 to vector<1x32xf32>
    %222 = arith.divf %220, %221 : vector<1x32xf32>
    %223 = vector.broadcast %5 : vector<1x32xf32> to vector<8x32xf32>
    %224 = arith.mulf %223, %217 : vector<8x32xf32>
    %cst_63 = arith.constant 9.99999974E-6 : f32
    %225 = vector.broadcast %cst_63 : f32 to vector<1x32xf32>
    %226 = arith.addf %222, %225 : vector<1x32xf32>
    %227 = math.rsqrt %226 : vector<1x32xf32>
    %228 = vector.broadcast %227 : vector<1x32xf32> to vector<8x32xf32>
    %229 = arith.mulf %224, %228 : vector<8x32xf32>
    %230 = vector.broadcast %7 : vector<1x32xf32> to vector<8x32xf32>
    %231 = arith.addf %229, %230 : vector<8x32xf32>
    %232 = arith.truncf %205 : vector<8x32xf32> to vector<8x32xbf16>
    %cst_64 = arith.constant dense<0.000000e+00> : vector<8x128xf32>
    %233 = tpu.matmul %232, %11, %cst_64 {dimension_numbers = #tpu.dot_dimension_numbers<[1], [0], [0], [1], [0, 0, 1, 1], [], []>} : vector<8x32xbf16>, vector<32x128xbf16>, vector<8x128xf32> -> vector<8x128xf32>
    %234 = vector.broadcast %13 : vector<1x128xf32> to vector<8x128xf32>
    %235 = arith.addf %233, %234 : vector<8x128xf32>
    %236 = vector.extract_strided_slice %235 {offsets = [0, 0], sizes = [8, 32], strides = [1, 1]} : vector<8x128xf32> to vector<8x32xf32>
    %237 = vector.extract_strided_slice %235 {offsets = [0, 32], sizes = [8, 32], strides = [1, 1]} : vector<8x128xf32> to vector<8x32xf32>
    %238 = vector.extract_strided_slice %235 {offsets = [0, 64], sizes = [8, 32], strides = [1, 1]} : vector<8x128xf32> to vector<8x32xf32>
    %239 = vector.extract_strided_slice %235 {offsets = [0, 96], sizes = [8, 32], strides = [1, 1]} : vector<8x128xf32> to vector<8x32xf32>
    %240 = arith.truncf %231 : vector<8x32xf32> to vector<8x32xbf16>
    %cst_65 = arith.constant dense<0.000000e+00> : vector<8x64xf32>
    %241 = tpu.matmul %240, %12, %cst_65 {dimension_numbers = #tpu.dot_dimension_numbers<[1], [0], [0], [1], [0, 0, 1, 1], [], []>} : vector<8x32xbf16>, vector<32x64xbf16>, vector<8x64xf32> -> vector<8x64xf32>
    %242 = vector.broadcast %14 : vector<1x64xf32> to vector<8x64xf32>
    %243 = arith.addf %241, %242 : vector<8x64xf32>
    %244 = vector.extract_strided_slice %243 {offsets = [0, 0], sizes = [8, 32], strides = [1, 1]} : vector<8x64xf32> to vector<8x32xf32>
    %245 = vector.extract_strided_slice %243 {offsets = [0, 32], sizes = [8, 32], strides = [1, 1]} : vector<8x64xf32> to vector<8x32xf32>
    %246 = vector.shape_cast %236 : vector<8x32xf32> to vector<1x8x32xf32>
    %247 = vector.shape_cast %238 : vector<8x32xf32> to vector<8x1x32xf32>
    %248 = vector.broadcast %246 : vector<1x8x32xf32> to vector<8x8x32xf32>
    %249 = vector.broadcast %247 : vector<8x1x32xf32> to vector<8x8x32xf32>
    %250 = arith.addf %248, %249 : vector<8x8x32xf32>
    %251 = arith.addf %250, %31 : vector<8x8x32xf32>
    %cst_66 = arith.constant 0.000000e+00 : f32
    %252 = vector.broadcast %cst_66 : f32 to vector<8x8x32xf32>
    %253 = arith.cmpf ogt, %251, %252 : vector<8x8x32xf32>
    %cst_67 = arith.constant 2.000000e-01 : f32
    %254 = vector.broadcast %cst_67 : f32 to vector<8x8x32xf32>
    %255 = arith.mulf %254, %251 : vector<8x8x32xf32>
    %256 = arith.select %253, %251, %255 : vector<8x8x32xi1>, vector<8x8x32xf32>
    %257 = vector.broadcast %16 : vector<1x1x32xf32> to vector<8x8x32xf32>
    %258 = arith.mulf %256, %257 : vector<8x8x32xf32>
    %cst_68 = arith.constant dense<0.000000e+00> : vector<8x8xf32>
    %259 = vector.multi_reduction <add>, %258, %cst_68 [2] : vector<8x8x32xf32> to vector<8x8xf32>
    %260 = arith.addf %259, %25 : vector<8x8xf32>
    %cst_69 = arith.constant dense<0xFF800000> : vector<8xf32>
    %261 = vector.multi_reduction <maximumf>, %260, %cst_69 [1] : vector<8x8xf32> to vector<8xf32>
    %262 = vector.shape_cast %261 : vector<8xf32> to vector<8x1xf32>
    %263 = vector.broadcast %262 : vector<8x1xf32> to vector<8x8xf32>
    %264 = arith.subf %260, %263 : vector<8x8xf32>
    %265 = math.exp %264 : vector<8x8xf32>
    %266 = arith.mulf %265, %20 : vector<8x8xf32>
    %cst_70 = arith.constant dense<0.000000e+00> : vector<8xf32>
    %267 = vector.multi_reduction <add>, %266, %cst_70 [1] : vector<8x8xf32> to vector<8xf32>
    %268 = vector.shape_cast %267 : vector<8xf32> to vector<8x1xf32>
    %cst_71 = arith.constant 1.000000e-30 : f32
    %269 = vector.broadcast %cst_71 : f32 to vector<8x1xf32>
    %270 = arith.maximumf %268, %269 : vector<8x1xf32>
    %271 = tpu.reciprocal %270 {approx = true} : vector<8x1xf32> -> vector<8x1xf32>
    %272 = vector.broadcast %271 : vector<8x1xf32> to vector<8x8xf32>
    %273 = arith.mulf %266, %272 : vector<8x8xf32>
    %274 = arith.truncf %273 : vector<8x8xf32> to vector<8x8xbf16>
    %275 = arith.truncf %236 : vector<8x32xf32> to vector<8x32xbf16>
    %cst_72 = arith.constant dense<0.000000e+00> : vector<8x32xf32>
    %276 = tpu.matmul %274, %275, %cst_72 {dimension_numbers = #tpu.dot_dimension_numbers<[1], [0], [0], [1], [0, 0, 1, 1], [], []>} : vector<8x8xbf16>, vector<8x32xbf16>, vector<8x32xf32> -> vector<8x32xf32>
    %277 = vector.broadcast %18 : vector<1x32xf32> to vector<8x32xf32>
    %278 = arith.addf %276, %277 : vector<8x32xf32>
    %279 = vector.shape_cast %237 : vector<8x32xf32> to vector<1x8x32xf32>
    %280 = vector.shape_cast %245 : vector<8x32xf32> to vector<8x1x32xf32>
    %281 = vector.broadcast %279 : vector<1x8x32xf32> to vector<8x8x32xf32>
    %282 = vector.broadcast %280 : vector<8x1x32xf32> to vector<8x8x32xf32>
    %283 = arith.addf %281, %282 : vector<8x8x32xf32>
    %284 = arith.addf %283, %48 : vector<8x8x32xf32>
    %cst_73 = arith.constant 0.000000e+00 : f32
    %285 = vector.broadcast %cst_73 : f32 to vector<8x8x32xf32>
    %286 = arith.cmpf ogt, %284, %285 : vector<8x8x32xf32>
    %cst_74 = arith.constant 2.000000e-01 : f32
    %287 = vector.broadcast %cst_74 : f32 to vector<8x8x32xf32>
    %288 = arith.mulf %287, %284 : vector<8x8x32xf32>
    %289 = arith.select %286, %284, %288 : vector<8x8x32xi1>, vector<8x8x32xf32>
    %290 = vector.broadcast %33 : vector<1x1x32xf32> to vector<8x8x32xf32>
    %291 = arith.mulf %289, %290 : vector<8x8x32xf32>
    %cst_75 = arith.constant dense<0.000000e+00> : vector<8x8xf32>
    %292 = vector.multi_reduction <add>, %291, %cst_75 [2] : vector<8x8x32xf32> to vector<8x8xf32>
    %293 = arith.addf %292, %42 : vector<8x8xf32>
    %cst_76 = arith.constant dense<0xFF800000> : vector<8xf32>
    %294 = vector.multi_reduction <maximumf>, %293, %cst_76 [1] : vector<8x8xf32> to vector<8xf32>
    %295 = vector.shape_cast %294 : vector<8xf32> to vector<8x1xf32>
    %296 = vector.broadcast %295 : vector<8x1xf32> to vector<8x8xf32>
    %297 = arith.subf %293, %296 : vector<8x8xf32>
    %298 = math.exp %297 : vector<8x8xf32>
    %299 = arith.mulf %298, %37 : vector<8x8xf32>
    %cst_77 = arith.constant dense<0.000000e+00> : vector<8xf32>
    %300 = vector.multi_reduction <add>, %299, %cst_77 [1] : vector<8x8xf32> to vector<8xf32>
    %301 = vector.shape_cast %300 : vector<8xf32> to vector<8x1xf32>
    %cst_78 = arith.constant 1.000000e-30 : f32
    %302 = vector.broadcast %cst_78 : f32 to vector<8x1xf32>
    %303 = arith.maximumf %301, %302 : vector<8x1xf32>
    %304 = tpu.reciprocal %303 {approx = true} : vector<8x1xf32> -> vector<8x1xf32>
    %305 = vector.broadcast %304 : vector<8x1xf32> to vector<8x8xf32>
    %306 = arith.mulf %299, %305 : vector<8x8xf32>
    %307 = arith.truncf %306 : vector<8x8xf32> to vector<8x8xbf16>
    %308 = arith.truncf %237 : vector<8x32xf32> to vector<8x32xbf16>
    %cst_79 = arith.constant dense<0.000000e+00> : vector<8x32xf32>
    %309 = tpu.matmul %307, %308, %cst_79 {dimension_numbers = #tpu.dot_dimension_numbers<[1], [0], [0], [1], [0, 0, 1, 1], [], []>} : vector<8x8xbf16>, vector<8x32xbf16>, vector<8x32xf32> -> vector<8x32xf32>
    %310 = vector.broadcast %35 : vector<1x32xf32> to vector<8x32xf32>
    %311 = arith.addf %309, %310 : vector<8x32xf32>
    %312 = vector.shape_cast %244 : vector<8x32xf32> to vector<1x8x32xf32>
    %313 = vector.shape_cast %239 : vector<8x32xf32> to vector<8x1x32xf32>
    %314 = vector.broadcast %312 : vector<1x8x32xf32> to vector<8x8x32xf32>
    %315 = vector.broadcast %313 : vector<8x1x32xf32> to vector<8x8x32xf32>
    %316 = arith.addf %314, %315 : vector<8x8x32xf32>
    %317 = arith.addf %316, %65 : vector<8x8x32xf32>
    %cst_80 = arith.constant 0.000000e+00 : f32
    %318 = vector.broadcast %cst_80 : f32 to vector<8x8x32xf32>
    %319 = arith.cmpf ogt, %317, %318 : vector<8x8x32xf32>
    %cst_81 = arith.constant 2.000000e-01 : f32
    %320 = vector.broadcast %cst_81 : f32 to vector<8x8x32xf32>
    %321 = arith.mulf %320, %317 : vector<8x8x32xf32>
    %322 = arith.select %319, %317, %321 : vector<8x8x32xi1>, vector<8x8x32xf32>
    %323 = vector.broadcast %50 : vector<1x1x32xf32> to vector<8x8x32xf32>
    %324 = arith.mulf %322, %323 : vector<8x8x32xf32>
    %cst_82 = arith.constant dense<0.000000e+00> : vector<8x8xf32>
    %325 = vector.multi_reduction <add>, %324, %cst_82 [2] : vector<8x8x32xf32> to vector<8x8xf32>
    %326 = arith.addf %325, %59 : vector<8x8xf32>
    %cst_83 = arith.constant dense<0xFF800000> : vector<8xf32>
    %327 = vector.multi_reduction <maximumf>, %326, %cst_83 [1] : vector<8x8xf32> to vector<8xf32>
    %328 = vector.shape_cast %327 : vector<8xf32> to vector<8x1xf32>
    %329 = vector.broadcast %328 : vector<8x1xf32> to vector<8x8xf32>
    %330 = arith.subf %326, %329 : vector<8x8xf32>
    %331 = math.exp %330 : vector<8x8xf32>
    %332 = arith.mulf %331, %54 : vector<8x8xf32>
    %cst_84 = arith.constant dense<0.000000e+00> : vector<8xf32>
    %333 = vector.multi_reduction <add>, %332, %cst_84 [1] : vector<8x8xf32> to vector<8xf32>
    %334 = vector.shape_cast %333 : vector<8xf32> to vector<8x1xf32>
    %cst_85 = arith.constant 1.000000e-30 : f32
    %335 = vector.broadcast %cst_85 : f32 to vector<8x1xf32>
    %336 = arith.maximumf %334, %335 : vector<8x1xf32>
    %337 = tpu.reciprocal %336 {approx = true} : vector<8x1xf32> -> vector<8x1xf32>
    %338 = vector.broadcast %337 : vector<8x1xf32> to vector<8x8xf32>
    %339 = arith.mulf %332, %338 : vector<8x8xf32>
    %340 = arith.truncf %339 : vector<8x8xf32> to vector<8x8xbf16>
    %341 = arith.truncf %244 : vector<8x32xf32> to vector<8x32xbf16>
    %cst_86 = arith.constant dense<0.000000e+00> : vector<8x32xf32>
    %342 = tpu.matmul %340, %341, %cst_86 {dimension_numbers = #tpu.dot_dimension_numbers<[1], [0], [0], [1], [0, 0, 1, 1], [], []>} : vector<8x8xbf16>, vector<8x32xbf16>, vector<8x32xf32> -> vector<8x32xf32>
    %343 = vector.broadcast %52 : vector<1x32xf32> to vector<8x32xf32>
    %344 = arith.addf %342, %343 : vector<8x32xf32>
    %345 = arith.addf %278, %344 : vector<8x32xf32>
    %cst_87 = arith.constant 0.000000e+00 : f32
    %346 = vector.broadcast %cst_87 : f32 to vector<8x32xf32>
    %347 = arith.maximumf %345, %346 : vector<8x32xf32>
    %348 = arith.addf %347, %1 : vector<8x32xf32>
    %cst_88 = arith.constant 5.000000e-01 : f32
    %349 = vector.broadcast %cst_88 : f32 to vector<8x32xf32>
    %350 = arith.mulf %348, %349 : vector<8x32xf32>
    %cst_89 = arith.constant dense<0.000000e+00> : vector<32xf32>
    %351 = vector.multi_reduction <add>, %350, %cst_89 [0] : vector<8x32xf32> to vector<32xf32>
    %352 = vector.shape_cast %351 : vector<32xf32> to vector<1x32xf32>
    %cst_90 = arith.constant 8.000000e+00 : f32
    %353 = vector.broadcast %cst_90 : f32 to vector<1x32xf32>
    %354 = arith.divf %352, %353 : vector<1x32xf32>
    %355 = arith.mulf %354, %8 : vector<1x32xf32>
    %356 = vector.broadcast %355 : vector<1x32xf32> to vector<8x32xf32>
    %357 = arith.subf %350, %356 : vector<8x32xf32>
    %358 = arith.mulf %357, %357 : vector<8x32xf32>
    %cst_91 = arith.constant dense<0.000000e+00> : vector<32xf32>
    %359 = vector.multi_reduction <add>, %358, %cst_91 [0] : vector<8x32xf32> to vector<32xf32>
    %360 = vector.shape_cast %359 : vector<32xf32> to vector<1x32xf32>
    %cst_92 = arith.constant 8.000000e+00 : f32
    %361 = vector.broadcast %cst_92 : f32 to vector<1x32xf32>
    %362 = arith.divf %360, %361 : vector<1x32xf32>
    %363 = vector.broadcast %4 : vector<1x32xf32> to vector<8x32xf32>
    %364 = arith.mulf %363, %357 : vector<8x32xf32>
    %cst_93 = arith.constant 9.99999974E-6 : f32
    %365 = vector.broadcast %cst_93 : f32 to vector<1x32xf32>
    %366 = arith.addf %362, %365 : vector<1x32xf32>
    %367 = math.rsqrt %366 : vector<1x32xf32>
    %368 = vector.broadcast %367 : vector<1x32xf32> to vector<8x32xf32>
    %369 = arith.mulf %364, %368 : vector<8x32xf32>
    %370 = vector.broadcast %6 : vector<1x32xf32> to vector<8x32xf32>
    %371 = arith.addf %369, %370 : vector<8x32xf32>
    %cst_94 = arith.constant 0.000000e+00 : f32
    %372 = vector.broadcast %cst_94 : f32 to vector<8x32xf32>
    %373 = arith.maximumf %311, %372 : vector<8x32xf32>
    %374 = arith.addf %373, %2 : vector<8x32xf32>
    %cst_95 = arith.constant 5.000000e-01 : f32
    %375 = vector.broadcast %cst_95 : f32 to vector<8x32xf32>
    %376 = arith.mulf %374, %375 : vector<8x32xf32>
    %cst_96 = arith.constant dense<0.000000e+00> : vector<32xf32>
    %377 = vector.multi_reduction <add>, %376, %cst_96 [0] : vector<8x32xf32> to vector<32xf32>
    %378 = vector.shape_cast %377 : vector<32xf32> to vector<1x32xf32>
    %cst_97 = arith.constant 8.000000e+00 : f32
    %379 = vector.broadcast %cst_97 : f32 to vector<1x32xf32>
    %380 = arith.divf %378, %379 : vector<1x32xf32>
    %381 = arith.mulf %380, %9 : vector<1x32xf32>
    %382 = vector.broadcast %381 : vector<1x32xf32> to vector<8x32xf32>
    %383 = arith.subf %376, %382 : vector<8x32xf32>
    %384 = arith.mulf %383, %383 : vector<8x32xf32>
    %cst_98 = arith.constant dense<0.000000e+00> : vector<32xf32>
    %385 = vector.multi_reduction <add>, %384, %cst_98 [0] : vector<8x32xf32> to vector<32xf32>
    %386 = vector.shape_cast %385 : vector<32xf32> to vector<1x32xf32>
    %cst_99 = arith.constant 8.000000e+00 : f32
    %387 = vector.broadcast %cst_99 : f32 to vector<1x32xf32>
    %388 = arith.divf %386, %387 : vector<1x32xf32>
    %389 = vector.broadcast %5 : vector<1x32xf32> to vector<8x32xf32>
    %390 = arith.mulf %389, %383 : vector<8x32xf32>
    %cst_100 = arith.constant 9.99999974E-6 : f32
    %391 = vector.broadcast %cst_100 : f32 to vector<1x32xf32>
    %392 = arith.addf %388, %391 : vector<1x32xf32>
    %393 = math.rsqrt %392 : vector<1x32xf32>
    %394 = vector.broadcast %393 : vector<1x32xf32> to vector<8x32xf32>
    %395 = arith.mulf %390, %394 : vector<8x32xf32>
    %396 = vector.broadcast %7 : vector<1x32xf32> to vector<8x32xf32>
    %397 = arith.addf %395, %396 : vector<8x32xf32>
    %398 = tpu.concatenate %371, %397 in 0 : vector<8x32xf32>, vector<8x32xf32> -> vector<16x32xf32>
    %c0_101 = arith.constant 0 : index
    %c0_102 = arith.constant 0 : index
    %399 = vector.load %arg10[%c0_101, %c0_102] : memref<16x32xf32, #tpu.memory_space<vmem>>, vector<16x32xf32>
    tpu.vector_store %arg10[%c0_101, %c0_102], %398 {strides = array<i32>} : memref<16x32xf32, #tpu.memory_space<vmem>>, vector<16x32xf32>,
    return
  }
}

</mosaic_0001>

<bundles_post_ra>
// kernel: tpu_custom_call.1
= control target key start
LH: loop header
LB: loop body
LE: loop exit
PB: predicated region body
PF: predicated region fallthrough
CT: control target
= control target key end

     0   :  { %15 = vsyncpa [#allocation3], 0  ;;  %s5338_s0 = inlined_call_operand.vmem [shape: f32[16,32], index: 0, kind: input, shape index: {}]   ;;  %s5339_s1 = inlined_call_operand.vmem [shape: f32[6,32], index: 1, kind: input, shape index: {}]   ;;  %s5340_s2 = inlined_call_operand.vmem [shape: f32[9,32], index: 2, kind: input, shape index: {}]   ;;  %s5341_s3 = inlined_call_operand.vmem [shape: bf16[32,128], index: 3, kind: input, shape index: {}]   ;;  %s5342_s4 = inlined_call_operand.hbm [shape: bf16[32,64], index: 4, kind: input, shape index: {}]   ;;  %s5343_s5 = inlined_call_operand.vmem [shape: f32[1,128], index: 5, kind: input, shape index: {}]   ;;  %s5344_s6 = inlined_call_operand.vmem [shape: f32[1,64], index: 6, kind: input, shape index: {}]   ;;  %s5345_s7 = inlined_call_operand.vmem [shape: f32[16,8], index: 7, kind: input, shape index: {}]   ;;  %s5346_s8 = inlined_call_operand.vmem [shape: f32[16,8], index: 8, kind: input, shape index: {}]   ;;  %s5347_s9 = inlined_call_operand.vmem [shape: f32[16,8], index: 9, kind: input, shape index: {}]   ;;  %s5348_s10 = inlined_call_operand.hbm [shape: f32[16,32], index: 10, kind: output, shape index: {}]  }
   0x1   :  { %16 = vsyncpa [#allocation4], 0  ;;  %s29_s15 = sshll.u32 %s5342_s4, 4  ;;  %s3536_s16 = smov [#allocation2]   ;;  %s30_s15 = int_to_ptr.hbm [resolvable:$true] %s29_s15 }
   0x2   :  { %s31_s17 = sshll.u32 %s3536_s16, 4  ;;  %s3537_s18 = smov 64   ;;  %s32_s17 = int_to_ptr.vmem [resolvable:$true] %s31_s17 }
   0x3   :  { %s3538_s19 = smov 4  }
   0x4   :  { %37 = dma.hbm_to_vmem [thread:$0]  %s30_s15, 256, %s32_s17, [#allocation3], %s3537_s18, %s3537_s18, %s3538_s19  }
   0x5   :  { %3532 = dma.done.wait [#allocation3], 256  }
   0x6   :  { %3533 = vsyncadd [#allocation3], 4294967040  ;;  %v5349_v0 = vlaneseq  ;;  %v3322_v2 = vld [vmem:[%s5341_s3 + $0x8] sm:$0xff]  ;;  %v3321_v8 = vld [vmem:[%s5341_s3] sm:$0xff]  ;;  %vm291_vm0 = vcmask 261120   ;;  %vm848_vm2 = vcmask 1043456  }
   0x7   :  { %v3324_v3 = vld [vmem:[#allocation2 + $0x8] sm:$0xff]  ;;  %301 = vmatpush.bf16.msra.mxu0 %v3322_v2  ;;  %v53_v9 = vld [vmem:[%s5338_s0] sm:$0xff]  ;;  %v5350_v38 = vmov -1e+30   ;;  %s3540_s19 = smov 32   ;;  %s3541_s22 = smov 96  }
   0x8   :  { %v3608_v1 = vshrl.u32 %v5349_v0, 7  ;;  %v69_v4 = vld [vmem:[%s5345_s7 + $0x8] sm:$0xff]  ;;  %333 = vmatpush.bf16.msra.mxu1 %v3324_v3  ;;  %v3323_v10 = vld [vmem:[#allocation2] sm:$0xff]  ;;  %v275_v12 = vpack.c.bf16 %v53_v9, %v53_v9  ;;  %s3545_s25 = smov 128   ;;  %s3546_s26 = smov 8  }
   0x9   :  { %v100_v5 = vperm.slane %v69_v4, 4  ;;  %v86_v6 = vperm.slane %v69_v4, 2  ;;  %v72_v7 = vperm.slane %v69_v4, 0  ;;  %v54_v11 = vld [vmem:[%s5338_s0 + $0x8] sm:$0xff]  ;;  %v107_v14 = vperm.slane %v69_v4, 5  ;;  %v3639_v34 = vld [vmem:[%s5345_s7] sm:$0xff] }
   0xa   :  { %3338 = vset.pattern.permute.xlu2 %v3608_v1  ;;  %3337 = vset.pattern.permute.xlu1 %v3608_v1  ;;  %v308_v13 = vpack.c.bf16 %v54_v11, %v54_v11  ;;  %v93_v15 = vperm.slane %v69_v4, 3  ;;  %v79_v16 = vperm.slane %v69_v4, 1  ;;  %v138_v17 = vld [vmem:[%s5346_s8 + $0x8] sm:$0xff]  ;;  %v121_v19 = vperm.slane %v69_v4, 7  ;;  %v3352_v63 = vld [vmem:[%s5343_s5] ss:$0 sm:$0xff] }
   0xb   :  { %3336 = vset.pattern.permute.xlu0 %v3608_v1  ;;  %302 = vmatpush.bf16.msra.mxu0 %v3321_v8  ;;  %v141_v18 = vperm.slane %v138_v17, 0  ;;  %v114_v20 = vperm.slane %v69_v4, 6  ;;  %v162_v21 = vperm.slane %v138_v17, 3  ;;  %v155_v22 = vperm.slane %v138_v17, 2  ;;  %v207_v27 = vld [vmem:[%s5347_s9 + $0x8] sm:$0xff] }
   0xc   :  { %334 = vmatpush.bf16.msra.mxu1 %v3323_v10  ;;  %v148_v23 = vperm.slane %v138_v17, 1  ;;  %v183_v24 = vperm.slane %v138_v17, 6  ;;  %v176_v25 = vperm.slane %v138_v17, 5  ;;  %v169_v26 = vperm.slane %v138_v17, 4 }
   0xd   :  { %v217_v28 = vperm.slane %v207_v27, 1  ;;  %v210_v29 = vperm.slane %v207_v27, 0  ;;  %v190_v30 = vperm.slane %v138_v17, 7  ;;  %v238_v31 = vperm.slane %v207_v27, 4 }
   0xe   :  { %3303 = vmatmul.msk.bf16.vlgmr.msra.gmra.mxu0 %vm291_vm0, %v275_v12  ;;  %v231_v32 = vperm.slane %v207_v27, 3  ;;  %v224_v33 = vperm.slane %v207_v27, 2  ;;  %v259_v35 = vperm.slane %v207_v27, 7  ;;  %v252_v36 = vperm.slane %v207_v27, 6 }
   0xf   :  { %2044 = vmatpush.bf16.msrb.mxu0 %v3324_v3  ;;  %3312 = vmatmul.msk.bf16.vlgmr.msra.gmra.mxu1 %vm291_vm0, %v308_v13  ;;  %v245_v37 = vperm.slane %v207_v27, 5  ;;  %vm70_vm1 = vcmp.gt.f32.partialorder %v3639_v34, 0.0  ;;  %v629_v46 = vperm.slane %v3639_v34, 0  ;;  %v643_v49 = vperm.slane %v3639_v34, 2 }
  0x10   :  { %v71_v39 = vsel %vm70_vm1, 0.0, %v5350_v38  ;;  %v636_v50 = vperm.slane %v3639_v34, 1  ;;  %v657_v52 = vperm.slane %v3639_v34, 4  ;;  %v650_v53 = vperm.slane %v3639_v34, 3 }
  0x11   :  { %v468_v40 = vperm.slane %v71_v39, 2  ;;  %v461_v41 = vperm.slane %v71_v39, 1  ;;  %v454_v42 = vperm.slane %v71_v39, 0  ;;  %v496_v43 = vperm.slane %v71_v39, 6 }
  0x12   :  { %105 = vperm.xlu2 %3338, %v100_v5   ;;  %91 = vperm.xlu1 %3337, %v86_v6   ;;  %v482_v44 = vperm.slane %v71_v39, 4  ;;  %v475_v45 = vperm.slane %v71_v39, 3  ;;  %v503_v47 = vperm.slane %v71_v39, 7  ;;  %v489_v48 = vperm.slane %v71_v39, 5 }
  0x13   :  { %77 = vperm.xlu0 %3336, %v72_v7   ;;  %2045 = vmatpush.bf16.msrb.mxu0 %v3323_v10  ;;  %v671_v55 = vperm.slane %v3639_v34, 6  ;;  %v664_v56 = vperm.slane %v3639_v34, 5  ;;  %v678_v39 = vperm.slane %v3639_v34, 7 }
  0x1a   :  { %112 = vperm.xlu2 %3338, %v107_v14   ;;  %98 = vperm.xlu1 %3337, %v93_v15  }
  0x1b   :  { %84 = vperm.xlu0 %3336, %v79_v16  }
  0x22   :  { %146 = vperm.xlu2 %3338, %v141_v18   ;;  %126 = vperm.xlu1 %3337, %v121_v19  }
  0x23   :  { %119 = vperm.xlu0 %3336, %v114_v20  }
  0x2a   :  { %167 = vperm.xlu2 %3338, %v162_v21   ;;  %160 = vperm.xlu1 %3337, %v155_v22  }
  0x2b   :  { %153 = vperm.xlu0 %3336, %v148_v23  }
  0x32   :  { %188 = vperm.xlu2 %3338, %v183_v24   ;;  %181 = vperm.xlu1 %3337, %v176_v25  }
  0x33   :  { %174 = vperm.xlu0 %3336, %v169_v26   ;;  %v3714_v26 = vld [vmem:[%s5340_s2] sm:$0xff] }
  0x3a   :  { %222 = vperm.xlu2 %3338, %v217_v28   ;;  %215 = vperm.xlu1 %3337, %v210_v29  }
  0x3b   :  { %195 = vperm.xlu0 %3336, %v190_v30   ;;  %v197_v30 = vperm.slane %v3714_v26, 4 }
  0x42   :  { %243 = vperm.xlu2 %3338, %v238_v31   ;;  %236 = vperm.xlu1 %3337, %v231_v32  }
  0x43   :  { %229 = vperm.xlu0 %3336, %v224_v33  }
  0x4a   :  { %264 = vperm.xlu2 %3338, %v259_v35   ;;  %257 = vperm.xlu1 %3337, %v252_v36  }
  0x4b   :  { %250 = vperm.xlu0 %3336, %v245_v37  }
  0x52   :  { %473 = vperm.xlu2 %3338, %v468_v40   ;;  %466 = vperm.xlu1 %3337, %v461_v41  }
  0x53   :  { %459 = vperm.xlu0 %3336, %v454_v42  }
  0x5a   :  { %501 = vperm.xlu2 %3338, %v496_v43   ;;  %487 = vperm.xlu1 %3337, %v482_v44  }
  0x5b   :  { %480 = vperm.xlu0 %3336, %v475_v45  }
  0x62   :  { %634 = vperm.xlu2 %3338, %v629_v46   ;;  %508 = vperm.xlu1 %3337, %v503_v47   ;;  %v3744_v47 = vld [vmem:[%s5346_s8] sm:$0xff] }
  0x63   :  { %494 = vperm.xlu0 %3336, %v489_v48   ;;  %vm139_vm3 = vcmp.gt.f32.partialorder %v3744_v47, 0.0 }
  0x6a   :  { %648 = vperm.xlu2 %3338, %v643_v49   ;;  %641 = vperm.xlu1 %3337, %v636_v50   ;;  %v961_v49 = vperm.slane %v3714_v26, 3 }
  0x6c   :  { %v3646_v51 = vpop.permute.xlu2 %105 }
  0x72   :  { %662 = vperm.xlu2 %3338, %v657_v52   ;;  %655 = vperm.xlu1 %3337, %v650_v53   ;;  %v3753_v52 = vsel %vm139_vm3, 0.0, %v5350_v38 }
  0x74   :  { %v3650_v54 = vpop.permute.xlu2 %112 }
  0x7a   :  { %676 = vperm.xlu2 %3338, %v671_v55   ;;  %669 = vperm.xlu1 %3337, %v664_v56   ;;  %v1038_v56 = vperm.slane %v3753_v52, 1 }
  0x7c   :  { %v147_v57 = vpop.permute.xlu2 %146 }
  0x7d   :  { %v198_v36 = vmul.f32 %v197_v30, %v147_v57 }
  0x84   :  { %v3654_v58 = vpop.permute.xlu1 %91  ;;  %v168_v60 = vpop.permute.xlu2 %167 }
  0x85   :  { %v3656_v59 = vpop.permute.xlu0 %77  ;;  %v201_v44 = vmul.f32 %v197_v30, %v168_v60  ;;  %v1045_v60 = vperm.slane %v3753_v52, 2 }
  0x8b   :  { %v304_v3 = vpop.f32.mrf.mxu0 }
  0x8c   :  { %v3658_v61 = vpop.permute.xlu1 %98  ;;  %v189_v2 = vpop.permute.xlu2 %188  ;;  %v3665_v4 = vadd.f32 %v3352_v63, %v304_v3 }
  0x8d   :  { %v3660_v62 = vpop.permute.xlu0 %84  ;;  %v3667_v5 = vpop.f32.mrf.mxu1  ;;  %v204_v45 = vmul.f32 %v197_v30, %v189_v2 }
  0x8e   :  { %v5351_v6 = vperm.slane %v3665_v4, 0  ;;  %v3672_v7 = vpack.c.bf16 %v3665_v4, %v3665_v4  ;;  %v342_v9 = vrot.slane %v3665_v4, 2  ;;  %v341_v10 = vrot.slane %v3665_v4, 1 }
  0x8f   :  { %v343_v15 = vrot.slane %v3665_v4, 3  ;;  %v345_v18 = vrot.slane %v3665_v4, 5  ;;  %v344_v19 = vrot.slane %v3665_v4, 4  ;;  %v346_v25 = vrot.slane %v3665_v4, 6 }
  0x90   :  { %5417 = vst [vmem:[#allocation8_spill] sm:$0xff] %v3672_v7  ;;  %356 = vrot.lane.b32.xlu0 %v5351_v6, %s3537_s18  ;;  %v850_v11 = vsel %vm848_vm2, %v3672_v7, 0  ;;  %v3683_v12 = vperm.slane %v342_v9, 0  ;;  %v3685_v13 = vperm.slane %v341_v10, 0  ;;  %v347_v28 = vrot.slane %v3665_v4, 7 }
  0x91   :  { %859 = vmatpush.bf16.msra.mxu2 %v850_v11  ;;  %v3698_v21 = vperm.slane %v343_v15, 0  ;;  %v3702_v23 = vperm.slane %v345_v18, 0  ;;  %v3704_v24 = vperm.slane %v344_v19, 0  ;;  %v3717_v29 = vperm.slane %v346_v25, 0 }
  0x92   :  { %360 = vrot.lane.b32.xlu2 %v3683_v12, %s3537_s18  ;;  %358 = vrot.lane.b32.xlu1 %v3685_v13, %s3537_s18  ;;  %v3724_v33 = vperm.slane %v347_v28, 0 }
  0x93   :  { %v306_v16 = vpop.f32.mrf.mxu0 }
  0x94   :  { %v3674_v8 = vpop.permute.xlu1 %126  ;;  %v3694_v17 = vpop.permute.xlu2 %222 }
  0x95   :  { %v3687_v14 = vpop.permute.xlu0 %119  ;;  %v338_v20 = vpop.f32.mrf.mxu1 }
  0x98   :  { %362 = vrot.lane.b32.xlu0 %v3698_v21, %s3537_s18 }
  0x9a   :  { %366 = vrot.lane.b32.xlu2 %v3702_v23, %s3537_s18  ;;  %364 = vrot.lane.b32.xlu1 %v3704_v24, %s3537_s18 }
  0x9c   :  { %v161_v22 = vpop.permute.xlu1 %160  ;;  %v3720_v31 = vpop.permute.xlu2 %243 }
  0x9d   :  { %v154_v27 = vpop.permute.xlu0 %153  ;;  %v200_v43 = vmul.f32 %v197_v30, %v161_v22 }
  0x9e   :  { %v199_v32 = vmul.f32 %v197_v30, %v154_v27 }
  0xa0   :  { %368 = vrot.lane.b32.xlu0 %v3717_v29, %s3537_s18 }
  0xa2   :  { %907 = vrot.lane.b32.xlu2 %v199_v32, %s3540_s19  ;;  %370 = vrot.lane.b32.xlu1 %v3724_v33, %s3537_s18 }
  0xa4   :  { %v182_v35 = vpop.permute.xlu1 %181  ;;  %v3731_v40 = vpop.permute.xlu2 %264 }
  0xa5   :  { %v175_v37 = vpop.permute.xlu0 %174  ;;  %v203_v34 = vmul.f32 %v197_v30, %v182_v35 }
  0xa6   :  { %v202_v41 = vmul.f32 %v197_v30, %v175_v37 }
  0xa8   :  { %905 = vrot.lane.b32.xlu0 %v198_v36, %s3540_s19 }
  0xaa   :  { %913 = vrot.lane.b32.xlu2 %v202_v41, %s3540_s19  ;;  %683 = vperm.xlu1 %3337, %v678_v39  }
  0xac   :  { %v3734_v42 = vpop.permute.xlu1 %215  ;;  %v3737_v46 = vpop.permute.xlu2 %473 }
  0xad   :  { %5418 = vst [vmem:[#allocation9_spill] sm:$0xff] %v3737_v46  ;;  %v196_v50 = vpop.permute.xlu0 %195 }
  0xae   :  { %v205_v55 = vmul.f32 %v197_v30, %v196_v50  ;;  %v3353_v30 = vld [vmem:[%s5344_s6] ss:$0 sm:$0xff] }
  0xaf   :  { %v3802_v37 = vadd.f32 %v3353_v30, %v3667_v5 }
  0xb0   :  { %909 = vrot.lane.b32.xlu0 %v200_v43, %s3540_s19 }
  0xb1   :  { %v1854_v39 = vpack.c.bf16 %v3802_v37, %v3802_v37 }
  0xb2   :  { %917 = vrot.lane.b32.xlu2 %v204_v45, %s3540_s19  ;;  %911 = vrot.lane.b32.xlu1 %v201_v44, %s3540_s19  ;;  %v866_v44 = vrot.slane %v3802_v37, 1 }
  0xb3   :  { %v1916_v43 = vsel %vm848_vm2, %v1854_v39, 0 }
  0xb4   :  { %v3746_v48 = vpop.permute.xlu1 %236  ;;  %v3755_v53 = vpop.permute.xlu2 %501  ;;  %1925 = vmatpush.bf16.msrb.mxu2 %v1916_v43 }
  0xb5   :  { %5419 = vst [vmem:[#allocation10_spill] sm:$0xff] %v3755_v53  ;;  %v3768_v9 = vpop.permute.xlu0 %229 }
  0xb8   :  { %915 = vrot.lane.b32.xlu0 %v203_v34, %s3540_s19 }
  0xba   :  { %963 = vrot.lane.b32.xlu2 %v961_v49, %s3540_s19  ;;  %v874_v49 = vperm.slane %v866_v44, 0 }
  0xbc   :  { %v3759_v57 = vpop.permute.xlu1 %257  ;;  %v3762_v63 = vpop.permute.xlu2 %634  ;;  %v890_v5 = vadd.f32 %v874_v49, %v3665_v4 }
  0xbd   :  { %5420 = vst [vmem:[#allocation11_spill] sm:$0xff] %v3762_v63  ;;  %v3774_v15 = vpop.permute.xlu0 %250 }
  0xc0   :  { %919 = vrot.lane.b32.xlu0 %v205_v55, %s3540_s19  ;;  %v869_v55 = vrot.slane %v3802_v37, 4 }
  0xc2   :  { %1043 = vperm.xlu2 %3338, %v1038_v56   ;;  %v877_v39 = vperm.slane %v869_v55, 0 }
  0xc4   :  { %v3764_v2 = vpop.permute.xlu1 %466  ;;  %v3766_v3 = vpop.permute.xlu2 %648  ;;  %v893_v38 = vadd.f32 %v877_v39, %v3665_v4 }
  0xc5   :  { %5421 = vst [vmem:[#allocation12_spill] sm:$0xff] %v3764_v2  ;;  %v3780_v19 = vpop.permute.xlu0 %459 }
  0xc6   :  { %5422 = vst [vmem:[#allocation13_spill] sm:$0xff] %v3766_v3 }
  0xc7   :  { %5427 = vst [vmem:[#allocation18_spill] sm:$0xff] %v3780_v19 }
  0xc8   :  { %1050 = vperm.xlu0 %3336, %v1045_v60  }
  0xcc   :  { %v3770_v10 = vpop.permute.xlu1 %487  ;;  %v3772_v11 = vpop.permute.xlu2 %662 }
  0xcd   :  { %5423 = vst [vmem:[#allocation14_spill] sm:$0xff] %v3770_v10  ;;  %v3786_v25 = vpop.permute.xlu0 %480 }
  0xce   :  { %5424 = vst [vmem:[#allocation15_spill] sm:$0xff] %v3772_v11 }
  0xcf   :  { %5429 = vst [vmem:[#allocation20_spill] sm:$0xff] %v3786_v25 }
  0xd4   :  { %v3776_v16 = vpop.permute.xlu1 %508  ;;  %v3778_v18 = vpop.permute.xlu2 %676 }
  0xd5   :  { %5425 = vst [vmem:[#allocation16_spill] sm:$0xff] %v3776_v16  ;;  %v3795_v32 = vpop.permute.xlu0 %494 }
  0xd6   :  { %5426 = vst [vmem:[#allocation17_spill] sm:$0xff] %v3778_v18 }
  0xd7   :  { %5431 = vst [vmem:[#allocation22_spill] sm:$0xff] %v3795_v32 }
  0xdc   :  { %v3782_v20 = vpop.permute.xlu1 %641 }
  0xdd   :  { %5428 = vst [vmem:[#allocation19_spill] sm:$0xff] %v3782_v20 }
  0xe4   :  { %v3788_v27 = vpop.permute.xlu1 %655 }
  0xe5   :  { %5430 = vst [vmem:[#allocation21_spill] sm:$0xff] %v3788_v27  ;;  %v867_v27 = vrot.slane %v3802_v37, 2 }
  0xec   :  { %v3784_v22 = vpop.permute.xlu2 %360  ;;  %v3797_v35 = vpop.permute.xlu1 %669 }
  0xed   :  { %5432 = vst [vmem:[#allocation23_spill] sm:$0xff] %v3797_v35 }
  0xf4   :  { %v3790_v28 = vpop.permute.xlu2 %366 }
  0xfc   :  { %v3799_v36 = vpop.permute.xlu2 %907 }
  0xfd   :  { %5433 = vst [vmem:[#allocation24_spill] sm:$0xff] %v3799_v36  ;;  %v930_v56 = vadd.f32 %v3799_v36, %v890_v5  ;;  %v873_v5 = vperm.slane %v3802_v37, 0 }
  0xff   :  { %v946_v0 = vmul.f32 0.2, %v930_v56  ;;  %vm938_vm4 = vcmp.gt.f32.partialorder %v930_v56, 0.0  ;;  %v889_v35 = vadd.f32 %v873_v5, %v3665_v4  ;;  %v871_v5 = vrot.slane %v3802_v37, 6 }
 0x101   :  { %v954_v7 = vsel %vm938_vm4, %v930_v56, %v946_v0 }
 0x102   :  { %v3806_v41 = vpop.permute.xlu0 %356 }
 0x104   :  { %v3810_v45 = vpop.permute.xlu2 %913  ;;  %v3812_v34 = vpop.permute.xlu1 %358 }
 0x105   :  { %5434 = vst [vmem:[#allocation25_spill] sm:$0xff] %v3810_v45  ;;  %v933_v44 = vadd.f32 %v3810_v45, %v893_v38  ;;  %v868_v45 = vrot.slane %v3802_v37, 3 }
 0x107   :  { %v949_v55 = vmul.f32 0.2, %v933_v44  ;;  %vm941_vm5 = vcmp.gt.f32.partialorder %v933_v44, 0.0  ;;  %v876_v11 = vperm.slane %v868_v45, 0 }
 0x109   :  { %v957_v63 = vsel %vm941_vm5, %v933_v44, %v949_v55  ;;  %v879_v44 = vperm.slane %v871_v5, 0  ;;  %v872_v5 = vrot.slane %v3802_v37, 7 }
 0x10a   :  { %v3814_v50 = vpop.permute.xlu0 %362 }
 0x10c   :  { %v3819_v60 = vpop.permute.xlu2 %917  ;;  %v3821_v30 = vpop.permute.xlu1 %364 }
 0x10d   :  { %5435 = vst [vmem:[#allocation26_spill] sm:$0xff] %v3819_v60 }
 0x112   :  { %v3823_v43 = vpop.permute.xlu0 %368 }
 0x114   :  { %v3827_v6 = vpop.permute.xlu2 %963  ;;  %v3829_v49 = vpop.permute.xlu1 %370 }
 0x115   :  { %v967_v36 = vmul.f32 %v3827_v6, %v954_v7  ;;  %v875_v7 = vperm.slane %v867_v27, 0 }
 0x117   :  { %984 = vrot.lane.b32.xlu1 %v967_v36, %s3541_s22  ;;  %v970_v36 = vmul.f32 %v3827_v6, %v957_v63  ;;  %v892_v63 = vadd.f32 %v876_v11, %v3665_v4 }
 0x11a   :  { %v3836_v39 = vpop.permute.xlu0 %905 }
 0x11b   :  { %5436 = vst [vmem:[#allocation27_spill] sm:$0xff] %v3836_v39  ;;  %v929_v38 = vadd.f32 %v3836_v39, %v889_v35  ;;  %v891_v35 = vadd.f32 %v875_v7, %v3665_v4  ;;  %v870_v39 = vrot.slane %v3802_v37, 5  ;;  %v895_v7 = vadd.f32 %v879_v44, %v3665_v4 }
 0x11c   :  { %v3840_v56 = vpop.permute.xlu1 %683 }
 0x11d   :  { %v945_v0 = vmul.f32 0.2, %v929_v38  ;;  %5437 = vst [vmem:[#allocation28_spill] sm:$0xff] %v3840_v56  ;;  %vm937_vm6 = vcmp.gt.f32.partialorder %v929_v38, 0.0  ;;  %v935_v11 = vadd.f32 %v3819_v60, %v895_v7 }
 0x11f   :  { %v953_v18 = vsel %vm937_vm6, %v929_v38, %v945_v0  ;;  %990 = vrot.lane.b32.xlu1 %v970_v36, %s3541_s22  ;;  %v878_v0 = vperm.slane %v870_v39, 0  ;;  %vm943_vm10 = vcmp.gt.f32.partialorder %v935_v11, 0.0 }
 0x120   :  { %v966_v3 = vmul.f32 %v3827_v6, %v953_v18 }
 0x122   :  { %v3848_v20 = vpop.permute.xlu0 %909  ;;  %982 = vrot.lane.b32.xlu0 %v966_v3, %s3541_s22  ;;  %v894_v3 = vadd.f32 %v878_v0, %v3665_v4 }
 0x123   :  { %v931_v27 = vadd.f32 %v3848_v20, %v891_v35 }
 0x124   :  { %v3853_v38 = vpop.permute.xlu1 %911 }
 0x125   :  { %v947_v55 = vmul.f32 0.2, %v931_v27  ;;  %5438 = vst [vmem:[#allocation29_spill] sm:$0xff] %v3853_v38  ;;  %vm939_vm7 = vcmp.gt.f32.partialorder %v931_v27, 0.0  ;;  %v932_v18 = vadd.f32 %v3853_v38, %v892_v63 }
 0x127   :  { %v955_v45 = vsel %vm939_vm7, %v931_v27, %v947_v55  ;;  %v948_v36 = vmul.f32 0.2, %v932_v18  ;;  %vm940_vm8 = vcmp.gt.f32.partialorder %v932_v18, 0.0  ;;  %v880_v55 = vperm.slane %v872_v5, 0 }
 0x128   :  { %v968_v56 = vmul.f32 %v3827_v6, %v955_v45  ;;  %v951_v45 = vmul.f32 0.2, %v935_v11 }
 0x129   :  { %v956_v39 = vsel %vm940_vm8, %v932_v18, %v948_v36  ;;  %v896_v7 = vadd.f32 %v880_v55, %v3665_v4 }
 0x12a   :  { %v3861_v35 = vpop.permute.xlu0 %915  ;;  %986 = vrot.lane.b32.xlu2 %v968_v56, %s3541_s22  ;;  %v969_v27 = vmul.f32 %v3827_v6, %v956_v39  ;;  %v959_v56 = vsel %vm943_vm10, %v935_v11, %v951_v45 }
 0x12b   :  { %v934_v63 = vadd.f32 %v3861_v35, %v894_v3  ;;  %v972_v36 = vmul.f32 %v3827_v6, %v959_v56 }
 0x12c   :  { %988 = vrot.lane.b32.xlu0 %v969_v27, %s3541_s22  ;;  %v380_v27 = vadd.f32 %v3806_v41, %v3665_v4  ;;  %v382_v41 = vadd.f32 %v3784_v22, %v3665_v4 }
 0x12d   :  { %v950_v44 = vmul.f32 0.2, %v934_v63  ;;  %vm942_vm9 = vcmp.gt.f32.partialorder %v934_v63, 0.0 }
 0x12f   :  { %v958_v0 = vsel %vm942_vm9, %v934_v63, %v950_v44  ;;  %v128_v63 = vperm.slane %v3714_v26, 1  ;;  %v381_v44 = vadd.f32 %v3812_v34, %v3665_v4 }
 0x130   :  { %v971_v38 = vmul.f32 %v3827_v6, %v958_v0  ;;  %v383_v0 = vadd.f32 %v3814_v50, %v3665_v4  ;;  %v3904_v50 = vperm.slane %v3714_v26, 0 }
 0x131   :  { %v3887_v55 = vmul.f32 %v128_v63, %v3660_v62  ;;  %v3898_v56 = vmul.f32 %v128_v63, %v3654_v58  ;;  %v385_v62 = vadd.f32 %v3790_v28, %v3665_v4  ;;  %v3908_v22 = vmul.f32 %v128_v63, %v3650_v54 }
 0x132   :  { %v3869_v60 = vpop.permute.xlu0 %919  ;;  %992 = vrot.lane.b32.xlu2 %v971_v38, %s3541_s22  ;;  %v3881_v38 = vmul.f32 %v128_v63, %v3656_v59  ;;  %v3895_v59 = vmul.f32 %v128_v63, %v3658_v61  ;;  %5442 = vst [vmem:[#allocation33_spill] sm:$0xff] %v3904_v50  ;;  %v384_v28 = vadd.f32 %v3821_v30, %v3665_v4 }
 0x133   :  { %v936_v18 = vadd.f32 %v3869_v60, %v896_v7  ;;  %5439 = vst [vmem:[#allocation30_spill] sm:$0xff] %v3887_v55  ;;  %v389_v45 = vadd.f32 %v381_v44, %v3887_v55  ;;  %v393_v58 = vadd.f32 %v385_v62, %v3908_v22  ;;  %v3917_v44 = vmul.f32 %v128_v63, %v3646_v51 }
 0x134   :  { %994 = vrot.lane.b32.xlu0 %v972_v36, %s3541_s22  ;;  %v388_v11 = vadd.f32 %v380_v27, %v3881_v38  ;;  %5440 = vst [vmem:[#allocation31_spill] sm:$0xff] %v3895_v59  ;;  %v391_v34 = vadd.f32 %v383_v0, %v3895_v59  ;;  %v386_v27 = vadd.f32 %v3823_v43, %v3665_v4 }
 0x135   :  { %v952_v3 = vmul.f32 0.2, %v936_v18  ;;  %vm944_vm11 = vcmp.gt.f32.partialorder %v936_v18, 0.0  ;;  %5441 = vst [vmem:[#allocation32_spill] sm:$0xff] %v3898_v56  ;;  %v405_v36 = vmul.f32 0.2, %v389_v45  ;;  %v3920_v54 = vmul.f32 %v128_v63, %v3687_v14 }
 0x136   :  { %v404_v7 = vmul.f32 0.2, %v388_v11  ;;  %vm396_vm12 = vcmp.gt.f32.partialorder %v388_v11, 0.0  ;;  %vm397_vm13 = vcmp.gt.f32.partialorder %v389_v45, 0.0  ;;  %5443 = vst [vmem:[#allocation34_spill] sm:$0xff] %v3908_v22  ;;  %vm399_vm14 = vcmp.gt.f32.partialorder %v391_v34, 0.0 }
 0x137   :  { %v960_v5 = vsel %vm944_vm11, %v936_v18, %v952_v3  ;;  %v390_v3 = vadd.f32 %v382_v41, %v3898_v56  ;;  %5444 = vst [vmem:[#allocation35_spill] sm:$0xff] %v3917_v44  ;;  %v392_v30 = vadd.f32 %v384_v28, %v3917_v44  ;;  %v409_v41 = vmul.f32 0.2, %v393_v58 }
 0x138   :  { %v973_v39 = vmul.f32 %v3827_v6, %v960_v5  ;;  %v412_v18 = vsel %vm396_vm12, %v388_v11, %v404_v7  ;;  %v413_v5 = vsel %vm397_vm13, %v389_v45, %v405_v36  ;;  %5445 = vst [vmem:[#allocation36_spill] sm:$0xff] %v3920_v54  ;;  %v394_v43 = vadd.f32 %v386_v27, %v3920_v54 }
 0x139   :  { %v421_v61 = vmul.f32 %v3904_v50, %v412_v18  ;;  %v406_v11 = vmul.f32 0.2, %v390_v3  ;;  %vm398_vm15 = vcmp.gt.f32.partialorder %v390_v3, 0.0  ;;  %v422_v7 = vmul.f32 %v3904_v50, %v413_v5 }
 0x13a   :  { %996 = vrot.lane.b32.xlu1 %v973_v39, %s3541_s22  ;;  %v407_v39 = vmul.f32 0.2, %v391_v34  ;;  %vm401_vm1 = vcmp.gt.f32.partialorder %v393_v58, 0.0  ;;  %v387_v14 = vadd.f32 %v3829_v49, %v3665_v4  ;;  %v408_v5 = vmul.f32 0.2, %v392_v30 }
 0x13b   :  { %v429_v0 = vsel %vm291_vm0, %v421_v61, 0.0  ;;  %v414_v62 = vsel %vm398_vm15, %v390_v3, %v406_v11  ;;  %v432_v51 = vsel %vm291_vm0, %v422_v7, 0.0  ;;  %v417_v61 = vsel %vm401_vm1, %v393_v58, %v409_v41 }
 0x13c   :  { %v415_v45 = vsel %vm399_vm14, %v391_v34, %v407_v39  ;;  %v423_v36 = vmul.f32 %v3904_v50, %v414_v62  ;;  %vm400_vm3 = vcmp.gt.f32.partialorder %v392_v30, 0.0  ;;  %v410_v28 = vmul.f32 0.2, %v394_v43 }
 0x13d   :  { %v424_v18 = vmul.f32 %v3904_v50, %v415_v45  ;;  %v3932_v34 = vmul.f32 %v128_v63, %v3674_v8  ;;  %vm402_vm4 = vcmp.gt.f32.partialorder %v394_v43, 0.0  ;;  %v426_v39 = vmul.f32 %v3904_v50, %v417_v61 }
 0x13e   :  { %v435_v49 = vsel %vm291_vm0, %v423_v36, 0.0  ;;  %v416_v11 = vsel %vm400_vm3, %v392_v30, %v408_v5  ;;  %v1059_v36 = vperm.slane %v3753_v52, 4  ;;  %v5447_v61 = vperm.slane %v3665_v4, 0  ;;  %v3956_v5 = vpop.permute.xlu2 %1043 }
 0x13f   :  { %5446 = vst [vmem:[#allocation37_spill] sm:$0xff] %v3932_v34  ;;  %v438_v3 = vsel %vm291_vm0, %v424_v18, 0.0  ;;  %v395_v27 = vadd.f32 %v387_v14, %v3932_v34  ;;  %v444_v58 = vsel %vm291_vm0, %v426_v39, 0.0  ;;  %v425_v7 = vmul.f32 %v3904_v50, %v416_v11 }
 0x140   :  { %v1217_v18 = vperm.slane %v3744_v47, 3  ;;  %v1231_v14 = vperm.slane %v3744_v47, 5  ;;  %5448 = vst [vmem:[#allocation38_spill] sm:$0xff] %v3956_v5  ;;  %vm568_vm11 = vcmask 1041409   ;;  %vm570_vm12 = vcmask 1042434  }
 0x141   :  { %v411_v63 = vmul.f32 0.2, %v395_v27  ;;  %vm403_vm5 = vcmp.gt.f32.partialorder %v395_v27, 0.0  ;;  %v441_v45 = vsel %vm291_vm0, %v425_v7, 0.0  ;;  %vm572_vm13 = vcmask 1043459  }
 0x142   :  { %vm574_vm14 = vcmask 1044484   ;;  %vm576_vm15 = vcmask 1045509   ;;  %vm578_vm1 = vcmask 1046534   ;;  %vm580_vm3 = vcmask 1047559  }
 0x143   :  { %v419_v62 = vsel %vm403_vm5, %v395_v27, %v411_v63 }
 0x144   :  { %v428_v30 = vmul.f32 %v3904_v50, %v419_v62 }
 0x15b   :  { %430 = vadd.xlane.f32.xlu2 %v429_v0  ;;  %v418_v0 = vsel %vm402_vm4, %v394_v43, %v410_v28  ;;  %v450_v43 = vsel %vm291_vm0, %v428_v30, 0.0  ;;  %vm583_vm4 = vcmask 64512  }
 0x15c   :  { %v427_v8 = vmul.f32 %v3904_v50, %v418_v0 }
 0x15e   :  { %433 = vadd.xlane.f32.xlu0 %v432_v51  ;;  %v447_v41 = vsel %vm291_vm0, %v427_v8, 0.0  ;;  %v1196_v51 = vperm.slane %v3744_v47, 0 }
 0x163   :  { %439 = vadd.xlane.f32.xlu2 %v438_v3  ;;  %v3958_v3 = vpop.permute.xlu0 %1050 }
 0x164   :  { %436 = vadd.xlane.f32.xlu1 %v435_v49  ;;  %5449 = vst [vmem:[#allocation39_spill] sm:$0xff] %v3958_v3 }
 0x166   :  { %445 = vadd.xlane.f32.xlu0 %v444_v58 }
 0x16b   :  { %442 = vadd.xlane.f32.xlu2 %v441_v45  ;;  %v5366_v45 = vmov 0  }
 0x16c   :  { %448 = vadd.xlane.f32.xlu1 %v447_v41 }
 0x16d   :  { %3341 = vset.pattern.permute.xlu1 %v5366_v45 }
 0x173   :  { %451 = vadd.xlane.f32.xlu2 %v450_v43 }
 0x17a   :  { %1201 = vperm.xlu0 %3336, %v1196_v51  }
 0x182   :  { %1222 = vperm.xlu0 %3336, %v1217_v18  }
 0x184   :  { %v987_v28 = vpop.permute.xlu2 %986 }
 0x185   :  { %1435 = vrot.lane.b32.xlu1 %v3685_v13, %s3540_s19  ;;  %v1012_v13 = vsel %vm291_vm0, %v987_v28, 0.0 }
 0x189   :  { %v985_v11 = vpop.permute.xlu1 %984 }
 0x18a   :  { %1236 = vperm.xlu0 %3336, %v1231_v14   ;;  %v1009_v0 = vsel %vm291_vm0, %v985_v11, 0.0 }
 0x18b   :  { %1064 = vperm.xlu2 %3338, %v1059_v36  }
 0x18c   :  { %v993_v39 = vpop.permute.xlu2 %992 }
 0x18d   :  { %v1021_v49 = vsel %vm291_vm0, %v993_v39, 0.0 }
 0x191   :  { %v991_v58 = vpop.permute.xlu1 %990 }
 0x192   :  { %1433 = vrot.lane.b32.xlu0 %v5447_v61, %s3540_s19  ;;  %v1018_v8 = vsel %vm291_vm0, %v991_v58, 0.0 }
 0x193   :  { %1437 = vrot.lane.b32.xlu2 %v3683_v12, %s3540_s19  ;;  %3339 = vset.pattern.permute.xlu0 %v5366_v45 }
 0x194   :  { %v983_v27 = vpop.permute.xlu0 %982  ;;  %3340 = vset.pattern.permute.xlu2 %v5366_v45 }
 0x195   :  { %v1006_v4 = vsel %vm291_vm0, %v983_v27, 0.0 }
 0x19e   :  { %v989_v12 = vpop.permute.xlu0 %988 }
 0x19f   :  { %v1015_v7 = vsel %vm291_vm0, %v989_v12, 0.0 }
 0x1a6   :  { %v995_v63 = vpop.permute.xlu0 %994 }
 0x1a7   :  { %v1024_v62 = vsel %vm291_vm0, %v995_v63, 0.0 }
 0x1ac   :  { %v997_v41 = vpop.permute.xlu1 %996 }
 0x1ad   :  { %v1027_v30 = vsel %vm291_vm0, %v997_v41, 0.0 }
 0x1af   :  { %1013 = vadd.xlane.f32.xlu1 %v1012_v13 }
 0x1b7   :  { %1022 = vadd.xlane.f32.xlu1 %v1021_v49 }
 0x1bc   :  { %1007 = vadd.xlane.f32.xlu2 %v1006_v4  ;;  %1010 = vadd.xlane.f32.xlu0 %v1009_v0  ;;  %v4002_v0 = vperm.slane %v3714_v26, 6 }
 0x1be   :  { %5453 = vst [vmem:[#allocation43_spill] sm:$0xff] %v4002_v0 }
 0x1c4   :  { %1016 = vadd.xlane.f32.xlu2 %v1015_v7  ;;  %1019 = vadd.xlane.f32.xlu0 %v1018_v8 }
 0x1cc   :  { %1025 = vadd.xlane.f32.xlu2 %v1024_v62  ;;  %1028 = vadd.xlane.f32.xlu0 %v1027_v30 }
 0x1ce   :  { %v431_v51 = vpop.xlane.xlu2 %430 }
 0x1cf   :  { %v3978_v36 = vadd.f32 %v3780_v19, %v431_v51 }
 0x1d0   :  { %1441 = vrot.lane.b32.xlu1 %v3704_v24, %s3540_s19 }
 0x1d1   :  { %v434_v43 = vpop.xlane.xlu0 %433 }
 0x1d6   :  { %v440_v61 = vpop.xlane.xlu2 %439 }
 0x1d7   :  { %v437_v18 = vpop.xlane.xlu1 %436 }
 0x1d8   :  { %1445 = vrot.lane.b32.xlu1 %v3717_v29, %s3540_s19  ;;  %v3988_v29 = vperm.slane %v3714_v26, 7 }
 0x1d9   :  { %v446_v14 = vpop.xlane.xlu0 %445 }
 0x1da   :  { %v3984_v24 = vadd.f32 %v3795_v32, %v446_v14  ;;  %v3994_v49 = vmul.f32 %v3988_v29, %v3694_v17  ;;  %v4012_v41 = vmul.f32 %v3988_v29, %v3734_v42  ;;  %v4023_v42 = vmul.f32 %v3988_v29, %v3768_v9 }
 0x1dc   :  { %5452 = vst [vmem:[#allocation42_spill] sm:$0xff] %v3994_v49 }
 0x1dd   :  { %5454 = vst [vmem:[#allocation44_spill] sm:$0xff] %v4012_v41 }
 0x1de   :  { %v443_v39 = vpop.xlane.xlu2 %442  ;;  %5456 = vst [vmem:[#allocation46_spill] sm:$0xff] %v4023_v42 }
 0x1df   :  { %v449_v13 = vpop.xlane.xlu1 %448 }
 0x1e0   :  { %1439 = vrot.lane.b32.xlu0 %v3698_v21, %s3540_s19 }
 0x1e6   :  { %v452_v8 = vpop.xlane.xlu2 %451 }
 0x1e8   :  { %535 = vperm.xlu0 %3339, %v3978_v36  }
 0x1ec   :  { %v3981_v28 = vpop.permute.xlu0 %1201 }
 0x1ed   :  { %5450 = vst [vmem:[#allocation40_spill] sm:$0xff] %v3981_v28 }
 0x1ee   :  { %v4016_v30 = vpop.permute.xlu2 %1064 }
 0x1ef   :  { %5455 = vst [vmem:[#allocation45_spill] sm:$0xff] %v4016_v30 }
 0x1f0   :  { %550 = vperm.xlu0 %3339, %v3984_v24  }
 0x1f4   :  { %v3990_v21 = vpop.permute.xlu0 %1222 }
 0x1f5   :  { %5451 = vst [vmem:[#allocation41_spill] sm:$0xff] %v3990_v21 }
 0x1f7   :  { %v1436_v27 = vpop.permute.xlu1 %1435 }
 0x1f8   :  { %v1458_v11 = vadd.f32 %v1436_v27, %v3802_v37  ;;  %1443 = vrot.lane.b32.xlu0 %v3702_v23, %s3540_s19 }
 0x1f9   :  { %3343 = vset.pattern.permute.xlu0 %v3608_v1 }
 0x1fa   :  { %v1466_v4 = vadd.f32 %v1458_v11, %v3994_v49  ;;  %v1438_v11 = vpop.permute.xlu2 %1437 }
 0x1fc   :  { %vm1474_vm6 = vcmp.gt.f32.partialorder %v1466_v4, 0.0  ;;  %v1482_v12 = vmul.f32 0.2, %v1466_v4  ;;  %v4004_v58 = vpop.permute.xlu0 %1236 }
 0x1fe   :  { %v1490_v7 = vsel %vm1474_vm6, %v1466_v4, %v1482_v12  ;;  %v1459_v4 = vadd.f32 %v1438_v11, %v3802_v37  ;;  %v4026_v12 = vadd.f32 %v3737_v46, %v437_v18  ;;  %v4040_v18 = vadd.f32 %v3776_v16, %v452_v8 }
 0x1ff   :  { %v1499_v17 = vmul.f32 %v4002_v0, %v1490_v7  ;;  %v1031_v8 = vperm.slane %v3753_v52, 0  ;;  %v5460_v46 = vmov 0  }
 0x200   :  { %1447 = vrot.lane.b32.xlu0 %v3724_v33, %s3540_s19  ;;  %v1467_v7 = vadd.f32 %v1459_v4, %v4023_v42  ;;  %v4065_v4 = vmul.f32 %v3988_v29, %v3746_v48 }
 0x201   :  { %v1509_v23 = vsel %vm291_vm0, %v1499_v17, 0.0 }
 0x202   :  { %1510 = vadd.xlane.f32.xlu1 %v1509_v23  ;;  %v1483_v17 = vmul.f32 0.2, %v1467_v7  ;;  %vm1475_vm8 = vcmp.gt.f32.partialorder %v1467_v7, 0.0  ;;  %v4031_v23 = vadd.f32 %v3770_v10, %v443_v39  ;;  %v4045_v39 = vadd.f32 %v3786_v25, %v440_v61  ;;  %5457 = vst [vmem:[#allocation47_spill] sm:$0xff] %v4065_v4 }
 0x203   :  { %v1066_v61 = vperm.slane %v3753_v52, 5 }
 0x204   :  { %v1434_v63 = vpop.permute.xlu0 %1433 }
 0x205   :  { %v1457_v26 = vadd.f32 %v1434_v63, %v3802_v37  ;;  %v1491_v63 = vsel %vm1475_vm8, %v1467_v7, %v1483_v17 }
 0x206   :  { %v1500_v9 = vmul.f32 %v4002_v0, %v1491_v63  ;;  %v1203_v63 = vperm.slane %v3744_v47, 1 }
 0x207   :  { %v1465_v62 = vadd.f32 %v1457_v26, %v4012_v41  ;;  %v4035_v26 = vadd.f32 %v3764_v2, %v434_v43  ;;  %v4050_v43 = vadd.f32 %v3755_v53, %v449_v13  ;;  %v1080_v13 = vperm.slane %v3753_v52, 7 }
 0x208   :  { %v5459_v2 = vlaneseq }
 0x209   :  { %vm1473_vm7 = vcmp.gt.f32.partialorder %v1465_v62, 0.0  ;;  %v1481_v51 = vmul.f32 0.2, %v1465_v62 }
 0x20b   :  { %v1489_v14 = vsel %vm1473_vm7, %v1465_v62, %v1481_v51  ;;  %v1512_v62 = vsel %vm291_vm0, %v1500_v9, 0.0 }
 0x20c   :  { %v1498_v27 = vmul.f32 %v4002_v0, %v1489_v14  ;;  %v1052_v14 = vperm.slane %v3753_v52, 3 }
 0x20e   :  { %v1506_v33 = vsel %vm291_vm0, %v1498_v27, 0.0 }
 0x20f   :  { %1507 = vadd.xlane.f32.xlu2 %v1506_v33 }
 0x21b   :  { %541 = vperm.xlu1 %3341, %v4026_v12  }
 0x223   :  { %547 = vperm.xlu1 %3341, %v4031_v23  }
 0x227   :  { %538 = vperm.xlu2 %3340, %v4035_v26  }
 0x22a   :  { %1513 = vadd.xlane.f32.xlu0 %v1512_v62 }
 0x22b   :  { %556 = vperm.xlu1 %3341, %v4040_v18  }
 0x22f   :  { %544 = vperm.xlu2 %3340, %v4045_v39   ;;  %v4052_v51 = vpop.xlane.xlu0 %1010  ;;  %v4075_v48 = vpop.xlane.xlu2 %1007 }
 0x233   :  { %3342 = vset.pattern.permute.xlu1 %v3608_v1 }
 0x237   :  { %553 = vperm.xlu2 %3340, %v4050_v43   ;;  %v4057_v27 = vpop.xlane.xlu0 %1019 }
 0x23b   :  { %1036 = vperm.xlu1 %3342, %v1031_v8  }
 0x23f   :  { %v4060_v33 = vpop.xlane.xlu0 %1028 }
 0x243   :  { %1057 = vperm.xlu1 %3342, %v1052_v14  }
 0x24b   :  { %1071 = vperm.xlu1 %3342, %v1066_v61   ;;  %v1210_v61 = vperm.slane %v3744_v47, 2 }
 0x252   :  { %v1440_v11 = vpop.permute.xlu0 %1439 }
 0x253   :  { %1085 = vperm.xlu1 %3342, %v1080_v13   ;;  %v1460_v7 = vadd.f32 %v1440_v11, %v3802_v37  ;;  %v4073_v13 = vpop.xlane.xlu1 %1013  ;;  %v1224_v11 = vperm.slane %v3744_v47, 4 }
 0x255   :  { %v1468_v17 = vadd.f32 %v1460_v7, %v4065_v4 }
 0x257   :  { %vm1476_vm9 = vcmp.gt.f32.partialorder %v1468_v17, 0.0  ;;  %v1484_v9 = vmul.f32 0.2, %v1468_v17 }
 0x259   :  { %v1492_v62 = vsel %vm1476_vm9, %v1468_v17, %v1484_v9  ;;  %v1238_v17 = vperm.slane %v3744_v47, 6 }
 0x25a   :  { %v1501_v8 = vmul.f32 %v4002_v0, %v1492_v62  ;;  %v4088_v62 = vld [vmem:[%s5347_s9] sm:$0xff]  ;;  %s3282_s9 = sshll.u32 %s5348_s10, 4  ;;  %s3283_s9 = int_to_ptr.hbm [resolvable:$true] %s3282_s9 }
 0x25b   :  { %1208 = vperm.xlu1 %3342, %v1203_v63   ;;  %v4078_v7 = vpop.xlane.xlu1 %1022  ;;  %v4081_v63 = vpop.xlane.xlu2 %1016  ;;  %vm208_vm10 = vcmp.gt.f32.partialorder %v4088_v62, 0.0  ;;  %v1738_v54 = vperm.slane %v4088_v62, 6 }
 0x25c   :  { %v1515_v14 = vsel %vm291_vm0, %v1501_v8, 0.0  ;;  %v1245_v8 = vperm.slane %v3744_v47, 7  ;;  %v536_v47 = vpop.permute.xlu0 %535 }
 0x25d   :  { %1516 = vadd.xlane.f32.xlu0 %v1515_v14 }
 0x263   :  { %1215 = vperm.xlu1 %3342, %v1210_v61   ;;  %v4083_v9 = vpop.permute.xlu1 %1441  ;;  %v4092_v14 = vpop.xlane.xlu2 %1025  ;;  %v5458_v61 = vmov -1e+30  }
 0x264   :  { %v551_v19 = vpop.permute.xlu0 %550 }
 0x26b   :  { %1229 = vperm.xlu1 %3342, %v1224_v11   ;;  %v4095_v11 = vsel %vm208_vm10, 0.0, %v5458_v61  ;;  %v4097_v45 = vpop.permute.xlu1 %1445 }
 0x26c   :  { %v1538_v16 = vperm.slane %v4095_v11, 1  ;;  %v1552_v10 = vperm.slane %v4095_v11, 3  ;;  %v1444_v56 = vpop.permute.xlu0 %1443 }
 0x273   :  { %1243 = vperm.xlu1 %3342, %v1238_v17  }
 0x275   :  { %v4102_v53 = vpop.xlane.xlu1 %1510 }
 0x27b   :  { %1250 = vperm.xlu1 %3342, %v1245_v8   ;;  %v4106_v8 = vand.u32 127, %v5459_v2 }
 0x27d   :  { %v560_v34 = vperm.slane %v536_v47, %v4106_v8 }
 0x282   :  { %v4100_v17 = vpop.xlane.xlu2 %1507 }
 0x283   :  { %1543 = vperm.xlu1 %3342, %v1538_v16  }
 0x28a   :  { %v539_v25 = vpop.permute.xlu2 %538 }
 0x28b   :  { %1557 = vperm.xlu1 %3342, %v1552_v10   ;;  %v561_v42 = vperm.slane %v539_v25, %v4106_v8 }
 0x28d   :  { %v542_v32 = vpop.permute.xlu1 %541  ;;  %v569_v2 = vsel %vm568_vm11, %v561_v42, %v560_v34 }
 0x28e   :  { %v562_v16 = vperm.slane %v542_v32, %v4106_v8  ;;  %v565_v32 = vperm.slane %v551_v19, %v4106_v8  ;;  %v4128_v19 = vmul.f32 %v3988_v29, %v3774_v15 }
 0x290   :  { %v571_v44 = vsel %vm570_vm12, %v562_v16, %v569_v2  ;;  %5461 = vst [vmem:[#allocation48_spill] sm:$0xff] %v4128_v19 }
 0x292   :  { %v545_v61 = vpop.permute.xlu2 %544 }
 0x293   :  { %3344 = vset.pattern.permute.xlu1 %v5460_v46  ;;  %v563_v49 = vperm.slane %v545_v61, %v4106_v8 }
 0x295   :  { %v548_v4 = vpop.permute.xlu1 %547  ;;  %v573_v22 = vsel %vm572_vm13, %v563_v49, %v571_v44 }
 0x296   :  { %v564_v10 = vperm.slane %v548_v4, %v4106_v8 }
 0x298   :  { %v575_v25 = vsel %vm574_vm14, %v564_v10, %v573_v22  ;;  %v1462_v22 = vadd.f32 %v1444_v56, %v3802_v37 }
 0x299   :  { %v577_v34 = vsel %vm576_vm15, %v565_v32, %v575_v25  ;;  %v1545_v32 = vperm.slane %v4095_v11, 2 }
 0x29a   :  { %v554_v55 = vpop.permute.xlu2 %553 }
 0x29b   :  { %v566_v47 = vperm.slane %v554_v55, %v4106_v8  ;;  %v1470_v55 = vadd.f32 %v1462_v22, %v4128_v19  ;;  %v4170_v22 = vadd.f32 %v3956_v5, %v4052_v51 }
 0x29d   :  { %v557_v61 = vpop.permute.xlu1 %556  ;;  %v579_v42 = vsel %vm578_vm1, %v566_v47, %v577_v34  ;;  %v1486_v16 = vmul.f32 0.2, %v1470_v55  ;;  %vm1478_vm5 = vcmp.gt.f32.partialorder %v1470_v55, 0.0 }
 0x29e   :  { %v567_v4 = vperm.slane %v557_v61, %v4106_v8 }
 0x29f   :  { %v1494_v2 = vsel %vm1478_vm5, %v1470_v55, %v1486_v16 }
 0x2a0   :  { %v581_v44 = vsel %vm580_vm3, %v567_v4, %v579_v42  ;;  %v1503_v56 = vmul.f32 %v4002_v0, %v1494_v2  ;;  %v1566_v42 = vperm.slane %v4095_v11, 5 }
 0x2a1   :  { %v584_v49 = vsel %vm583_vm4, %v581_v44, -inf  ;;  %v4161_v44 = vadd.f32 %v3958_v3, %v4073_v13  ;;  %v4178_v13 = vmul.f32 %v3988_v29, %v3720_v31  ;;  %v4193_v31 = vmul.f32 %v3988_v29, %v3759_v57 }
 0x2a2   :  { %585 = vmax.xlane.f32.xlu0 %v584_v49  ;;  %v1521_v15 = vsel %vm291_vm0, %v1503_v56, 0.0  ;;  %v1461_v49 = vadd.f32 %v4083_v9, %v3802_v37  ;;  %v1463_v9 = vadd.f32 %v4097_v45, %v3802_v37  ;;  %v4200_v45 = vmul.f32 %v3988_v29, %v3731_v40 }
 0x2a3   :  { %5465 = vst [vmem:[#allocation52_spill] sm:$0xff] %v4178_v13  ;;  %v1073_v40 = vperm.slane %v3753_v52, 6  ;;  %v1531_v29 = vperm.slane %v4095_v11, 0 }
 0x2a4   :  { %5467 = vst [vmem:[#allocation54_spill] sm:$0xff] %v4193_v31  ;;  %v1471_v2 = vadd.f32 %v1463_v9, %v4193_v31 }
 0x2a5   :  { %5468 = vst [vmem:[#allocation55_spill] sm:$0xff] %v4200_v45 }
 0x2a6   :  { %vm1479_vm7 = vcmp.gt.f32.partialorder %v1471_v2, 0.0 }
 0x2ad   :  { %v4131_v10 = vpop.permute.xlu1 %1036 }
 0x2ae   :  { %5462 = vst [vmem:[#allocation49_spill] sm:$0xff] %v4131_v10  ;;  %v4135_v25 = vadd.f32 %v4131_v10, %v4075_v48  ;;  %v1559_v48 = vperm.slane %v4095_v11, 4 }
 0x2b0   :  { %1112 = vperm.xlu2 %3340, %v4135_v25  }
 0x2b5   :  { %1522 = vadd.xlane.f32.xlu1 %v1521_v15  ;;  %v4141_v47 = vpop.permute.xlu1 %1057 }
 0x2b6   :  { %5463 = vst [vmem:[#allocation50_spill] sm:$0xff] %v4141_v47  ;;  %v4145_v61 = vadd.f32 %v4141_v47, %v4081_v63  ;;  %1550 = vperm.xlu0 %3343, %v1545_v32   ;;  %v1573_v63 = vperm.slane %v4095_v11, 6  ;;  %v1448_v32 = vpop.permute.xlu0 %1447 }
 0x2b8   :  { %1121 = vperm.xlu2 %3340, %v4145_v61  }
 0x2bd   :  { %v4149_v4 = vpop.permute.xlu1 %1071 }
 0x2be   :  { %5464 = vst [vmem:[#allocation51_spill] sm:$0xff] %v4149_v4  ;;  %v4153_v34 = vadd.f32 %v4149_v4, %v4078_v7  ;;  %1564 = vperm.xlu0 %3343, %v1559_v48   ;;  %v4166_v7 = vadd.f32 %v4016_v30, %v4057_v27  ;;  %v1469_v27 = vadd.f32 %v1461_v49, %v4178_v13  ;;  %v1487_v48 = vmul.f32 0.2, %v1471_v2 }
 0x2c0   :  { %1127 = vperm.xlu2 %3340, %v4153_v34   ;;  %v1485_v16 = vmul.f32 0.2, %v1469_v27  ;;  %vm1477_vm6 = vcmp.gt.f32.partialorder %v1469_v27, 0.0  ;;  %v1495_v57 = vsel %vm1479_vm7, %v1471_v2, %v1487_v48  ;;  %v1580_v2 = vperm.slane %v4095_v11, 7 }
 0x2c1   :  { %v1504_v49 = vmul.f32 %v4002_v0, %v1495_v57  ;;  %v1514_v57 = vpop.xlane.xlu0 %1513 }
 0x2c2   :  { %v1493_v56 = vsel %vm1477_vm6, %v1469_v27, %v1485_v16 }
 0x2c3   :  { %v1502_v15 = vmul.f32 %v4002_v0, %v1493_v56  ;;  %v1524_v9 = vsel %vm291_vm0, %v1504_v49, 0.0 }
 0x2c5   :  { %v4182_v55 = vpop.permute.xlu1 %1085 }
 0x2c6   :  { %1571 = vperm.xlu0 %3343, %v1566_v42   ;;  %5466 = vst [vmem:[#allocation53_spill] sm:$0xff] %v4182_v55  ;;  %v4186_v51 = vadd.f32 %v4182_v55, %v4060_v33  ;;  %v1464_v33 = vadd.f32 %v1448_v32, %v3802_v37  ;;  %v1518_v42 = vsel %vm291_vm0, %v1502_v15, 0.0 }
 0x2c8   :  { %3345 = vset.pattern.permute.xlu2 %v3608_v1 }
 0x2cd   :  { %v4214_v15 = vpop.permute.xlu1 %1208 }
 0x2ce   :  { %1118 = vperm.xlu1 %3344, %v4161_v44   ;;  %1578 = vperm.xlu0 %3343, %v1573_v63   ;;  %v1472_v63 = vadd.f32 %v1464_v33, %v4200_v45  ;;  %5469 = vst [vmem:[#allocation56_spill] sm:$0xff] %v4214_v15 }
 0x2d0   :  { %v1488_v27 = vmul.f32 0.2, %v1472_v63  ;;  %vm1480_vm8 = vcmp.gt.f32.partialorder %v1472_v63, 0.0  ;;  %v4226_v11 = vpop.xlane.xlu0 %1516 }
 0x2d2   :  { %v1496_v37 = vsel %vm1480_vm8, %v1472_v63, %v1488_v27 }
 0x2d3   :  { %v1505_v16 = vmul.f32 %v4002_v0, %v1496_v37 }
 0x2d5   :  { %v1527_v56 = vsel %vm291_vm0, %v1505_v16, 0.0  ;;  %v4218_v48 = vpop.permute.xlu1 %1215 }
 0x2d6   :  { %1124 = vperm.xlu1 %3344, %v4166_v7   ;;  %3346 = vset.pattern.permute.xlu0 %v5460_v46  ;;  %5470 = vst [vmem:[#allocation57_spill] sm:$0xff] %v4218_v48 }
 0x2d7   :  { %1115 = vperm.xlu0 %3346, %v4170_v22  }
 0x2dd   :  { %v4222_v52 = vpop.permute.xlu1 %1229 }
 0x2de   :  { %1133 = vperm.xlu1 %3344, %v4186_v51  }
 0x2e5   :  { %v4228_v27 = vpop.permute.xlu1 %1243 }
 0x2e6   :  { %5471 = vst [vmem:[#allocation58_spill] sm:$0xff] %v4228_v27 }
 0x2e9   :  { %1519 = vadd.xlane.f32.xlu2 %v1518_v42 }
 0x2ed   :  { %v4232_v16 = vpop.permute.xlu1 %1250 }
 0x2ee   :  { %5472 = vst [vmem:[#allocation59_spill] sm:$0xff] %v4232_v16 }
 0x2f1   :  { %1525 = vadd.xlane.f32.xlu2 %v1524_v9 }
 0x2f5   :  { %v4244_v55 = vpop.permute.xlu1 %1543 }
 0x2f6   :  { %5475 = vst [vmem:[#allocation62_spill] sm:$0xff] %v4244_v55  ;;  %v4251_v4 = vadd.f32 %v4244_v55, %v4102_v53 }
 0x2f9   :  { %1528 = vadd.xlane.f32.xlu2 %v1527_v56 }
 0x30a   :  { %v4212_v32 = vpop.permute.xlu2 %1112 }
 0x311   :  { %1078 = vperm.xlu2 %3345, %v1073_v40  }
 0x312   :  { %v4216_v33 = vpop.permute.xlu2 %1121 }
 0x315   :  { %v4230_v37 = vpop.xlane.xlu0 %585 }
 0x316   :  { %v590_v3 = vperm.slane %v4230_v37, 2  ;;  %v594_v31 = vperm.slane %v4230_v37, 6 }
 0x318   :  { %v606_v53 = vsub.f32 %v4026_v12, %v590_v3  ;;  %v610_v3 = vsub.f32 %v4050_v43, %v594_v31  ;;  %v5483_v31 = vld [vmem:[#allocation17_spill] sm:$0xff] }
 0x319   :  { %1536 = vperm.xlu2 %3345, %v1531_v29  }
 0x31a   :  { %v4220_v42 = vpop.permute.xlu2 %1127 }
 0x321   :  { %1585 = vperm.xlu2 %3345, %v1580_v2   ;;  %v589_v2 = vperm.slane %v4230_v37, 1 }
 0x323   :  { %v605_v47 = vsub.f32 %v4035_v26, %v589_v2  ;;  %v4264_v2 = vpop.permute.xlu1 %1557 }
 0x324   :  { %5478 = vst [vmem:[#allocation65_spill] sm:$0xff] %v4264_v2 }
 0x325   :  { %v614_v10 = vmul.f32 1.442695, %v605_v47 }
 0x327   :  { %3355 = vpow2.f32 %v614_v10 }
 0x328   :  { %v4240_v29 = vpop.permute.xlu0 %1550 }
 0x329   :  { %3347 = vset.pattern.permute.xlu2 %v5460_v46  ;;  %5474 = vst [vmem:[#allocation61_spill] sm:$0xff] %v4240_v29 }
 0x32b   :  { %v1523_v10 = vpop.xlane.xlu1 %1522 }
 0x330   :  { %v4260_v5 = vpop.permute.xlu0 %1564 }
 0x331   :  { %5477 = vst [vmem:[#allocation64_spill] sm:$0xff] %v4260_v5 }
 0x35c   :  { %v1520_v63 = vpop.xlane.xlu2 %1519 }
 0x35d   :  { %v4271_v55 = vadd.f32 %v4260_v5, %v1520_v63  ;;  %v5480_v63 = vld [vmem:[#allocation19_spill] sm:$0xff] }
 0x364   :  { %v4224_v49 = vpop.xlane.xlu2 %1525 }
 0x36c   :  { %v1529_v9 = vpop.xlane.xlu2 %1528 }
 0x374   :  { %v4234_v56 = vpop.permute.xlu2 %1078 }
 0x375   :  { %5473 = vst [vmem:[#allocation60_spill] sm:$0xff] %v4234_v56  ;;  %v4238_v40 = vadd.f32 %v4234_v56, %v4092_v14  ;;  %v592_v56 = vperm.slane %v4230_v37, 4 }
 0x377   :  { %1130 = vperm.xlu0 %3346, %v4238_v40   ;;  %v608_v26 = vsub.f32 %v4031_v23, %v592_v56  ;;  %v3356_v23 = vpop.eup %3355  ;;  %v4276_v56 = vpop.permute.xlu0 %1571 }
 0x378   :  { %5479 = vst [vmem:[#allocation66_spill] sm:$0xff] %v4276_v56  ;;  %v4280_v12 = vadd.f32 %v4276_v56, %v1523_v10 }
 0x379   :  { %v620_v47 = vmul.f32 1.442695, %v608_v26  ;;  %v624_v26 = vmul.f32 1.442695, %v610_v3 }
 0x37b   :  { %3357 = vpow2.f32 %v620_v47 }
 0x37c   :  { %v4246_v30 = vpop.permute.xlu2 %1536 }
 0x37d   :  { %5476 = vst [vmem:[#allocation63_spill] sm:$0xff] %v4246_v30  ;;  %v4255_v14 = vadd.f32 %v4246_v30, %v4100_v17  ;;  %v4268_v17 = vadd.f32 %v4240_v29, %v1514_v57  ;;  %v616_v30 = vmul.f32 1.442695, %v606_v53  ;;  %v4283_v57 = vmul.f32 %v3356_v23, %v5480_v63  ;;  %v5481_v29 = vld [vmem:[#allocation15_spill] sm:$0xff] }
 0x37f   :  { %1612 = vperm.xlu1 %3344, %v4255_v14   ;;  %1615 = vperm.xlu0 %3346, %v4251_v4   ;;  %3359 = vpow2.f32 %v616_v30  ;;  %v5482_v30 = vld [vmem:[#allocation13_spill] sm:$0xff] }
 0x380   :  { %3361 = vpow2.f32 %v624_v26  ;;  %v1119_v26 = vpop.permute.xlu1 %1118 }
 0x381   :  { %v3358_v53 = vpop.eup %3357 }
 0x382   :  { %v4288_v47 = vmul.f32 %v3358_v53, %v5481_v29  ;;  %v1137_v29 = vperm.slane %v1119_v26, %v4106_v8 }
 0x384   :  { %v4299_v10 = vpop.permute.xlu2 %1585 }
 0x385   :  { %v3360_v5 = vpop.eup %3359  ;;  %5484 = vst [vmem:[#allocation67_spill] sm:$0xff] %v4299_v10  ;;  %v4302_v3 = vadd.f32 %v4299_v10, %v1529_v9  ;;  %v1138_v10 = vperm.slane %v4216_v33, %v4106_v8 }
 0x386   :  { %v4291_v45 = vmul.f32 %v3360_v5, %v5482_v30  ;;  %v3362_v43 = vpop.eup %3361  ;;  %v4306_v5 = vpop.permute.xlu0 %1578 }
 0x387   :  { %1624 = vperm.xlu1 %3344, %v4271_v55   ;;  %1618 = vperm.xlu0 %3346, %v4268_v17   ;;  %v4296_v23 = vmul.f32 %v3362_v43, %v5483_v31  ;;  %5485 = vst [vmem:[#allocation68_spill] sm:$0xff] %v4306_v5  ;;  %v1135_v43 = vperm.slane %v4212_v32, %v4106_v8 }
 0x388   :  { %v1125_v31 = vpop.permute.xlu1 %1124  ;;  %v1140_v32 = vperm.slane %v4220_v42, %v4106_v8  ;;  %v591_v42 = vperm.slane %v4230_v37, 3 }
 0x389   :  { %v1139_v13 = vperm.slane %v1125_v31, %v4106_v8  ;;  %v588_v31 = vperm.slane %v4230_v37, 0 }
 0x38e   :  { %v1116_v53 = vpop.permute.xlu0 %1115 }
 0x38f   :  { %713 = vperm.xlu1 %3344, %v4283_v57   ;;  %1627 = vperm.xlu0 %3346, %v4280_v12   ;;  %v1136_v30 = vperm.slane %v1116_v53, %v4106_v8 }
 0x390   :  { %v1134_v19 = vpop.permute.xlu1 %1133 }
 0x391   :  { %v1143_v63 = vsel %vm568_vm11, %v1136_v30, %v1135_v43  ;;  %v1142_v26 = vperm.slane %v1134_v19, %v4106_v8  ;;  %v4333_v19 = vadd.f32 %v4264_v2, %v4226_v11 }
 0x392   :  { %v1144_v9 = vsel %vm570_vm12, %v1137_v29, %v1143_v63 }
 0x393   :  { %v1145_v56 = vsel %vm572_vm13, %v1138_v10, %v1144_v9  ;;  %v593_v9 = vperm.slane %v4230_v37, 5 }
 0x394   :  { %v1146_v53 = vsel %vm574_vm14, %v1139_v13, %v1145_v56  ;;  %v604_v13 = vsub.f32 %v3978_v36, %v588_v31  ;;  %v5486_v36 = vld [vmem:[#allocation11_spill] sm:$0xff] }
 0x395   :  { %v1147_v29 = vsel %vm576_vm15, %v1140_v32, %v1146_v53  ;;  %v609_v32 = vsub.f32 %v3984_v24, %v593_v9  ;;  %v5488_v24 = vld [vmem:[#allocation23_spill] sm:$0xff] }
 0x396   :  { %v612_v56 = vmul.f32 1.442695, %v604_v13 }
 0x397   :  { %722 = vperm.xlu1 %3344, %v4288_v47   ;;  %716 = vperm.xlu0 %3346, %v4291_v45  }
 0x398   :  { %3363 = vpow2.f32 %v612_v56 }
 0x39e   :  { %v3364_v53 = vpop.eup %3363 }
 0x39f   :  { %728 = vperm.xlu1 %3344, %v4296_v23  }
 0x3a7   :  { %1633 = vperm.xlu1 %3344, %v4302_v3  }
 0x3af   :  { %3349 = vset.pattern.permute.xlu1 %v3608_v1 }
 0x3e9   :  { %v1131_v0 = vpop.permute.xlu0 %1130 }
 0x3ea   :  { %v1141_v30 = vperm.slane %v1131_v0, %v4106_v8  ;;  %v607_v0 = vsub.f32 %v4045_v39, %v591_v42  ;;  %v595_v39 = vperm.slane %v4230_v37, 7  ;;  %v5489_v42 = vld [vmem:[#allocation28_spill] sm:$0xff] }
 0x3ec   :  { %v1148_v63 = vsel %vm578_vm1, %v1141_v30, %v1147_v29  ;;  %v618_v43 = vmul.f32 1.442695, %v607_v0  ;;  %v4339_v30 = vmul.f32 %v3364_v53, %v5486_v36  ;;  %v611_v11 = vsub.f32 %v4040_v18, %v595_v39 }
 0x3ed   :  { %v1149_v33 = vsel %vm580_vm3, %v1142_v26, %v1148_v63  ;;  %v622_v26 = vmul.f32 1.442695, %v609_v32  ;;  %v5487_v63 = vld [vmem:[#allocation21_spill] sm:$0xff]  ;;  %v4358_v18 = vadd.f32 %v4306_v5, %v4224_v49  ;;  %v1703_v32 = vperm.slane %v4088_v62, 1 }
 0x3ee   :  { %v1151_v10 = vsel %vm583_vm4, %v1149_v33, -inf  ;;  %3365 = vpow2.f32 %v618_v43  ;;  %v1696_v49 = vperm.slane %v4088_v62, 0 }
 0x3ef   :  { %1152 = vmax.xlane.f32.xlu2 %v1151_v10  ;;  %3367 = vpow2.f32 %v622_v26  ;;  %v626_v10 = vmul.f32 1.442695, %v611_v11  ;;  %1708 = vperm.xlu1 %3349, %v1703_v32   ;;  %v1731_v11 = vperm.slane %v4088_v62, 5  ;;  %v1745_v32 = vperm.slane %v4088_v62, 7 }
 0x3f1   :  { %3369 = vpow2.f32 %v626_v10  ;;  %v1613_v0 = vpop.permute.xlu1 %1612  ;;  %v1616_v10 = vpop.permute.xlu0 %1615 }
 0x3f2   :  { %v1636_v36 = vperm.slane %v1616_v10, %v4106_v8 }
 0x3f4   :  { %v3366_v29 = vpop.eup %3365 }
 0x3f5   :  { %v4345_v33 = vmul.f32 %v3366_v29, %v5487_v63  ;;  %v3368_v31 = vpop.eup %3367  ;;  %v1717_v29 = vperm.slane %v4088_v62, 3 }
 0x3f6   :  { %v4349_v13 = vmul.f32 %v3368_v31, %v5488_v24 }
 0x3f7   :  { %v3370_v56 = vpop.eup %3369  ;;  %1722 = vperm.xlu1 %3349, %v1717_v29   ;;  %v1724_v29 = vperm.slane %v4088_v62, 4 }
 0x3f8   :  { %v4353_v37 = vmul.f32 %v3370_v56, %v5489_v42  ;;  %v1710_v56 = vperm.slane %v4088_v62, 2 }
 0x3f9   :  { %v1625_v9 = vpop.permute.xlu1 %1624  ;;  %v1619_v63 = vpop.permute.xlu0 %1618 }
 0x3fa   :  { %v1637_v5 = vperm.slane %v1619_v63, %v4106_v8  ;;  %v1639_v10 = vperm.slane %v1625_v9, %v4106_v8 }
 0x3ff   :  { %1736 = vperm.xlu1 %3349, %v1731_v11  }
 0x401   :  { %v4367_v39 = vpop.permute.xlu1 %713 }
 0x407   :  { %1621 = vperm.xlu2 %3347, %v4333_v19   ;;  %1750 = vperm.xlu1 %3349, %v1745_v32  }
 0x409   :  { %v4374_v31 = vpop.permute.xlu1 %722 }
 0x40f   :  { %710 = vperm.xlu2 %3347, %v4339_v30   ;;  %3351 = vset.pattern.permute.xlu1 %v5460_v46 }
 0x411   :  { %v4381_v42 = vpop.permute.xlu1 %728 }
 0x417   :  { %719 = vperm.xlu2 %3347, %v4345_v33  }
 0x419   :  { %v1634_v50 = vpop.permute.xlu1 %1633 }
 0x41f   :  { %725 = vperm.xlu2 %3347, %v4349_v13  }
 0x427   :  { %731 = vperm.xlu2 %3347, %v4353_v37  }
 0x42f   :  { %1630 = vperm.xlu2 %3347, %v4358_v18  }
 0x437   :  { %3348 = vset.pattern.permute.xlu2 %v3608_v1 }
 0x43f   :  { %1701 = vperm.xlu2 %3348, %v1696_v49   ;;  %v1635_v49 = vperm.slane %v1613_v0, %v4106_v8  ;;  %v1628_v0 = vpop.permute.xlu0 %1627 }
 0x441   :  { %v1643_v41 = vsel %vm568_vm11, %v1636_v36, %v1635_v49 }
 0x447   :  { %1715 = vperm.xlu2 %3348, %v1710_v56   ;;  %v1644_v56 = vsel %vm570_vm12, %v1637_v5, %v1643_v41  ;;  %v1642_v41 = vperm.slane %v1634_v50, %v4106_v8  ;;  %v4404_v49 = vpop.permute.xlu0 %716 }
 0x44f   :  { %1729 = vperm.xlu2 %3348, %v1724_v29  }
 0x457   :  { %1743 = vperm.xlu2 %3348, %v1738_v54  }
 0x45f   :  { %3350 = vset.pattern.permute.xlu2 %v5460_v46 }
 0x462   :  { %v4362_v43 = vpop.xlane.xlu2 %1152 }
 0x46a   :  { %v1622_v53 = vpop.permute.xlu2 %1621 }
 0x46b   :  { %v1638_v11 = vperm.slane %v1622_v53, %v4106_v8  ;;  %v1640_v53 = vperm.slane %v1628_v0, %v4106_v8 }
 0x46d   :  { %v1645_v32 = vsel %vm572_vm13, %v1638_v11, %v1644_v56 }
 0x46e   :  { %v1646_v63 = vsel %vm574_vm14, %v1639_v10, %v1645_v32 }
 0x46f   :  { %v1647_v5 = vsel %vm576_vm15, %v1640_v53, %v1646_v63  ;;  %v1156_v63 = vperm.slane %v4362_v43, 1 }
 0x472   :  { %v4365_v26 = vpop.permute.xlu2 %710 }
 0x47a   :  { %v4372_v1 = vpop.permute.xlu2 %719 }
 0x482   :  { %v4378_v24 = vpop.permute.xlu2 %725 }
 0x48a   :  { %v4387_v2 = vpop.permute.xlu2 %731 }
 0x492   :  { %v1631_v59 = vpop.permute.xlu2 %1630 }
 0x493   :  { %v1641_v36 = vperm.slane %v1631_v59, %v4106_v8 }
 0x495   :  { %v1648_v29 = vsel %vm578_vm1, %v1641_v36, %v1647_v5 }
 0x496   :  { %v1649_v62 = vsel %vm580_vm3, %v1642_v41, %v1648_v29  ;;  %v1172_v29 = vsub.f32 %v4170_v22, %v1156_v63 }
 0x497   :  { %v1651_v9 = vsel %vm583_vm4, %v1649_v62, -inf  ;;  %v4413_v62 = vpop.permute.xlu1 %1708 }
 0x498   :  { %1652 = vmax.xlane.f32.xlu0 %v1651_v9 }
 0x49a   :  { %v4407_v50 = vpop.permute.xlu2 %1701 }
 0x50b   :  { %v1653_v11 = vpop.xlane.xlu0 %1652 }
 0x50c   :  { %v1657_v56 = vperm.slane %v1653_v11, 2  ;;  %v1655_v54 = vperm.slane %v1653_v11, 0  ;;  %v1656_v32 = vperm.slane %v1653_v11, 1  ;;  %v1658_v53 = vperm.slane %v1653_v11, 3 }
 0x50d   :  { %v1659_v41 = vperm.slane %v1653_v11, 4 }
 0x50e   :  { %v1673_v59 = vsub.f32 %v4268_v17, %v1657_v56  ;;  %v1671_v10 = vsub.f32 %v4255_v14, %v1655_v54  ;;  %v1672_v0 = vsub.f32 %v4251_v4, %v1656_v32  ;;  %v1674_v9 = vsub.f32 %v4333_v19, %v1658_v53  ;;  %v4418_v32 = vpop.permute.xlu2 %1715 }
 0x50f   :  { %v1675_v17 = vsub.f32 %v4271_v55, %v1659_v41  ;;  %v1181_v14 = vmul.f32 1.442695, %v1172_v29  ;;  %v1158_v4 = vperm.slane %v4362_v43, 3  ;;  %v1660_v56 = vperm.slane %v1653_v11, 5 }
 0x510   :  { %v1683_v36 = vmul.f32 1.442695, %v1673_v59  ;;  %v1679_v46 = vmul.f32 1.442695, %v1671_v10  ;;  %v1681_v5 = vmul.f32 1.442695, %v1672_v0 }
 0x511   :  { %v1685_v54 = vmul.f32 1.442695, %v1674_v9  ;;  %v1661_v59 = vperm.slane %v1653_v11, 6  ;;  %v1687_v10 = vmul.f32 1.442695, %v1675_v17  ;;  %v1174_v22 = vsub.f32 %v4145_v61, %v1158_v4 }
 0x512   :  { %3371 = vpow2.f32 %v1683_v36  ;;  %v1676_v19 = vsub.f32 %v4280_v12, %v1660_v56  ;;  %v1662_v9 = vperm.slane %v1653_v11, 7 }
 0x513   :  { %3373 = vpow2.f32 %v1679_v46  ;;  %v1677_v36 = vsub.f32 %v4358_v18, %v1661_v59  ;;  %v4429_v46 = vpop.permute.xlu1 %1722  ;;  %v1185_v12 = vmul.f32 1.442695, %v1174_v22 }
 0x514   :  { %3375 = vpow2.f32 %v1681_v5  ;;  %v1161_v5 = vperm.slane %v4362_v43, 6  ;;  %v1689_v29 = vmul.f32 1.442695, %v1676_v19 }
 0x515   :  { %3377 = vpow2.f32 %v1181_v14  ;;  %v1691_v17 = vmul.f32 1.442695, %v1677_v36  ;;  %v1157_v14 = vperm.slane %v4362_v43, 2 }
 0x516   :  { %3379 = vpow2.f32 %v1685_v54  ;;  %v4439_v54 = vpop.permute.xlu2 %1729  ;;  %v1177_v59 = vsub.f32 %v4238_v40, %v1161_v5  ;;  %v1159_v5 = vperm.slane %v4362_v43, 4 }
 0x517   :  { %3381 = vpow2.f32 %v1687_v10  ;;  %v1678_v10 = vsub.f32 %v4302_v3, %v1662_v9  ;;  %v1173_v22 = vsub.f32 %v4161_v44, %v1157_v14 }
 0x518   :  { %v3372_v0 = vpop.eup %3371  ;;  %3383 = vpow2.f32 %v1185_v12  ;;  %v1191_v40 = vmul.f32 1.442695, %v1177_v59 }
 0x519   :  { %v3374_v63 = vpop.eup %3373  ;;  %v4423_v55 = vmul.f32 %v3372_v0, %v4418_v32  ;;  %3385 = vpow2.f32 %v1689_v29  ;;  %v1693_v3 = vmul.f32 1.442695, %v1678_v10  ;;  %v1183_v12 = vmul.f32 1.442695, %v1173_v22 }
 0x51a   :  { %v3376_v53 = vpop.eup %3375  ;;  %v4427_v41 = vmul.f32 %v3374_v63, %v4407_v50  ;;  %3387 = vpow2.f32 %v1691_v17 }
 0x51b   :  { %1783 = vperm.xlu0 %3346, %v4423_v55   ;;  %v4433_v61 = vmul.f32 %v3376_v53, %v4413_v62  ;;  %v3378_v18 = vpop.eup %3377  ;;  %v4455_v19 = vpop.permute.xlu1 %1736  ;;  %v1155_v53 = vperm.slane %v4362_v43, 0  ;;  %3389 = vpow2.f32 %v1191_v40  ;;  %v1162_v40 = vperm.slane %v4362_v43, 7 }
 0x51c   :  { %1777 = vperm.xlu2 %3350, %v4427_v41   ;;  %v3380_v4 = vpop.eup %3379  ;;  %v4444_v0 = vmul.f32 %v3378_v18, %v4214_v15  ;;  %3391 = vpow2.f32 %v1693_v3 }
 0x51d   :  { %1780 = vperm.xlu1 %3351, %v4433_v61   ;;  %v3382_v56 = vpop.eup %3381  ;;  %v4447_v11 = vmul.f32 %v3380_v4, %v4429_v46  ;;  %v1171_v18 = vsub.f32 %v4135_v25, %v1155_v53  ;;  %3393 = vpow2.f32 %v1183_v12  ;;  %v1175_v4 = vsub.f32 %v4166_v7, %v1159_v5 }
 0x51e   :  { %v4452_v63 = vmul.f32 %v3382_v56, %v4439_v54  ;;  %v3384_v36 = vpop.eup %3383  ;;  %v4464_v17 = vpop.permute.xlu2 %1743  ;;  %v1160_v25 = vperm.slane %v4362_v43, 5 }
 0x51f   :  { %v3386_v44 = vpop.eup %3385  ;;  %v4461_v9 = vmul.f32 %v3384_v36, %v3990_v21  ;;  %v1179_v59 = vmul.f32 1.442695, %v1171_v18  ;;  %v1187_v22 = vmul.f32 1.442695, %v1175_v4 }
 0x520   :  { %v3388_v29 = vpop.eup %3387  ;;  %v4467_v14 = vmul.f32 %v3386_v44, %v4455_v19  ;;  %v1176_v12 = vsub.f32 %v4153_v34, %v1160_v25  ;;  %v1178_v44 = vsub.f32 %v4186_v51, %v1162_v40 }
 0x521   :  { %v4471_v56 = vmul.f32 %v3388_v29, %v4464_v17  ;;  %v3390_v10 = vpop.eup %3389  ;;  %3395 = vpow2.f32 %v1179_v59 }
 0x522   :  { %v3392_v3 = vpop.eup %3391  ;;  %v4481_v36 = vmul.f32 %v3390_v10, %v4228_v27  ;;  %3397 = vpow2.f32 %v1187_v22  ;;  %v1189_v29 = vmul.f32 1.442695, %v1176_v12  ;;  %v1193_v18 = vmul.f32 1.442695, %v1178_v44 }
 0x523   :  { %1280 = vperm.xlu0 %3346, %v4444_v0   ;;  %v4478_v53 = vpop.permute.xlu1 %1750  ;;  %v3394_v7 = vpop.eup %3393  ;;  %v736_v44 = vperm.slane %v4372_v1, %v4106_v8  ;;  %v740_v1 = vperm.slane %v4387_v2, %v4106_v8 }
 0x524   :  { %1786 = vperm.xlu2 %3350, %v4447_v11   ;;  %v4485_v5 = vmul.f32 %v3392_v3, %v4478_v53  ;;  %v4490_v43 = vmul.f32 %v3394_v7, %v4218_v48  ;;  %3399 = vpow2.f32 %v1189_v29  ;;  %v733_v3 = vperm.slane %v4365_v26, %v4106_v8 }
 0x525   :  { %1789 = vperm.xlu1 %3351, %v4452_v63   ;;  %3401 = vpow2.f32 %v1193_v18  ;;  %v734_v7 = vperm.slane %v4367_v39, %v4106_v8  ;;  %v735_v29 = vperm.slane %v4404_v49, %v4106_v8  ;;  %v737_v26 = vperm.slane %v4374_v31, %v4106_v8 }
 0x526   :  { %v739_v49 = vperm.slane %v4381_v42, %v4106_v8 }
 0x527   :  { %v3396_v4 = vpop.eup %3395  ;;  %v741_v12 = vsel %vm568_vm11, %v734_v7, %v733_v3 }
 0x528   :  { %v3398_v59 = vpop.eup %3397  ;;  %v4495_v34 = vmul.f32 %v3396_v4, %v3981_v28  ;;  %v742_v18 = vsel %vm570_vm12, %v735_v29, %v741_v12 }
 0x529   :  { %v4498_v51 = vmul.f32 %v3398_v59, %v4222_v52  ;;  %v743_v4 = vsel %vm572_vm13, %v736_v44, %v742_v18  ;;  %v738_v59 = vperm.slane %v4378_v24, %v4106_v8 }
 0x52a   :  { %v3400_v25 = vpop.eup %3399  ;;  %v744_v39 = vsel %vm574_vm14, %v737_v26, %v743_v4 }
 0x52b   :  { %1286 = vperm.xlu0 %3346, %v4461_v9   ;;  %v3402_v10 = vpop.eup %3401  ;;  %v4503_v22 = vmul.f32 %v3400_v25, %v4004_v58  ;;  %v745_v25 = vsel %vm576_vm15, %v738_v59, %v744_v39 }
 0x52c   :  { %1792 = vperm.xlu2 %3350, %v4467_v14   ;;  %v4506_v40 = vmul.f32 %v3402_v10, %v4232_v16  ;;  %v746_v10 = vsel %vm578_vm1, %v739_v49, %v745_v25 }
 0x52d   :  { %1795 = vperm.xlu1 %3351, %v4471_v56   ;;  %v747_v3 = vsel %vm580_vm3, %v740_v1, %v746_v10 }
 0x52e   :  { %v749_v7 = vsel %vm583_vm4, %v747_v3, 0.0 }
 0x533   :  { %1295 = vperm.xlu0 %3346, %v4481_v36  }
 0x534   :  { %1798 = vperm.xlu2 %3350, %v4485_v5  }
 0x535   :  { %1283 = vperm.xlu1 %3351, %v4490_v43  }
 0x53c   :  { %1277 = vperm.xlu2 %3350, %v4495_v34  }
 0x53d   :  { %1289 = vperm.xlu1 %3351, %v4498_v51  }
 0x544   :  { %1292 = vperm.xlu2 %3350, %v4503_v22  }
 0x545   :  { %1298 = vperm.xlu1 %3351, %v4506_v40  }
 0x56f   :  { %750 = vadd.xlane.f32.xlu1 %v749_v7 }
 0x576   :  { %v1778_v27 = vpop.permute.xlu2 %1777 }
 0x58f   :  { %v4534_v24 = vpop.permute.xlu1 %1780 }
 0x597   :  { %v4536_v31 = vpop.permute.xlu1 %1789 }
 0x59f   :  { %v4538_v12 = vpop.permute.xlu1 %1795 }
 0x5a7   :  { %v4540_v44 = vpop.permute.xlu1 %1283 }
 0x5af   :  { %v4542_v29 = vpop.permute.xlu1 %1289 }
 0x5b7   :  { %v4544_v2 = vpop.permute.xlu1 %1298 }
 0x5e2   :  { %v751_v42 = vpop.xlane.xlu1 %750 }
 0x5e3   :  { %v752_v18 = vmax.f32 %v751_v42, 1e-30 }
 0x5e5   :  { %3403 = vrcp.f32 %v752_v18 }
 0x5eb   :  { %v3404_v4 = vpop.eup %3403 }
 0x5ec   :  { %v756_v59 = vperm.slane %v3404_v4, 1  ;;  %v755_v26 = vperm.slane %v3404_v4, 0  ;;  %v758_v1 = vperm.slane %v3404_v4, 3  ;;  %v757_v49 = vperm.slane %v3404_v4, 2 }
 0x5ed   :  { %v760_v15 = vperm.slane %v3404_v4, 5  ;;  %v759_v28 = vperm.slane %v3404_v4, 4 }
 0x5ee   :  { %v772_v39 = vmul.f32 %v756_v59, %v4283_v57  ;;  %v771_v25 = vmul.f32 %v755_v26, %v4339_v30  ;;  %v774_v21 = vmul.f32 %v758_v1, %v4345_v33  ;;  %v773_v48 = vmul.f32 %v757_v49, %v4291_v45  ;;  %v1787_v45 = vpop.permute.xlu2 %1786 }
 0x5ef   :  { %v776_v30 = vmul.f32 %v760_v15, %v4349_v13  ;;  %v775_v26 = vmul.f32 %v759_v28, %v4288_v47  ;;  %v762_v33 = vperm.slane %v3404_v4, 7  ;;  %v761_v1 = vperm.slane %v3404_v4, 6  ;;  %v1784_v47 = vpop.permute.xlu0 %1783 }
 0x5f0   :  { %v780_v10 = vpack.c.bf16 %v772_v39, %v772_v39  ;;  %v779_v3 = vpack.c.bf16 %v771_v25, %v771_v25  ;;  %v782_v42 = vpack.c.bf16 %v774_v21, %v774_v21  ;;  %v781_v18 = vpack.c.bf16 %v773_v48, %v773_v48 }
 0x5f1   :  { %v784_v39 = vpack.c.bf16 %v776_v30, %v776_v30  ;;  %v783_v25 = vpack.c.bf16 %v775_v26, %v775_v26  ;;  %v778_v21 = vmul.f32 %v762_v33, %v4353_v37  ;;  %v777_v48 = vmul.f32 %v761_v1, %v4296_v23 }
 0x5f2   :  { %v798_v7 = vunpack.c.l.b16 %v780_v10  ;;  %v797_v16 = vunpack.c.l.b16 %v779_v3  ;;  %v800_v57 = vunpack.c.l.b16 %v782_v42  ;;  %v799_v59 = vunpack.c.l.b16 %v781_v18 }
 0x5f3   :  { %v802_v49 = vunpack.c.l.b16 %v784_v39  ;;  %v786_v10 = vpack.c.bf16 %v778_v21, %v778_v21  ;;  %v785_v3 = vpack.c.bf16 %v777_v48, %v777_v48  ;;  %v1801_v4 = vperm.slane %v4534_v24, %v4106_v8 }
 0x5f4   :  { %809 = vperm.xlu2 %3350, %v798_v7   ;;  %806 = vperm.xlu0 %3346, %v797_v16   ;;  %v801_v16 = vunpack.c.l.b16 %v783_v25  ;;  %v1800_v37 = vperm.slane %v1778_v27, %v4106_v8  ;;  %v1802_v23 = vperm.slane %v1784_v47, %v4106_v8  ;;  %v1302_v39 = vperm.slane %v4540_v44, %v4106_v8 }
 0x5f5   :  { %v804_v15 = vunpack.c.l.b16 %v786_v10  ;;  %v803_v13 = vunpack.c.l.b16 %v785_v3  ;;  %v1804_v24 = vperm.slane %v4536_v31, %v4106_v8  ;;  %v1803_v27 = vperm.slane %v1787_v45, %v4106_v8 }
 0x5f6   :  { %v1793_v28 = vpop.permute.xlu2 %1792  ;;  %v1808_v26 = vsel %vm568_vm11, %v1801_v4, %v1800_v37  ;;  %v1806_v10 = vperm.slane %v4538_v12, %v4106_v8  ;;  %v1307_v47 = vperm.slane %v4544_v2, %v4106_v8 }
 0x5f7   :  { %v1281_v42 = vpop.permute.xlu0 %1280  ;;  %v1809_v25 = vsel %vm570_vm12, %v1802_v23, %v1808_v26  ;;  %v1805_v31 = vperm.slane %v1793_v28, %v4106_v8 }
 0x5f8   :  { %v1810_v21 = vsel %vm572_vm13, %v1803_v27, %v1809_v25 }
 0x5f9   :  { %v1811_v44 = vsel %vm574_vm14, %v1804_v24, %v1810_v21 }
 0x5fc   :  { %815 = vperm.xlu2 %3350, %v800_v57   ;;  %812 = vperm.xlu0 %3346, %v799_v59   ;;  %v1301_v57 = vperm.slane %v1281_v42, %v4106_v8 }
 0x5fe   :  { %v1799_v7 = vpop.permute.xlu2 %1798 }
 0x5ff   :  { %v1287_v30 = vpop.permute.xlu0 %1286  ;;  %v1807_v12 = vperm.slane %v1799_v7, %v4106_v8 }
 0x604   :  { %821 = vperm.xlu2 %3350, %v802_v49   ;;  %818 = vperm.xlu0 %3346, %v801_v16   ;;  %v1304_v49 = vperm.slane %v4542_v29, %v4106_v8  ;;  %v1303_v16 = vperm.slane %v1287_v30, %v4106_v8  ;;  %v1812_v29 = vsel %vm576_vm15, %v1805_v31, %v1811_v44 }
 0x605   :  { %v1813_v42 = vsel %vm578_vm1, %v1806_v10, %v1812_v29 }
 0x606   :  { %v1278_v18 = vpop.permute.xlu2 %1277  ;;  %v1814_v28 = vsel %vm580_vm3, %v1807_v12, %v1813_v42 }
 0x607   :  { %v1300_v59 = vperm.slane %v1278_v18, %v4106_v8 }
 0x609   :  { %v1308_v33 = vsel %vm568_vm11, %v1301_v57, %v1300_v59  ;;  %v1816_v57 = vsel %vm583_vm4, %v1814_v28, 0.0 }
 0x60a   :  { %v1309_v1 = vsel %vm570_vm12, %v1302_v39, %v1308_v33 }
 0x60b   :  { %v1310_v3 = vsel %vm572_vm13, %v1303_v16, %v1309_v1 }
 0x60c   :  { %827 = vperm.xlu2 %3350, %v804_v15   ;;  %824 = vperm.xlu0 %3346, %v803_v13   ;;  %v1311_v45 = vsel %vm574_vm14, %v1304_v49, %v1310_v3  ;;  %v1296_v13 = vpop.permute.xlu0 %1295 }
 0x60d   :  { %v1306_v18 = vperm.slane %v1296_v13, %v4106_v8 }
 0x60e   :  { %v1293_v48 = vpop.permute.xlu2 %1292 }
 0x60f   :  { %v1305_v15 = vperm.slane %v1293_v48, %v4106_v8 }
 0x611   :  { %v1312_v4 = vsel %vm576_vm15, %v1305_v15, %v1311_v45 }
 0x612   :  { %v1313_v37 = vsel %vm578_vm1, %v1306_v18, %v1312_v4 }
 0x613   :  { %v1314_v23 = vsel %vm580_vm3, %v1307_v47, %v1313_v37 }
 0x614   :  { %v1316_v59 = vsel %vm583_vm4, %v1314_v23, 0.0 }
 0x635   :  { %1817 = vadd.xlane.f32.xlu2 %v1816_v57 }
 0x636   :  { %1317 = vadd.xlane.f32.xlu0 %v1316_v59 }
 0x64e   :  { %v810_v2 = vpop.permute.xlu2 %809 }
 0x64f   :  { %v830_v24 = vperm.slane %v810_v2, %v4106_v8 }
 0x656   :  { %v816_v26 = vpop.permute.xlu2 %815 }
 0x657   :  { %v832_v21 = vperm.slane %v816_v26, %v4106_v8 }
 0x65e   :  { %v822_v25 = vpop.permute.xlu2 %821 }
 0x65f   :  { %v834_v3 = vperm.slane %v822_v25, %v4106_v8 }
 0x666   :  { %v807_v30 = vpop.permute.xlu0 %806  ;;  %v828_v44 = vpop.permute.xlu2 %827 }
 0x667   :  { %v829_v7 = vperm.slane %v807_v30, %v4106_v8  ;;  %v836_v15 = vperm.slane %v828_v44, %v4106_v8 }
 0x669   :  { %v837_v1 = vsel %vm568_vm11, %v830_v24, %v829_v7 }
 0x66e   :  { %v813_v39 = vpop.permute.xlu0 %812 }
 0x66f   :  { %v831_v33 = vperm.slane %v813_v39, %v4106_v8 }
 0x671   :  { %v838_v49 = vsel %vm570_vm12, %v831_v33, %v837_v1 }
 0x672   :  { %v839_v48 = vsel %vm572_vm13, %v832_v21, %v838_v49 }
 0x676   :  { %v819_v27 = vpop.permute.xlu0 %818 }
 0x677   :  { %v833_v16 = vperm.slane %v819_v27, %v4106_v8 }
 0x679   :  { %v840_v10 = vsel %vm574_vm14, %v833_v16, %v839_v48 }
 0x67a   :  { %v841_v13 = vsel %vm576_vm15, %v834_v3, %v840_v10 }
 0x67e   :  { %v825_v31 = vpop.permute.xlu0 %824 }
 0x67f   :  { %v835_v45 = vperm.slane %v825_v31, %v4106_v8 }
 0x681   :  { %v842_v29 = vsel %vm578_vm1, %v835_v45, %v841_v13 }
 0x682   :  { %v843_v47 = vsel %vm580_vm3, %v836_v15, %v842_v29 }
 0x683   :  { %v844_v42 = vpack.c.b16 %v843_v47, %v843_v47 }
 0x685   :  { %3313 = vmatmul.msk.bf16.vlgmr.msra.gmra.mxu2 %vm583_vm4, %v844_v42 }
 0x6a8   :  { %v1818_v4 = vpop.xlane.xlu2 %1817 }
 0x6a9   :  { %v1819_v12 = vmax.f32 %v1818_v4, 1e-30  ;;  %v1318_v18 = vpop.xlane.xlu0 %1317 }
 0x6aa   :  { %v1319_v28 = vmax.f32 %v1318_v18, 1e-30 }
 0x6ab   :  { %3405 = vrcp.f32 %v1819_v12 }
 0x6ac   :  { %3407 = vrcp.f32 %v1319_v28 }
 0x6b1   :  { %v3406_v37 = vpop.eup %3405 }
 0x6b2   :  { %v4608_v23 = vpop.eup %3407  ;;  %v1827_v57 = vperm.slane %v3406_v37, 5  ;;  %v1822_v59 = vperm.slane %v3406_v37, 0  ;;  %v1829_v2 = vperm.slane %v3406_v37, 7  ;;  %v1823_v30 = vperm.slane %v3406_v37, 1 }
 0x6b3   :  { %v1325_v7 = vperm.slane %v4608_v23, 3  ;;  %v1324_v33 = vperm.slane %v4608_v23, 2  ;;  %v1824_v10 = vperm.slane %v3406_v37, 2  ;;  %v1328_v3 = vperm.slane %v4608_v23, 6 }
 0x6b4   :  { %v1843_v26 = vmul.f32 %v1827_v57, %v4467_v14  ;;  %v1838_v39 = vmul.f32 %v1822_v59, %v4427_v41  ;;  %v1845_v25 = vmul.f32 %v1829_v2, %v4485_v5  ;;  %v1839_v49 = vmul.f32 %v1823_v30, %v4433_v61  ;;  %v5490_v30 = vld [vmem:[#allocation8_spill] sm:$0xff] }
 0x6b5   :  { %v1341_v44 = vmul.f32 %v1325_v7, %v4461_v9  ;;  %v1340_v14 = vmul.f32 %v1324_v33, %v4490_v43  ;;  %v1327_v45 = vperm.slane %v4608_v23, 5  ;;  %v1840_v13 = vmul.f32 %v1824_v10, %v4423_v55 }
 0x6b6   :  { %v1851_v24 = vpack.c.bf16 %v1843_v26, %v1843_v26  ;;  %v1846_v27 = vpack.c.bf16 %v1838_v39, %v1838_v39  ;;  %v1853_v1 = vpack.c.bf16 %v1845_v25, %v1845_v25  ;;  %v1847_v41 = vpack.c.bf16 %v1839_v49, %v1839_v49 }
 0x6b7   :  { %v1349_v5 = vpack.c.bf16 %v1341_v44, %v1341_v44  ;;  %v1348_v31 = vpack.c.bf16 %v1340_v14, %v1340_v14  ;;  %v1344_v29 = vmul.f32 %v1328_v3, %v4481_v36  ;;  %v1343_v43 = vmul.f32 %v1327_v45, %v4503_v22 }
 0x6b8   :  { %v1869_v16 = vunpack.c.l.b16 %v1851_v24  ;;  %v1864_v21 = vunpack.c.l.b16 %v1846_v27  ;;  %v1871_v48 = vunpack.c.l.b16 %v1853_v1  ;;  %v1865_v15 = vunpack.c.l.b16 %v1847_v41 }
 0x6b9   :  { %v1366_v61 = vunpack.c.l.b16 %v1349_v5  ;;  %v1365_v9 = vunpack.c.l.b16 %v1348_v31  ;;  %v1848_v47 = vpack.c.bf16 %v1840_v13, %v1840_v13  ;;  %v1352_v42 = vpack.c.bf16 %v1344_v29, %v1344_v29 }
 0x6ba   :  { %1888 = vperm.xlu2 %3350, %v1869_v16   ;;  %1873 = vperm.xlu1 %3351, %v1864_v21   ;;  %v1825_v4 = vperm.slane %v3406_v37, 3  ;;  %v1351_v12 = vpack.c.bf16 %v1343_v43, %v1343_v43  ;;  %v1826_v36 = vperm.slane %v3406_v37, 4  ;;  %v1828_v39 = vperm.slane %v3406_v37, 6 }
 0x6bb   :  { %1894 = vperm.xlu0 %3346, %v1871_v48   ;;  %v1866_v18 = vunpack.c.l.b16 %v1848_v47  ;;  %v1369_v28 = vunpack.c.l.b16 %v1352_v42  ;;  %v1322_v33 = vperm.slane %v4608_v23, 0  ;;  %v1326_v37 = vperm.slane %v4608_v23, 4  ;;  %v3474_v42 = vld [vmem:[%s5341_s3] sm:$0xff] }
 0x6bc   :  { %v1841_v57 = vmul.f32 %v1825_v4, %v4447_v11  ;;  %v1368_v59 = vunpack.c.l.b16 %v1351_v12  ;;  %v1842_v22 = vmul.f32 %v1826_v36, %v4452_v63  ;;  %v1844_v7 = vmul.f32 %v1828_v39, %v4471_v56 }
 0x6bd   :  { %v1338_v27 = vmul.f32 %v1322_v33, %v4495_v34  ;;  %v1323_v63 = vperm.slane %v4608_v23, 1  ;;  %v1342_v56 = vmul.f32 %v1326_v37, %v4498_v51  ;;  %v1329_v14 = vperm.slane %v4608_v23, 7 }
 0x6be   :  { %v1849_v55 = vpack.c.bf16 %v1841_v57, %v1841_v57  ;;  %v1850_v26 = vpack.c.bf16 %v1842_v22, %v1842_v22  ;;  %v1852_v11 = vpack.c.bf16 %v1844_v7, %v1844_v7 }
 0x6bf   :  { %v1346_v1 = vpack.c.bf16 %v1338_v27, %v1338_v27  ;;  %v1339_v16 = vmul.f32 %v1323_v63, %v4444_v0  ;;  %v1350_v44 = vpack.c.bf16 %v1342_v56, %v1342_v56  ;;  %v1345_v34 = vmul.f32 %v1329_v14, %v4506_v40  ;;  %v3473_v40 = vld [vmem:[%s5341_s3 + $0x8] sm:$0xff] }
 0x6c0   :  { %v1867_v2 = vunpack.c.l.b16 %v1849_v55  ;;  %v1868_v25 = vunpack.c.l.b16 %v1850_v26  ;;  %v1870_v24 = vunpack.c.l.b16 %v1852_v11 }
 0x6c1   :  { %v1363_v49 = vunpack.c.l.b16 %v1346_v1  ;;  %v1347_v21 = vpack.c.bf16 %v1339_v16, %v1339_v16  ;;  %v1367_v41 = vunpack.c.l.b16 %v1350_v44  ;;  %v1353_v5 = vpack.c.bf16 %v1345_v34, %v1345_v34 }
 0x6c2   :  { %1876 = vperm.xlu1 %3351, %v1865_v15   ;;  %1381 = vperm.xlu2 %3350, %v1366_v61  }
 0x6c3   :  { %1378 = vperm.xlu0 %3346, %v1365_v9   ;;  %v1364_v48 = vunpack.c.l.b16 %v1347_v21  ;;  %v1370_v10 = vunpack.c.l.b16 %v1353_v5 }
 0x6ca   :  { %1879 = vperm.xlu1 %3351, %v1866_v18   ;;  %1390 = vperm.xlu2 %3350, %v1369_v28  }
 0x6cb   :  { %1387 = vperm.xlu0 %3346, %v1368_v59  }
 0x6d2   :  { %1882 = vperm.xlu1 %3351, %v1867_v2  }
 0x6d3   :  { %1412 = vrot.lane.b32.xlu0 %v5490_v30, %s3541_s22 }
 0x6da   :  { %1885 = vperm.xlu1 %3351, %v1868_v25  }
 0x6e2   :  { %1891 = vperm.xlu1 %3351, %v1870_v24  }
 0x6ea   :  { %1372 = vperm.xlu1 %3351, %v1363_v49  }
 0x6f2   :  { %1375 = vperm.xlu1 %3351, %v1364_v48  }
 0x6fa   :  { %1384 = vperm.xlu1 %3351, %v1367_v41  }
 0x702   :  { %1393 = vperm.xlu1 %3351, %v1370_v10  }
 0x708   :  { %v4636_v3 = vpop.f32.mrf.mxu2 }
 0x710   :  { %v863_v0 = vpop.f32.mrf.mxu2 }
 0x714   :  { %v1889_v59 = vpop.permute.xlu2 %1888 }
 0x715   :  { %v1901_v22 = vperm.slane %v1889_v59, %v4106_v8 }
 0x71c   :  { %v1382_v63 = vpop.permute.xlu2 %1381 }
 0x71d   :  { %v1398_v56 = vperm.slane %v1382_v63, %v4106_v8 }
 0x724   :  { %v1391_v34 = vpop.permute.xlu2 %1390 }
 0x725   :  { %v1401_v0 = vperm.slane %v1391_v34, %v4106_v8 }
 0x72c   :  { %v1874_v31 = vpop.permute.xlu1 %1873 }
 0x72d   :  { %v1895_v45 = vpop.permute.xlu0 %1894  ;;  %v1896_v12 = vperm.slane %v1874_v31, %v4106_v8 }
 0x72e   :  { %v1903_v39 = vperm.slane %v1895_v45, %v4106_v8 }
 0x734   :  { %v1877_v15 = vpop.permute.xlu1 %1876 }
 0x735   :  { %v1379_v61 = vpop.permute.xlu0 %1378  ;;  %v1897_v43 = vperm.slane %v1877_v15, %v4106_v8 }
 0x736   :  { %v1397_v21 = vperm.slane %v1379_v61, %v4106_v8 }
 0x737   :  { %v1904_v57 = vsel %vm568_vm11, %v1897_v43, %v1896_v12 }
 0x73c   :  { %v1880_v13 = vpop.permute.xlu1 %1879 }
 0x73d   :  { %v1388_v51 = vpop.permute.xlu0 %1387  ;;  %v1898_v4 = vperm.slane %v1880_v13, %v4106_v8 }
 0x73e   :  { %v1400_v5 = vperm.slane %v1388_v51, %v4106_v8  ;;  %v4680_v51 = vld [vmem:[%s5340_s2] sm:$0xff] }
 0x73f   :  { %v1905_v55 = vsel %vm570_vm12, %v1898_v4, %v1904_v57 }
 0x744   :  { %v1883_v29 = vpop.permute.xlu1 %1882 }
 0x745   :  { %v1413_v9 = vpop.permute.xlu0 %1412  ;;  %v1899_v18 = vperm.slane %v1883_v29, %v4106_v8  ;;  %v3543_v29 = vmov 8.0  }
 0x746   :  { %v1418_v23 = vsel %vm848_vm2, %v1413_v9, 0  ;;  %3409 = vrcp.f32 %v3543_v29  ;;  %v788_v9 = vperm.slane %v4680_v51, 2 }
 0x747   :  { %1427 = vmatpush.bf16.msra.mxu3 %v1418_v23  ;;  %v1906_v36 = vsel %vm572_vm13, %v1899_v18, %v1905_v55  ;;  %v3354_v23 = vld [vmem:[%s5340_s2 + $0x8] ss:$0 sm:$0xff] }
 0x748   :  { %v862_v43 = vadd.f32 %v4636_v3, %v788_v9 }
 0x74b   :  { %2027 = vmatpush.bf16.msrb.mxu3 %v3473_v40 }
 0x74c   :  { %v1886_v47 = vpop.permute.xlu1 %1885 }
 0x74d   :  { %v1900_v28 = vperm.slane %v1886_v47, %v4106_v8 }
 0x74f   :  { %2028 = vmatpush.bf16.msrb.mxu3 %v3474_v42  ;;  %v1907_v2 = vsel %vm574_vm14, %v1900_v28, %v1906_v36  ;;  %v3410_v42 = vpop.eup %3409  ;;  %v3476_v28 = vld [vmem:[%s5338_s0] sm:$0xff] }
 0x750   :  { %v1908_v25 = vsel %vm576_vm15, %v1901_v22, %v1907_v2  ;;  %v1943_v18 = vmul.f32 8.0, %v3410_v42  ;;  %vm1947_vm9 = vweird.f32 %v3410_v42 }
 0x752   :  { %v1944_v36 = vsub.f32 1.0, %v1943_v18 }
 0x754   :  { %v1892_v30 = vpop.permute.xlu1 %1891 }
 0x755   :  { %v1902_v26 = vperm.slane %v1892_v30, %v4106_v8  ;;  %v1945_v30 = vmul.f32 %v3410_v42, %v1944_v36 }
 0x757   :  { %v1909_v7 = vsel %vm578_vm1, %v1902_v26, %v1908_v25  ;;  %v1946_v3 = vadd.f32 %v3410_v42, %v1945_v30 }
 0x758   :  { %v1910_v11 = vsel %vm580_vm3, %v1903_v39, %v1909_v7 }
 0x759   :  { %v1911_v33 = vpack.c.b16 %v1910_v11, %v1910_v11  ;;  %v4693_v11 = vsel %vm1947_vm9, %v3410_v42, %v1946_v3 }
 0x75b   :  { %3315 = vmatmul.msk.bf16.vlgmr.msrb.gmra.mxu2 %vm583_vm4, %v1911_v33 }
 0x75c   :  { %v1373_v24 = vpop.permute.xlu1 %1372 }
 0x75d   :  { %v1395_v49 = vperm.slane %v1373_v24, %v4106_v8  ;;  %v4698_v24 = vld [vmem:[%s5339_s1] sm:$0x3f] }
 0x764   :  { %v1376_v27 = vpop.permute.xlu1 %1375 }
 0x765   :  { %v1396_v1 = vperm.slane %v1376_v27, %v4106_v8 }
 0x767   :  { %v1403_v16 = vsel %vm568_vm11, %v1396_v1, %v1395_v49  ;;  %v1354_v49 = vperm.slane %v4680_v51, 5 }
 0x768   :  { %v1404_v37 = vsel %vm570_vm12, %v1397_v21, %v1403_v16 }
 0x769   :  { %v1405_v14 = vsel %vm572_vm13, %v1398_v56, %v1404_v37 }
 0x76c   :  { %v1385_v48 = vpop.permute.xlu1 %1384 }
 0x76d   :  { %v1399_v44 = vperm.slane %v1385_v48, %v4106_v8 }
 0x76f   :  { %v1406_v41 = vsel %vm574_vm14, %v1399_v44, %v1405_v14 }
 0x770   :  { %v1407_v10 = vsel %vm576_vm15, %v1400_v5, %v1406_v41  ;;  %v3477_v41 = vld [vmem:[%s5338_s0 + $0x8] sm:$0xff] }
 0x771   :  { %v1408_v15 = vsel %vm578_vm1, %v1401_v0, %v1407_v10 }
 0x774   :  { %v1394_v31 = vpop.permute.xlu1 %1393 }
 0x775   :  { %v1402_v45 = vperm.slane %v1394_v31, %v4106_v8 }
 0x777   :  { %v1409_v61 = vsel %vm580_vm3, %v1402_v45, %v1408_v15 }
 0x778   :  { %v1410_v13 = vpack.c.b16 %v1409_v61, %v1409_v61 }
 0x77a   :  { %3314 = vmatmul.msk.bf16.vlgmr.msra.gmra.mxu3 %vm583_vm4, %v1410_v13 }
 0x7de   :  { %v1927_v40 = vpop.f32.mrf.mxu2 }
 0x7df   :  { %v1928_v47 = vadd.f32 %v3354_v23, %v1927_v40 }
 0x7e1   :  { %v1931_v4 = vadd.f32 %v1928_v47, %v862_v43 }
 0x7e3   :  { %v1932_v12 = vmax.f32 %v1931_v4, 0.0 }
 0x7e5   :  { %v1933_v57 = vadd.f32 %v3476_v28, %v1932_v12 }
 0x7e6   :  { %v1929_v59 = vpop.f32.mrf.mxu2 }
 0x7e7   :  { %v1934_v55 = vmul.f32 0.5, %v1933_v57 }
 0x7e9   :  { %v1935_v2 = vsel %vm291_vm0, %v1934_v55, 0.0 }
 0x7ea   :  { %v1936_v22 = vrot.slane %v1935_v2, 4 }
 0x7ec   :  { %v1937_v26 = vadd.f32 %v1936_v22, %v1935_v2 }
 0x7ee   :  { %v1938_v39 = vrot.slane %v1937_v26, 2 }
 0x7f0   :  { %v1939_v25 = vadd.f32 %v1938_v39, %v1937_v26  ;;  %v1962_v26 = vperm.slane %v4698_v24, 0 }
 0x7f2   :  { %v1940_v7 = vrot.slane %v1939_v25, 1 }
 0x7f4   :  { %v1941_v33 = vadd.f32 %v1940_v7, %v1939_v25 }
 0x7f6   :  { %v1949_v27 = vmul.f32 %v4693_v11, %v1941_v33 }
 0x7f8   :  { %v1950_v1 = vmul.f32 %v1949_v27, %v4698_v24 }
 0x7fa   :  { %v1951_v63 = vperm.slane %v1950_v1, 2  ;;  %v1976_v1 = vperm.slane %v4698_v24, 1 }
 0x7fc   :  { %v1952_v16 = vsub.f32 %v1934_v55, %v1951_v63 }
 0x7fd   :  { %v1429_v21 = vpop.f32.mrf.mxu3 }
 0x7fe   :  { %v1953_v37 = vmul.f32 %v1952_v16, %v1952_v16  ;;  %v1430_v48 = vadd.f32 %v1429_v21, %v1354_v49  ;;  %v1963_v27 = vmul.f32 %v1962_v26, %v1952_v16 }
 0x800   :  { %v1954_v56 = vsel %vm291_vm0, %v1953_v37, 0.0  ;;  %v1978_v44 = vmax.f32 %v1430_v48, 0.0 }
 0x801   :  { %v1955_v14 = vrot.slane %v1954_v56, 4 }
 0x802   :  { %v1979_v34 = vadd.f32 %v3477_v41, %v1978_v44 }
 0x803   :  { %v1956_v5 = vadd.f32 %v1955_v14, %v1954_v56 }
 0x804   :  { %v1980_v10 = vmul.f32 0.5, %v1979_v34 }
 0x805   :  { %v1957_v0 = vrot.slane %v1956_v5, 2  ;;  %v1431_v31 = vpop.f32.mrf.mxu3 }
 0x806   :  { %v1981_v45 = vsel %vm291_vm0, %v1980_v10, 0.0 }
 0x807   :  { %v1958_v15 = vadd.f32 %v1957_v0, %v1956_v5  ;;  %v1982_v61 = vrot.slane %v1981_v45, 4 }
 0x809   :  { %v1959_v13 = vrot.slane %v1958_v15, 1  ;;  %v1983_v29 = vadd.f32 %v1982_v61, %v1981_v45  ;;  %v2001_v45 = vperm.slane %v4698_v24, 3 }
 0x80b   :  { %v1960_v23 = vadd.f32 %v1959_v13, %v1958_v15  ;;  %v1984_v40 = vrot.slane %v1983_v29, 2 }
 0x80d   :  { %v1961_v43 = vmul.f32 %v1960_v23, %v4693_v11  ;;  %v1985_v47 = vadd.f32 %v1984_v40, %v1983_v29  ;;  %v2015_v29 = vperm.slane %v4698_v24, 4 }
 0x80f   :  { %v1986_v42 = vrot.slane %v1985_v47, 1  ;;  %v1964_v4 = vadd.f32 1e-05, %v1961_v43 }
 0x811   :  { %v1987_v12 = vadd.f32 %v1986_v42, %v1985_v47  ;;  %3411 = vrsqrt.f32 %v1964_v4  ;;  %vm1971_vm5 = vweird.f32 %v1964_v4 }
 0x813   :  { %v1988_v18 = vmul.f32 %v1987_v12, %v4693_v11 }
 0x815   :  { %v1989_v28 = vmul.f32 %v1988_v18, %v4698_v24 }
 0x817   :  { %v3412_v57 = vpop.eup %3411  ;;  %v1990_v59 = vperm.slane %v1989_v28, 5 }
 0x818   :  { %v1966_v55 = vmul.f32 %v3412_v57, %v1964_v4  ;;  %vm1972_vm10 = vweird.f32 %v3412_v57  ;;  %v3478_v4 = vld [vmem:[%s5343_s5] ss:$0 sm:$0xff] }
 0x819   :  { %v1991_v36 = vsub.f32 %v1980_v10, %v1990_v59  ;;  %vm1973_vm6 = vmor %vm1971_vm5, %vm1972_vm10 }
 0x81a   :  { %v1967_v2 = vmul.f32 %v3412_v57, %v1966_v55 }
 0x81b   :  { %v1992_v22 = vmul.f32 %v1991_v36, %v1991_v36  ;;  %v2002_v13 = vmul.f32 %v2001_v45, %v1991_v36 }
 0x81c   :  { %v1968_v30 = vmul.f32 0.5, %v1967_v2 }
 0x81d   :  { %v1993_v39 = vsel %vm291_vm0, %v1992_v22, 0.0 }
 0x81e   :  { %v1994_v3 = vrot.slane %v1993_v39, 4  ;;  %v1969_v25 = vsub.f32 1.5, %v1968_v30 }
 0x820   :  { %v1995_v7 = vadd.f32 %v1994_v3, %v1993_v39  ;;  %v1970_v33 = vmul.f32 %v3412_v57, %v1969_v25 }
 0x822   :  { %v1996_v63 = vrot.slane %v1995_v7, 2  ;;  %v1974_v21 = vsel %vm1973_vm6, %v3412_v57, %v1970_v33 }
 0x823   :  { %v1975_v37 = vmul.f32 %v1974_v21, %v1963_v27 }
 0x824   :  { %v1997_v48 = vadd.f32 %v1996_v63, %v1995_v7 }
 0x825   :  { %v1977_v56 = vadd.f32 %v1976_v1, %v1975_v37 }
 0x826   :  { %v1998_v44 = vrot.slane %v1997_v48, 1 }
 0x827   :  { %v2017_v14 = vpack.c.bf16 %v1977_v56, %v1977_v56 }
 0x828   :  { %v1999_v41 = vadd.f32 %v1998_v44, %v1997_v48  ;;  %v3479_v48 = vld [vmem:[%s5344_s6] ss:$0 sm:$0xff] }
 0x829   :  { %3316 = vmatmul.msk.bf16.vlgmr.msrb.gmra.mxu3 %vm291_vm0, %v2017_v14 }
 0x82a   :  { %v2000_v34 = vmul.f32 %v1999_v41, %v4693_v11 }
 0x82c   :  { %v2003_v5 = vadd.f32 1e-05, %v2000_v34 }
 0x82e   :  { %3413 = vrsqrt.f32 %v2003_v5  ;;  %vm2010_vm8 = vweird.f32 %v2003_v5 }
 0x834   :  { %v3414_v16 = vpop.eup %3413 }
 0x835   :  { %v2005_v10 = vmul.f32 %v3414_v16, %v2003_v5  ;;  %vm2011_vm7 = vweird.f32 %v3414_v16 }
 0x836   :  { %vm2012_vm9 = vmor %vm2010_vm8, %vm2011_vm7 }
 0x837   :  { %v2006_v0 = vmul.f32 %v3414_v16, %v2005_v10 }
 0x839   :  { %v2007_v31 = vmul.f32 0.5, %v2006_v0 }
 0x83b   :  { %v2008_v15 = vsub.f32 1.5, %v2007_v31  ;;  %v5491_v31 = vld [vmem:[#allocation24_spill] sm:$0xff] }
 0x83d   :  { %v2009_v61 = vmul.f32 %v3414_v16, %v2008_v15 }
 0x83f   :  { %v2013_v23 = vsel %vm2012_vm9, %v3414_v16, %v2009_v61 }
 0x840   :  { %v2014_v40 = vmul.f32 %v2013_v23, %v2002_v13 }
 0x842   :  { %v2016_v43 = vadd.f32 %v2015_v29, %v2014_v40 }
 0x844   :  { %v2034_v47 = vpack.c.bf16 %v2016_v43, %v2016_v43 }
 0x846   :  { %3317 = vmatmul.msk.bf16.vlgmr.msrb.gmra.mxu0 %vm291_vm0, %v2034_v47 }
 0x8ac   :  { %v2030_v42 = vpop.f32.mrf.mxu3 }
 0x8ad   :  { %v4732_v12 = vadd.f32 %v3478_v4, %v2030_v42 }
 0x8af   :  { %v2059_v18 = vperm.slane %v4732_v12, 0  ;;  %v4737_v28 = vpack.c.bf16 %v4732_v12, %v4732_v12  ;;  %v2053_v57 = vrot.slane %v4732_v12, 2  ;;  %v2054_v36 = vrot.slane %v4732_v12, 3 }
 0x8b0   :  { %v2052_v2 = vrot.slane %v4732_v12, 1  ;;  %v2056_v30 = vrot.slane %v4732_v12, 5  ;;  %v2057_v7 = vrot.slane %v4732_v12, 6  ;;  %v2055_v33 = vrot.slane %v4732_v12, 4 }
 0x8b1   :  { %2833 = vrot.lane.b32.xlu1 %v2059_v18, %s3540_s19  ;;  %2067 = vrot.lane.b32.xlu2 %v2059_v18, %s3537_s18  ;;  %v2418_v59 = vsel %vm848_vm2, %v4737_v28, 0  ;;  %v2061_v55 = vperm.slane %v2053_v57, 0  ;;  %v2062_v39 = vperm.slane %v2054_v36, 0  ;;  %v2058_v37 = vrot.slane %v4732_v12, 7 }
 0x8b2   :  { %2427 = vmatpush.bf16.msrb.mxu1 %v2418_v59  ;;  %v2060_v3 = vperm.slane %v2052_v2, 0  ;;  %v2064_v25 = vperm.slane %v2056_v30, 0  ;;  %v2065_v27 = vperm.slane %v2057_v7, 0  ;;  %v2063_v63 = vperm.slane %v2055_v33, 0 }
 0x8b3   :  { %2071 = vrot.lane.b32.xlu0 %v2061_v55, %s3537_s18  ;;  %v2066_v41 = vperm.slane %v2058_v37, 0 }
 0x8b4   :  { %v2032_v22 = vpop.f32.mrf.mxu3 }
 0x8b5   :  { %v5492_v22 = vld [vmem:[#allocation27_spill] sm:$0xff] }
 0x8b9   :  { %2073 = vrot.lane.b32.xlu2 %v2062_v39, %s3537_s18  ;;  %2069 = vrot.lane.b32.xlu1 %v2060_v3, %s3537_s18 }
 0x8bb   :  { %2077 = vrot.lane.b32.xlu0 %v2064_v25, %s3537_s18 }
 0x8c1   :  { %2079 = vrot.lane.b32.xlu2 %v2065_v27, %s3537_s18  ;;  %2075 = vrot.lane.b32.xlu1 %v2063_v63, %s3537_s18 }
 0x8c3   :  { %2835 = vrot.lane.b32.xlu0 %v2060_v3, %s3540_s19  ;;  %v2047_v21 = vpop.f32.mrf.mxu0 }
 0x8c4   :  { %v4760_v56 = vadd.f32 %v3479_v48, %v2047_v21 }
 0x8c6   :  { %v3123_v44 = vpack.c.bf16 %v4760_v56, %v4760_v56  ;;  %v2434_v14 = vrot.slane %v4760_v56, 1  ;;  %v2435_v10 = vrot.slane %v4760_v56, 2  ;;  %v2437_v47 = vrot.slane %v4760_v56, 4 }
 0x8c7   :  { %v2441_v42 = vperm.slane %v4760_v56, 0  ;;  %v2436_v59 = vrot.slane %v4760_v56, 3  ;;  %v2439_v2 = vrot.slane %v4760_v56, 6 }
 0x8c8   :  { %v3184_v34 = vsel %vm848_vm2, %v3123_v44, 0  ;;  %v2442_v5 = vperm.slane %v2434_v14, 0  ;;  %v2443_v13 = vperm.slane %v2435_v10, 0  ;;  %v2445_v18 = vperm.slane %v2437_v47, 0  ;;  %v5495_v10 = vld [vmem:[#allocation26_spill] sm:$0xff] }
 0x8c9   :  { %2081 = vrot.lane.b32.xlu1 %v2066_v41, %s3537_s18  ;;  %3193 = vmatpush.bf16.msra.mxu3 %v3184_v34  ;;  %v2457_v57 = vadd.f32 %v2441_v42, %v4732_v12  ;;  %v2447_v7 = vperm.slane %v2439_v2, 0 }
 0x8ca   :  { %v2458_v16 = vadd.f32 %v2442_v5, %v4732_v12  ;;  %v2459_v43 = vadd.f32 %v2443_v13, %v4732_v12  ;;  %v2461_v36 = vadd.f32 %v2445_v18, %v4732_v12 }
 0x8cb   :  { %2839 = vrot.lane.b32.xlu0 %v2062_v39, %s3540_s19  ;;  %v2049_v0 = vpop.f32.mrf.mxu0  ;;  %v2465_v30 = vadd.f32 %v2457_v57, %v5492_v22  ;;  %v2444_v39 = vperm.slane %v2436_v59, 0  ;;  %v2463_v44 = vadd.f32 %v2447_v7, %v4732_v12 }
 0x8cc   :  { %v2466_v15 = vadd.f32 %v2458_v16, %v5491_v31  ;;  %v2467_v4 = vadd.f32 %v2459_v43, %v3848_v20  ;;  %v5493_v20 = vld [vmem:[#allocation25_spill] sm:$0xff] }
 0x8cd   :  { %v2481_v33 = vmul.f32 0.2, %v2465_v30  ;;  %v2460_v21 = vadd.f32 %v2444_v39, %v4732_v12  ;;  %vm2473_vm6 = vcmp.gt.f32.partialorder %v2465_v30, 0.0  ;;  %v2471_v0 = vadd.f32 %v2463_v44, %v5495_v10 }
 0x8ce   :  { %vm2474_vm10 = vcmp.gt.f32.partialorder %v2466_v15, 0.0  ;;  %v2482_v61 = vmul.f32 0.2, %v2466_v15  ;;  %vm2475_vm5 = vcmp.gt.f32.partialorder %v2467_v4, 0.0 }
 0x8cf   :  { %v2489_v14 = vsel %vm2473_vm6, %v2465_v30, %v2481_v33  ;;  %vm2479_vm9 = vcmp.gt.f32.partialorder %v2471_v0, 0.0 }
 0x8d0   :  { %v2490_v23 = vsel %vm2474_vm10, %v2466_v15, %v2482_v61  ;;  %v2497_v31 = vmul.f32 %v2489_v14, %v3827_v6  ;;  %v2440_v61 = vrot.slane %v4760_v56, 7 }
 0x8d1   :  { %2837 = vrot.lane.b32.xlu1 %v2061_v55, %s3540_s19  ;;  %v2498_v40 = vmul.f32 %v2490_v23, %v3827_v6  ;;  %v2483_v55 = vmul.f32 0.2, %v2467_v4  ;;  %v2487_v23 = vmul.f32 0.2, %v2471_v0 }
 0x8d2   :  { %v2448_v47 = vperm.slane %v2440_v61, 0 }
 0x8d3   :  { %2843 = vrot.lane.b32.xlu0 %v2064_v25, %s3540_s19  ;;  %2515 = vrot.lane.b32.xlu2 %v2498_v40, %s3541_s22  ;;  %v2491_v3 = vsel %vm2475_vm5, %v2467_v4, %v2483_v55  ;;  %v2469_v25 = vadd.f32 %v2461_v36, %v5493_v20  ;;  %v2495_v42 = vsel %vm2479_vm9, %v2471_v0, %v2487_v23 }
 0x8d4   :  { %v2499_v37 = vmul.f32 %v2491_v3, %v3827_v6  ;;  %v2464_v57 = vadd.f32 %v2448_v47, %v4732_v12  ;;  %v2503_v59 = vmul.f32 %v2495_v42, %v3827_v6  ;;  %v5500_v47 = vld [vmem:[#allocation32_spill] sm:$0xff] }
 0x8d5   :  { %v2485_v48 = vmul.f32 0.2, %v2469_v25  ;;  %vm2477_vm7 = vcmp.gt.f32.partialorder %v2469_v25, 0.0 }
 0x8d6   :  { %v2472_v36 = vadd.f32 %v2464_v57, %v3869_v60 }
 0x8d7   :  { %v2493_v16 = vsel %vm2477_vm7, %v2469_v25, %v2485_v48 }
 0x8d8   :  { %v2501_v13 = vmul.f32 %v2493_v16, %v3827_v6  ;;  %vm2480_vm5 = vcmp.gt.f32.partialorder %v2472_v36, 0.0 }
 0x8d9   :  { %2841 = vrot.lane.b32.xlu1 %v2063_v63, %s3540_s19  ;;  %v2438_v63 = vrot.slane %v4760_v56, 5 }
 0x8db   :  { %2847 = vrot.lane.b32.xlu0 %v2066_v41, %s3540_s19  ;;  %v5494_v41 = vld [vmem:[#allocation29_spill] sm:$0xff]  ;;  %v2446_v5 = vperm.slane %v2438_v63, 0 }
 0x8dc   :  { %v2468_v34 = vadd.f32 %v2460_v21, %v5494_v41  ;;  %v5496_v21 = vld [vmem:[#allocation31_spill] sm:$0xff] }
 0x8de   :  { %v2484_v15 = vmul.f32 0.2, %v2468_v34  ;;  %vm2476_vm8 = vcmp.gt.f32.partialorder %v2468_v34, 0.0 }
 0x8e0   :  { %v2492_v40 = vsel %vm2476_vm8, %v2468_v34, %v2484_v15 }
 0x8e1   :  { %2845 = vrot.lane.b32.xlu1 %v2065_v27, %s3540_s19  ;;  %v2462_v27 = vadd.f32 %v2446_v5, %v4732_v12  ;;  %v2500_v4 = vmul.f32 %v2492_v40, %v3827_v6 }
 0x8e3   :  { %2517 = vrot.lane.b32.xlu0 %v2499_v37, %s3541_s22  ;;  %v2470_v43 = vadd.f32 %v2462_v27, %v3861_v35  ;;  %v2488_v35 = vmul.f32 0.2, %v2472_v36  ;;  %v5497_v37 = vld [vmem:[#allocation33_spill] sm:$0xff] }
 0x8e5   :  { %v2486_v18 = vmul.f32 0.2, %v2470_v43  ;;  %vm2478_vm10 = vcmp.gt.f32.partialorder %v2470_v43, 0.0  ;;  %v2496_v22 = vsel %vm2480_vm5, %v2472_v36, %v2488_v35 }
 0x8e6   :  { %v2504_v30 = vmul.f32 %v2496_v22, %v3827_v6 }
 0x8e7   :  { %v2494_v55 = vsel %vm2478_vm10, %v2470_v43, %v2486_v18 }
 0x8e8   :  { %v2502_v2 = vmul.f32 %v2494_v55, %v3827_v6  ;;  %v5501_v55 = vld [vmem:[#allocation43_spill] sm:$0xff] }
 0x8e9   :  { %2513 = vrot.lane.b32.xlu1 %v2497_v31, %s3541_s22 }
 0x8eb   :  { %2521 = vrot.lane.b32.xlu0 %v2501_v13, %s3541_s22  ;;  %v5499_v13 = vld [vmem:[#allocation44_spill] sm:$0xff] }
 0x8f1   :  { %2519 = vrot.lane.b32.xlu1 %v2500_v4, %s3541_s22 }
 0x8f3   :  { %2525 = vrot.lane.b32.xlu0 %v2503_v59, %s3541_s22 }
 0x8f9   :  { %2523 = vrot.lane.b32.xlu1 %v2502_v2, %s3541_s22 }
 0x901   :  { %2527 = vrot.lane.b32.xlu1 %v2504_v30, %s3541_s22 }
 0x90b   :  { %v2068_v39 = vpop.permute.xlu2 %2067 }
 0x90c   :  { %v2091_v3 = vadd.f32 %v2068_v39, %v4732_v12 }
 0x90e   :  { %v2099_v20 = vadd.f32 %v2091_v3, %v3881_v38  ;;  %v5498_v38 = vld [vmem:[#allocation36_spill] sm:$0xff] }
 0x910   :  { %v2115_v25 = vmul.f32 0.2, %v2099_v20  ;;  %vm2107_vm6 = vcmp.gt.f32.partialorder %v2099_v20, 0.0 }
 0x912   :  { %v2123_v33 = vsel %vm2107_vm6, %v2099_v20, %v2115_v25  ;;  %v5502_v20 = vld [vmem:[#allocation30_spill] sm:$0xff] }
 0x913   :  { %v2074_v7 = vpop.permute.xlu2 %2073  ;;  %v2131_v48 = vmul.f32 %v2123_v33, %v5497_v37 }
 0x914   :  { %v2094_v60 = vadd.f32 %v2074_v7, %v4732_v12 }
 0x915   :  { %v2139_v41 = vsel %vm291_vm0, %v2131_v48, 0.0 }
 0x916   :  { %v2102_v63 = vadd.f32 %v2094_v60, %v5496_v21  ;;  %v5503_v21 = vld [vmem:[#allocation34_spill] sm:$0xff] }
 0x918   :  { %v2118_v44 = vmul.f32 0.2, %v2102_v63  ;;  %vm2110_vm7 = vcmp.gt.f32.partialorder %v2102_v63, 0.0 }
 0x91a   :  { %v2126_v34 = vsel %vm2110_vm7, %v2102_v63, %v2118_v44 }
 0x91b   :  { %v2080_v6 = vpop.permute.xlu2 %2079  ;;  %v2134_v16 = vmul.f32 %v2126_v34, %v5497_v37 }
 0x91c   :  { %v2097_v14 = vadd.f32 %v2080_v6, %v4732_v12 }
 0x91d   :  { %2140 = vadd.xlane.f32.xlu0 %v2139_v41  ;;  %v2148_v15 = vsel %vm291_vm0, %v2134_v16, 0.0 }
 0x91e   :  { %v2105_v5 = vadd.f32 %v2097_v14, %v5498_v38 }
 0x920   :  { %v2121_v10 = vmul.f32 0.2, %v2105_v5  ;;  %vm2113_vm8 = vcmp.gt.f32.partialorder %v2105_v5, 0.0 }
 0x922   :  { %v2129_v61 = vsel %vm2113_vm8, %v2105_v5, %v2121_v10  ;;  %v5504_v10 = vld [vmem:[#allocation35_spill] sm:$0xff] }
 0x923   :  { %v2834_v0 = vpop.permute.xlu1 %2833  ;;  %v2137_v4 = vmul.f32 %v2129_v61, %v5497_v37  ;;  %v5505_v61 = vld [vmem:[#allocation42_spill] sm:$0xff] }
 0x924   :  { %v2857_v31 = vadd.f32 %v2834_v0, %v4760_v56 }
 0x925   :  { %v2072_v27 = vpop.permute.xlu0 %2071  ;;  %2149 = vadd.xlane.f32.xlu0 %v2148_v15  ;;  %v2157_v35 = vsel %vm291_vm0, %v2137_v4, 0.0 }
 0x926   :  { %v2865_v23 = vadd.f32 %v2857_v31, %v5499_v13  ;;  %v2093_v40 = vadd.f32 %v2072_v27, %v4732_v12 }
 0x928   :  { %v2881_v43 = vmul.f32 0.2, %v2865_v23  ;;  %v2101_v42 = vadd.f32 %v2093_v40, %v5500_v47  ;;  %vm2873_vm9 = vcmp.gt.f32.partialorder %v2865_v23, 0.0 }
 0x92a   :  { %v2117_v18 = vmul.f32 0.2, %v2101_v42  ;;  %v2889_v57 = vsel %vm2873_vm9, %v2865_v23, %v2881_v43  ;;  %vm2109_vm10 = vcmp.gt.f32.partialorder %v2101_v42, 0.0 }
 0x92b   :  { %v2070_v59 = vpop.permute.xlu1 %2069  ;;  %v2897_v36 = vmul.f32 %v2889_v57, %v5501_v55 }
 0x92c   :  { %v2092_v2 = vadd.f32 %v2070_v59, %v4732_v12  ;;  %v2125_v22 = vsel %vm2109_vm10, %v2101_v42, %v2117_v18 }
 0x92d   :  { %v2078_v30 = vpop.permute.xlu0 %2077  ;;  %2158 = vadd.xlane.f32.xlu0 %v2157_v35  ;;  %v2905_v39 = vsel %vm291_vm0, %v2897_v36, 0.0  ;;  %v2133_v3 = vmul.f32 %v2125_v22, %v5497_v37  ;;  %v5506_v36 = vld [vmem:[#allocation37_spill] sm:$0xff] }
 0x92e   :  { %v2100_v25 = vadd.f32 %v2092_v2, %v5502_v20  ;;  %v2096_v7 = vadd.f32 %v2078_v30, %v4732_v12  ;;  %2906 = vadd.xlane.f32.xlu2 %v2905_v39 }
 0x92f   :  { %v2145_v60 = vsel %vm291_vm0, %v2133_v3, 0.0 }
 0x930   :  { %v2116_v33 = vmul.f32 0.2, %v2100_v25  ;;  %v2104_v63 = vadd.f32 %v2096_v7, %v5503_v21  ;;  %2146 = vadd.xlane.f32.xlu1 %v2145_v60  ;;  %vm2108_vm5 = vcmp.gt.f32.partialorder %v2100_v25, 0.0  ;;  %v5507_v60 = vld [vmem:[#allocation47_spill] sm:$0xff]  ;;  %v5508_v21 = vld [vmem:[#allocation46_spill] sm:$0xff] }
 0x932   :  { %v2120_v48 = vmul.f32 0.2, %v2104_v63  ;;  %v2124_v44 = vsel %vm2108_vm5, %v2100_v25, %v2116_v33  ;;  %vm2112_vm6 = vcmp.gt.f32.partialorder %v2104_v63, 0.0 }
 0x933   :  { %v2076_v6 = vpop.permute.xlu1 %2075  ;;  %v2132_v14 = vmul.f32 %v2124_v44, %v5497_v37 }
 0x934   :  { %v2095_v41 = vadd.f32 %v2076_v6, %v4732_v12  ;;  %v2128_v34 = vsel %vm2112_vm6, %v2104_v63, %v2120_v48  ;;  %v5509_v6 = vld [vmem:[#allocation48_spill] sm:$0xff] }
 0x935   :  { %v2836_v38 = vpop.permute.xlu0 %2835  ;;  %v2142_v5 = vsel %vm291_vm0, %v2132_v14, 0.0  ;;  %v2136_v16 = vmul.f32 %v2128_v34, %v5497_v37 }
 0x936   :  { %v2103_v0 = vadd.f32 %v2095_v41, %v5504_v10  ;;  %v2858_v31 = vadd.f32 %v2836_v38, %v4760_v56  ;;  %2143 = vadd.xlane.f32.xlu2 %v2142_v5 }
 0x937   :  { %v2154_v15 = vsel %vm291_vm0, %v2136_v16, 0.0 }
 0x938   :  { %v2119_v27 = vmul.f32 0.2, %v2103_v0  ;;  %v2866_v13 = vadd.f32 %v2858_v31, %v5505_v61  ;;  %2155 = vadd.xlane.f32.xlu1 %v2154_v15  ;;  %vm2111_vm7 = vcmp.gt.f32.partialorder %v2103_v0, 0.0 }
 0x93a   :  { %v2882_v23 = vmul.f32 0.2, %v2866_v13  ;;  %v2127_v40 = vsel %vm2111_vm7, %v2103_v0, %v2119_v27  ;;  %vm2874_vm8 = vcmp.gt.f32.partialorder %v2866_v13, 0.0  ;;  %v5510_v27 = vld [vmem:[#allocation52_spill] sm:$0xff] }
 0x93b   :  { %v2082_v43 = vpop.permute.xlu1 %2081  ;;  %v2135_v47 = vmul.f32 %v2127_v40, %v5497_v37 }
 0x93c   :  { %v2098_v42 = vadd.f32 %v2082_v43, %v4732_v12  ;;  %v2890_v4 = vsel %vm2874_vm8, %v2866_v13, %v2882_v23 }
 0x93d   :  { %v2840_v18 = vpop.permute.xlu0 %2839  ;;  %v2151_v57 = vsel %vm291_vm0, %v2135_v47, 0.0  ;;  %v2898_v59 = vmul.f32 %v2890_v4, %v5501_v55  ;;  %v5511_v47 = vld [vmem:[#allocation55_spill] sm:$0xff] }
 0x93e   :  { %v2106_v2 = vadd.f32 %v2098_v42, %v5506_v36  ;;  %2152 = vadd.xlane.f32.xlu2 %v2151_v57  ;;  %v2860_v30 = vadd.f32 %v2840_v18, %v4760_v56 }
 0x93f   :  { %v2908_v35 = vsel %vm291_vm0, %v2898_v59, 0.0 }
 0x940   :  { %v2122_v22 = vmul.f32 0.2, %v2106_v2  ;;  %2909 = vadd.xlane.f32.xlu0 %v2908_v35  ;;  %vm2114_vm9 = vcmp.gt.f32.partialorder %v2106_v2, 0.0  ;;  %v2868_v33 = vadd.f32 %v2860_v30, %v5507_v60  ;;  %v5512_v30 = vld [vmem:[#allocation54_spill] sm:$0xff] }
 0x942   :  { %v2130_v39 = vsel %vm2114_vm9, %v2106_v2, %v2122_v22  ;;  %v2884_v41 = vmul.f32 0.2, %v2868_v33  ;;  %vm2876_vm6 = vcmp.gt.f32.partialorder %v2868_v33, 0.0 }
 0x943   :  { %v2838_v3 = vpop.permute.xlu1 %2837  ;;  %v2138_v12 = vmul.f32 %v2130_v39, %v5497_v37 }
 0x944   :  { %v2859_v20 = vadd.f32 %v2838_v3, %v4760_v56  ;;  %v2892_v23 = vsel %vm2876_vm6, %v2868_v33, %v2884_v41 }
 0x945   :  { %v2844_v25 = vpop.permute.xlu0 %2843  ;;  %v2160_v7 = vsel %vm291_vm0, %v2138_v12, 0.0  ;;  %v2900_v4 = vmul.f32 %v2892_v23, %v5501_v55 }
 0x946   :  { %v2867_v63 = vadd.f32 %v2859_v20, %v5508_v21  ;;  %v2862_v48 = vadd.f32 %v2844_v25, %v4760_v56  ;;  %2161 = vadd.xlane.f32.xlu2 %v2160_v7 }
 0x947   :  { %v2914_v35 = vsel %vm291_vm0, %v2900_v4, 0.0  ;;  %v5516_v4 = vld [vmem:[#allocation12_spill] sm:$0xff] }
 0x948   :  { %v2883_v44 = vmul.f32 0.2, %v2867_v63  ;;  %v2870_v14 = vadd.f32 %v2862_v48, %v5509_v6  ;;  %vm2875_vm10 = vcmp.gt.f32.partialorder %v2867_v63, 0.0 }
 0x94a   :  { %v2886_v34 = vmul.f32 0.2, %v2870_v14  ;;  %v2891_v38 = vsel %vm2875_vm10, %v2867_v63, %v2883_v44  ;;  %vm2878_vm5 = vcmp.gt.f32.partialorder %v2870_v14, 0.0  ;;  %v2516_v44 = vpop.permute.xlu2 %2515 }
 0x94b   :  { %v2842_v37 = vpop.permute.xlu1 %2841  ;;  %v2899_v5 = vmul.f32 %v2891_v38, %v5501_v55 }
 0x94c   :  { %v2861_v16 = vadd.f32 %v2842_v37, %v4760_v56  ;;  %v2894_v10 = vsel %vm2878_vm5, %v2870_v14, %v2886_v34  ;;  %v2540_v34 = vsel %vm291_vm0, %v2516_v44, 0.0  ;;  %v5523_v44 = vld [vmem:[#allocation61_spill] sm:$0xff] }
 0x94d   :  { %v2848_v0 = vpop.permute.xlu0 %2847  ;;  %v2911_v31 = vsel %vm291_vm0, %v2899_v5, 0.0  ;;  %v2902_v15 = vmul.f32 %v2894_v10, %v5501_v55 }
 0x94e   :  { %v2869_v61 = vadd.f32 %v2861_v16, %v5510_v27  ;;  %v2864_v13 = vadd.f32 %v2848_v0, %v4760_v56  ;;  %2912 = vadd.xlane.f32.xlu1 %v2911_v31 }
 0x94f   :  { %v2920_v40 = vsel %vm291_vm0, %v2902_v15, 0.0  ;;  %v5513_v15 = vld [vmem:[#allocation18_spill] sm:$0xff] }
 0x950   :  { %v2885_v43 = vmul.f32 0.2, %v2869_v61  ;;  %v2872_v42 = vadd.f32 %v2864_v13, %v5511_v47  ;;  %2921 = vadd.xlane.f32.xlu2 %v2920_v40  ;;  %vm2877_vm7 = vcmp.gt.f32.partialorder %v2869_v61, 0.0  ;;  %v5514_v13 = vld [vmem:[#allocation63_spill] sm:$0xff] }
 0x952   :  { %v2888_v18 = vmul.f32 0.2, %v2872_v42  ;;  %v2893_v57 = vsel %vm2877_vm7, %v2869_v61, %v2885_v43  ;;  %vm2880_vm8 = vcmp.gt.f32.partialorder %v2872_v42, 0.0  ;;  %v5515_v43 = vld [vmem:[#allocation9_spill] sm:$0xff] }
 0x953   :  { %v2846_v59 = vpop.permute.xlu1 %2845  ;;  %v2901_v36 = vmul.f32 %v2893_v57, %v5501_v55 }
 0x954   :  { %v2863_v2 = vadd.f32 %v2846_v59, %v4760_v56  ;;  %v2896_v12 = vsel %vm2880_vm8, %v2872_v42, %v2888_v18  ;;  %v5517_v59 = vld [vmem:[#allocation22_spill] sm:$0xff] }
 0x955   :  { %v2917_v22 = vsel %vm291_vm0, %v2901_v36, 0.0  ;;  %v2518_v3 = vpop.permute.xlu0 %2517  ;;  %v2904_v25 = vmul.f32 %v2896_v12, %v5501_v55 }
 0x956   :  { %v2871_v39 = vadd.f32 %v2863_v2, %v5512_v30  ;;  %2915 = vadd.xlane.f32.xlu1 %v2914_v35  ;;  %2918 = vadd.xlane.f32.xlu0 %v2917_v22  ;;  %v2543_v14 = vsel %vm291_vm0, %v2518_v3, 0.0  ;;  %v5518_v22 = vld [vmem:[#allocation20_spill] sm:$0xff] }
 0x957   :  { %v2926_v63 = vsel %vm291_vm0, %v2904_v25, 0.0  ;;  %v5520_v25 = vld [vmem:[#allocation10_spill] sm:$0xff] }
 0x958   :  { %v2887_v20 = vmul.f32 0.2, %v2871_v39  ;;  %vm2879_vm9 = vcmp.gt.f32.partialorder %v2871_v39, 0.0 }
 0x95a   :  { %v2895_v7 = vsel %vm2879_vm9, %v2871_v39, %v2887_v20  ;;  %v5519_v39 = vld [vmem:[#allocation14_spill] sm:$0xff] }
 0x95b   :  { %v2514_v60 = vpop.permute.xlu1 %2513  ;;  %v2903_v33 = vmul.f32 %v2895_v7, %v5501_v55 }
 0x95c   :  { %v2537_v56 = vsel %vm291_vm0, %v2514_v60, 0.0  ;;  %v5521_v60 = vld [vmem:[#allocation16_spill] sm:$0xff] }
 0x95d   :  { %2538 = vadd.xlane.f32.xlu2 %v2537_v56  ;;  %v2923_v21 = vsel %vm291_vm0, %v2903_v33, 0.0  ;;  %v2522_v48 = vpop.permute.xlu0 %2521 }
 0x95e   :  { %2924 = vadd.xlane.f32.xlu1 %v2923_v21  ;;  %2927 = vadd.xlane.f32.xlu0 %v2926_v63  ;;  %v2549_v5 = vsel %vm291_vm0, %v2522_v48, 0.0  ;;  %v5522_v63 = vld [vmem:[#allocation62_spill] sm:$0xff] }
 0x963   :  { %v2520_v6 = vpop.permute.xlu1 %2519 }
 0x964   :  { %v2546_v41 = vsel %vm291_vm0, %v2520_v6, 0.0 }
 0x965   :  { %2544 = vadd.xlane.f32.xlu2 %v2543_v14  ;;  %v2526_v55 = vpop.permute.xlu0 %2525 }
 0x966   :  { %2547 = vadd.xlane.f32.xlu1 %v2546_v41  ;;  %2541 = vadd.xlane.f32.xlu0 %v2540_v34  ;;  %v2555_v16 = vsel %vm291_vm0, %v2526_v55, 0.0  ;;  %v5524_v55 = vld [vmem:[#allocation65_spill] sm:$0xff] }
 0x96b   :  { %v2524_v38 = vpop.permute.xlu1 %2523 }
 0x96c   :  { %v2552_v37 = vsel %vm291_vm0, %v2524_v38, 0.0 }
 0x96d   :  { %2553 = vadd.xlane.f32.xlu2 %v2552_v37  ;;  %v5525_v37 = vld [vmem:[#allocation64_spill] sm:$0xff] }
 0x96e   :  { %2556 = vadd.xlane.f32.xlu1 %v2555_v16  ;;  %2550 = vadd.xlane.f32.xlu0 %v2549_v5  ;;  %v5526_v16 = vld [vmem:[#allocation66_spill] sm:$0xff] }
 0x973   :  { %v2528_v10 = vpop.permute.xlu1 %2527 }
 0x974   :  { %v2558_v0 = vsel %vm291_vm0, %v2528_v10, 0.0 }
 0x975   :  { %2559 = vadd.xlane.f32.xlu2 %v2558_v0 }
 0x990   :  { %v2141_v31 = vpop.xlane.xlu0 %2140 }
 0x991   :  { %v4885_v27 = vadd.f32 %v2141_v31, %v5513_v15 }
 0x993   :  { %2180 = vperm.xlu1 %3351, %v4885_v27  }
 0x998   :  { %v2150_v2 = vpop.xlane.xlu0 %2149 }
 0x999   :  { %v4905_v30 = vadd.f32 %v2150_v2, %v5518_v22  ;;  %v5530_v2 = vld [vmem:[#allocation49_spill] sm:$0xff]  ;;  %v5531_v22 = vld [vmem:[#allocation38_spill] sm:$0xff] }
 0x9a0   :  { %v2159_v12 = vpop.xlane.xlu0 %2158 }
 0x9a1   :  { %v2907_v61 = vpop.xlane.xlu2 %2906  ;;  %v4913_v7 = vadd.f32 %v2159_v12, %v5520_v25  ;;  %v5532_v25 = vld [vmem:[#allocation51_spill] sm:$0xff] }
 0x9a2   :  { %v4889_v23 = vadd.f32 %v2907_v61, %v5514_v13  ;;  %v5527_v61 = vld [vmem:[#allocation68_spill] sm:$0xff] }
 0x9a3   :  { %v2147_v40 = vpop.xlane.xlu1 %2146 }
 0x9a4   :  { %v4892_v47 = vadd.f32 %v2147_v40, %v5515_v43  ;;  %2946 = vperm.xlu0 %3346, %v4889_v23   ;;  %v5528_v40 = vld [vmem:[#allocation67_spill] sm:$0xff] }
 0x9a6   :  { %2186 = vperm.xlu2 %3350, %v4892_v47  }
 0x9a9   :  { %v2144_v42 = vpop.xlane.xlu2 %2143 }
 0x9aa   :  { %v4897_v18 = vadd.f32 %v2144_v42, %v5516_v4  ;;  %v5529_v4 = vld [vmem:[#allocation39_spill] sm:$0xff] }
 0x9ab   :  { %v2156_v57 = vpop.xlane.xlu1 %2155 }
 0x9ac   :  { %v4900_v36 = vadd.f32 %v2156_v57, %v5517_v59  ;;  %2183 = vperm.xlu0 %3346, %v4897_v18  }
 0x9ae   :  { %2195 = vperm.xlu2 %3350, %v4900_v36  }
 0x9b1   :  { %v2153_v35 = vpop.xlane.xlu2 %2152 }
 0x9b2   :  { %v4908_v3 = vadd.f32 %v2153_v35, %v5519_v39 }
 0x9b3   :  { %v2910_v56 = vpop.xlane.xlu0 %2909 }
 0x9b4   :  { %2189 = vperm.xlu0 %3346, %v4905_v30   ;;  %2192 = vperm.xlu1 %3351, %v4908_v3   ;;  %v4921_v48 = vadd.f32 %v2910_v56, %v5522_v63 }
 0x9b9   :  { %v2162_v20 = vpop.xlane.xlu2 %2161 }
 0x9ba   :  { %v4916_v33 = vadd.f32 %v2162_v20, %v5521_v60 }
 0x9bc   :  { %2198 = vperm.xlu0 %3346, %v4913_v7   ;;  %2201 = vperm.xlu1 %3351, %v4916_v33  }
 0x9c1   :  { %v2913_v21 = vpop.xlane.xlu1 %2912 }
 0x9c2   :  { %v4924_v6 = vadd.f32 %v2913_v21, %v5523_v44  ;;  %v5533_v21 = vld [vmem:[#allocation50_spill] sm:$0xff]  ;;  %v5534_v44 = vld [vmem:[#allocation45_spill] sm:$0xff] }
 0x9c3   :  { %v2922_v14 = vpop.xlane.xlu2 %2921 }
 0x9c4   :  { %2952 = vperm.xlu2 %3350, %v4924_v6   ;;  %2949 = vperm.xlu1 %3351, %v4921_v48   ;;  %v4935_v10 = vadd.f32 %v2922_v14, %v5526_v16  ;;  %v5536_v16 = vld [vmem:[#allocation60_spill] sm:$0xff] }
 0x9c9   :  { %v2916_v41 = vpop.xlane.xlu1 %2915  ;;  %v2919_v34 = vpop.xlane.xlu0 %2918 }
 0x9ca   :  { %v4929_v38 = vadd.f32 %v2916_v41, %v5524_v55  ;;  %v4932_v5 = vadd.f32 %v2919_v34, %v5525_v37  ;;  %v5535_v55 = vld [vmem:[#allocation53_spill] sm:$0xff] }
 0x9cc   :  { %2955 = vperm.xlu0 %3346, %v4929_v38   ;;  %2958 = vperm.xlu1 %3351, %v4932_v5  }
 0x9cd   :  { %2961 = vperm.xlu2 %3350, %v4935_v10  }
 0x9d0   :  { %v2539_v0 = vpop.xlane.xlu2 %2538 }
 0x9d1   :  { %v2925_v31 = vpop.xlane.xlu1 %2924  ;;  %v2928_v15 = vpop.xlane.xlu0 %2927  ;;  %v4952_v35 = vadd.f32 %v2539_v0, %v5530_v2 }
 0x9d2   :  { %v4941_v13 = vadd.f32 %v2925_v31, %v5527_v61  ;;  %v4944_v43 = vadd.f32 %v2928_v15, %v5528_v40 }
 0x9d4   :  { %2964 = vperm.xlu0 %3346, %v4941_v13   ;;  %2967 = vperm.xlu1 %3351, %v4944_v43  }
 0x9d8   :  { %v2545_v42 = vpop.xlane.xlu2 %2544 }
 0x9d9   :  { %v4949_v57 = vadd.f32 %v2545_v42, %v5529_v4  ;;  %v2542_v59 = vpop.xlane.xlu0 %2541  ;;  %v2548_v12 = vpop.xlane.xlu1 %2547 }
 0x9da   :  { %v4955_v39 = vadd.f32 %v2542_v59, %v5531_v22  ;;  %v4964_v63 = vadd.f32 %v2548_v12, %v5533_v21 }
 0x9db   :  { %2584 = vperm.xlu2 %3350, %v4949_v57  }
 0x9dc   :  { %2581 = vperm.xlu1 %3351, %v4955_v39   ;;  %2578 = vperm.xlu0 %3346, %v4952_v35  }
 0x9e0   :  { %v2554_v20 = vpop.xlane.xlu2 %2553 }
 0x9e1   :  { %v4961_v60 = vadd.f32 %v2554_v20, %v5532_v25  ;;  %v2551_v56 = vpop.xlane.xlu0 %2550  ;;  %v2557_v41 = vpop.xlane.xlu1 %2556 }
 0x9e2   :  { %v4967_v14 = vadd.f32 %v2551_v56, %v5534_v44  ;;  %v4976_v0 = vadd.f32 %v2557_v41, %v5536_v16 }
 0x9e3   :  { %2593 = vperm.xlu2 %3350, %v4961_v60  }
 0x9e4   :  { %2590 = vperm.xlu1 %3351, %v4967_v14   ;;  %2587 = vperm.xlu0 %3346, %v4964_v63  }
 0x9e8   :  { %v2560_v34 = vpop.xlane.xlu2 %2559 }
 0x9e9   :  { %v4973_v37 = vadd.f32 %v2560_v34, %v5535_v55 }
 0x9eb   :  { %2599 = vperm.xlu2 %3350, %v4973_v37  }
 0x9ec   :  { %2596 = vperm.xlu0 %3346, %v4976_v0  }
 0xa00   :  { %v2187_v40 = vpop.permute.xlu2 %2186 }
 0xa01   :  { %v2205_v12 = vperm.slane %v2187_v40, %v4106_v8 }
 0xa05   :  { %v2181_v15 = vpop.permute.xlu1 %2180 }
 0xa06   :  { %v2203_v4 = vperm.slane %v2181_v15, %v4106_v8 }
 0xa08   :  { %v2196_v44 = vpop.permute.xlu2 %2195 }
 0xa09   :  { %v2208_v34 = vperm.slane %v2196_v44, %v4106_v8 }
 0xa16   :  { %v2947_v31 = vpop.permute.xlu0 %2946 }
 0xa1e   :  { %v2184_v61 = vpop.permute.xlu0 %2183 }
 0xa1f   :  { %v2204_v42 = vperm.slane %v2184_v61, %v4106_v8 }
 0xa21   :  { %v2211_v59 = vsel %vm568_vm11, %v2204_v42, %v2203_v4 }
 0xa22   :  { %v2212_v25 = vsel %vm570_vm12, %v2205_v12, %v2211_v59 }
 0xa26   :  { %v2190_v2 = vpop.permute.xlu0 %2189  ;;  %v2193_v22 = vpop.permute.xlu1 %2192 }
 0xa27   :  { %v2206_v20 = vperm.slane %v2190_v2, %v4106_v8  ;;  %v2207_v56 = vperm.slane %v2193_v22, %v4106_v8  ;;  %v2953_v22 = vpop.permute.xlu2 %2952 }
 0xa28   :  { %v2971_v44 = vperm.slane %v2953_v22, %v4106_v8 }
 0xa29   :  { %v2213_v21 = vsel %vm572_vm13, %v2206_v20, %v2212_v25  ;;  %v2969_v20 = vperm.slane %v2947_v31, %v4106_v8 }
 0xa2a   :  { %v2214_v41 = vsel %vm574_vm14, %v2207_v56, %v2213_v21 }
 0xa2b   :  { %v2215_v40 = vsel %vm576_vm15, %v2208_v34, %v2214_v41 }
 0xa2e   :  { %v2199_v55 = vpop.permute.xlu0 %2198  ;;  %v2202_v16 = vpop.permute.xlu1 %2201 }
 0xa2f   :  { %v2209_v15 = vperm.slane %v2199_v55, %v4106_v8  ;;  %v2210_v61 = vperm.slane %v2202_v16, %v4106_v8  ;;  %v2962_v34 = vpop.permute.xlu2 %2961 }
 0xa31   :  { %v2216_v42 = vsel %vm578_vm1, %v2209_v15, %v2215_v40  ;;  %v2974_v40 = vperm.slane %v2962_v34, %v4106_v8 }
 0xa32   :  { %v2217_v4 = vsel %vm580_vm3, %v2210_v61, %v2216_v42 }
 0xa33   :  { %v2219_v59 = vsel %vm583_vm4, %v2217_v4, -inf }
 0xa34   :  { %2220 = vmax.xlane.f32.xlu2 %v2219_v59 }
 0xa36   :  { %v2950_v2 = vpop.permute.xlu1 %2949 }
 0xa37   :  { %v2970_v12 = vperm.slane %v2950_v2, %v4106_v8  ;;  %v2585_v22 = vpop.permute.xlu2 %2584 }
 0xa39   :  { %v2977_v25 = vsel %vm568_vm11, %v2970_v12, %v2969_v20 }
 0xa3a   :  { %v2978_v55 = vsel %vm570_vm12, %v2971_v44, %v2977_v25 }
 0xa3e   :  { %v2956_v56 = vpop.permute.xlu0 %2955  ;;  %v2959_v21 = vpop.permute.xlu1 %2958 }
 0xa3f   :  { %v2972_v41 = vperm.slane %v2956_v56, %v4106_v8  ;;  %v2973_v16 = vperm.slane %v2959_v21, %v4106_v8  ;;  %v2594_v34 = vpop.permute.xlu2 %2593 }
 0xa41   :  { %v2979_v15 = vsel %vm572_vm13, %v2972_v41, %v2978_v55 }
 0xa42   :  { %v2980_v61 = vsel %vm574_vm14, %v2973_v16, %v2979_v15 }
 0xa43   :  { %v2981_v2 = vsel %vm576_vm15, %v2974_v40, %v2980_v61  ;;  %v2603_v61 = vperm.slane %v2585_v22, %v4106_v8 }
 0xa46   :  { %v2965_v31 = vpop.permute.xlu0 %2964  ;;  %v2968_v42 = vpop.permute.xlu1 %2967 }
 0xa47   :  { %v2975_v4 = vperm.slane %v2965_v31, %v4106_v8  ;;  %v2976_v59 = vperm.slane %v2968_v42, %v4106_v8 }
 0xa49   :  { %v2982_v12 = vsel %vm578_vm1, %v2975_v4, %v2981_v2 }
 0xa4a   :  { %v2983_v20 = vsel %vm580_vm3, %v2976_v59, %v2982_v12  ;;  %v2600_v59 = vpop.permute.xlu2 %2599  ;;  %v2606_v12 = vperm.slane %v2594_v34, %v4106_v8 }
 0xa4b   :  { %v2985_v25 = vsel %vm583_vm4, %v2983_v20, -inf }
 0xa4c   :  { %2986 = vmax.xlane.f32.xlu1 %v2985_v25 }
 0xa4e   :  { %v2582_v56 = vpop.permute.xlu1 %2581  ;;  %v2579_v21 = vpop.permute.xlu0 %2578 }
 0xa4f   :  { %v2602_v44 = vperm.slane %v2582_v56, %v4106_v8  ;;  %v2601_v41 = vperm.slane %v2579_v21, %v4106_v8  ;;  %v2608_v56 = vperm.slane %v2600_v59, %v4106_v8 }
 0xa51   :  { %v2609_v55 = vsel %vm568_vm11, %v2602_v44, %v2601_v41 }
 0xa52   :  { %v2610_v42 = vsel %vm570_vm12, %v2603_v61, %v2609_v55 }
 0xa56   :  { %v2591_v16 = vpop.permute.xlu1 %2590  ;;  %v2588_v15 = vpop.permute.xlu0 %2587 }
 0xa57   :  { %v2604_v40 = vperm.slane %v2588_v15, %v4106_v8  ;;  %v2605_v31 = vperm.slane %v2591_v16, %v4106_v8 }
 0xa59   :  { %v2611_v4 = vsel %vm572_vm13, %v2604_v40, %v2610_v42  ;;  %v5537_v40 = vld [vmem:[#allocation11_spill] sm:$0xff] }
 0xa5a   :  { %v2612_v2 = vsel %vm574_vm14, %v2605_v31, %v2611_v4 }
 0xa5b   :  { %v2613_v22 = vsel %vm576_vm15, %v2606_v12, %v2612_v2 }
 0xa5e   :  { %v2597_v20 = vpop.permute.xlu0 %2596 }
 0xa5f   :  { %v2607_v25 = vperm.slane %v2597_v20, %v4106_v8 }
 0xa61   :  { %v2614_v21 = vsel %vm578_vm1, %v2607_v25, %v2613_v22 }
 0xa62   :  { %v2615_v44 = vsel %vm580_vm3, %v2608_v56, %v2614_v21 }
 0xa63   :  { %v2617_v41 = vsel %vm583_vm4, %v2615_v44, -inf }
 0xa64   :  { %2618 = vmax.xlane.f32.xlu0 %v2617_v41 }
 0xaa7   :  { %v5028_v55 = vpop.xlane.xlu2 %2220 }
 0xaa8   :  { %v2223_v16 = vperm.slane %v5028_v55, 0  ;;  %v2227_v22 = vperm.slane %v5028_v55, 4 }
 0xaaa   :  { %v2239_v34 = vsub.f32 %v4885_v27, %v2223_v16 }
 0xaac   :  { %v2247_v15 = vmul.f32 1.442695, %v2239_v34 }
 0xaae   :  { %3415 = vpow2.f32 %v2247_v15  ;;  %v2243_v15 = vsub.f32 %v4908_v3, %v2227_v22 }
 0xab4   :  { %v3416_v61 = vpop.eup %3415 }
 0xab5   :  { %v5033_v31 = vmul.f32 %v3416_v61, %v5537_v40 }
 0xab7   :  { %2280 = vperm.xlu0 %3346, %v5033_v31  }
 0xabf   :  { %v2987_v42 = vpop.xlane.xlu1 %2986 }
 0xac0   :  { %v2992_v4 = vperm.slane %v2987_v42, 3  ;;  %v2989_v59 = vperm.slane %v2987_v42, 0  ;;  %v2993_v2 = vperm.slane %v2987_v42, 4  ;;  %v2995_v12 = vperm.slane %v2987_v42, 6 }
 0xac1   :  { %v2990_v20 = vperm.slane %v2987_v42, 1 }
 0xac2   :  { %v3008_v25 = vsub.f32 %v4929_v38, %v2992_v4  ;;  %v3005_v56 = vsub.f32 %v4889_v23, %v2989_v59  ;;  %v3009_v27 = vsub.f32 %v4932_v5, %v2993_v2  ;;  %v3011_v16 = vsub.f32 %v4941_v13, %v2995_v12 }
 0xac3   :  { %v3006_v34 = vsub.f32 %v4921_v48, %v2990_v20  ;;  %v2996_v38 = vperm.slane %v2987_v42, 7  ;;  %v2991_v23 = vperm.slane %v2987_v42, 2  ;;  %v2255_v4 = vmul.f32 1.442695, %v2243_v15 }
 0xac4   :  { %v3019_v21 = vmul.f32 1.442695, %v3008_v25  ;;  %v3013_v44 = vmul.f32 1.442695, %v3005_v56  ;;  %v3021_v41 = vmul.f32 1.442695, %v3009_v27 }
 0xac5   :  { %v3025_v61 = vmul.f32 1.442695, %v3011_v16  ;;  %v3015_v40 = vmul.f32 1.442695, %v3006_v34  ;;  %v2230_v5 = vperm.slane %v5028_v55, 7  ;;  %v3012_v2 = vsub.f32 %v4944_v43, %v2996_v38  ;;  %v5538_v34 = vld [vmem:[#allocation15_spill] sm:$0xff] }
 0xac6   :  { %3417 = vpow2.f32 %v3019_v21  ;;  %v3007_v3 = vsub.f32 %v4924_v6, %v2991_v23  ;;  %v2994_v27 = vperm.slane %v2987_v42, 5 }
 0xac7   :  { %3419 = vpow2.f32 %v3013_v44  ;;  %v2246_v20 = vsub.f32 %v4916_v33, %v2230_v5  ;;  %v3027_v43 = vmul.f32 1.442695, %v3012_v2 }
 0xac8   :  { %3421 = vpow2.f32 %v3021_v41  ;;  %v3017_v6 = vmul.f32 1.442695, %v3007_v3 }
 0xac9   :  { %3423 = vpow2.f32 %v3025_v61  ;;  %v2228_v61 = vperm.slane %v5028_v55, 5 }
 0xaca   :  { %3425 = vpow2.f32 %v3015_v40 }
 0xacb   :  { %3427 = vpow2.f32 %v2255_v4  ;;  %v2244_v2 = vsub.f32 %v4900_v36, %v2228_v61 }
 0xacc   :  { %v3418_v59 = vpop.eup %3417  ;;  %3429 = vpow2.f32 %v3027_v43 }
 0xacd   :  { %v3420_v25 = vpop.eup %3419  ;;  %v5046_v13 = vmul.f32 %v3418_v59, %v4429_v46  ;;  %v2226_v46 = vperm.slane %v5028_v55, 3  ;;  %3431 = vpow2.f32 %v3017_v6  ;;  %v2257_v36 = vmul.f32 1.442695, %v2244_v2 }
 0xace   :  { %v3422_v48 = vpop.eup %3421  ;;  %v5050_v12 = vmul.f32 %v3420_v25, %v4407_v50  ;;  %v2261_v50 = vmul.f32 1.442695, %v2246_v20  ;;  %v5539_v20 = vld [vmem:[#allocation28_spill] sm:$0xff] }
 0xacf   :  { %3055 = vperm.xlu1 %3351, %v5046_v13   ;;  %v5055_v56 = vmul.f32 %v3422_v48, %v4439_v54  ;;  %v3424_v22 = vpop.eup %3423  ;;  %v2242_v33 = vsub.f32 %v4905_v30, %v2226_v46  ;;  %v3010_v54 = vsub.f32 %v4935_v10, %v2994_v27  ;;  %v2225_v46 = vperm.slane %v5028_v55, 2 }
 0xad0   :  { %3046 = vperm.xlu2 %3350, %v5050_v12   ;;  %v3426_v21 = vpop.eup %3425  ;;  %v5062_v41 = vmul.f32 %v3424_v22, %v4464_v17  ;;  %3433 = vpow2.f32 %v2261_v50 }
 0xad1   :  { %3058 = vperm.xlu0 %3346, %v5055_v56   ;;  %v3428_v44 = vpop.eup %3427  ;;  %v5066_v16 = vmul.f32 %v3426_v21, %v4413_v62  ;;  %v2253_v30 = vmul.f32 1.442695, %v2242_v33  ;;  %v3023_v10 = vmul.f32 1.442695, %v3010_v54  ;;  %v2224_v62 = vperm.slane %v5028_v55, 1 }
 0xad2   :  { %v5072_v15 = vmul.f32 %v3428_v44, %v5538_v34  ;;  %v3430_v38 = vpop.eup %3429  ;;  %v2241_v44 = vsub.f32 %v4892_v47, %v2225_v46  ;;  %v5541_v47 = vld [vmem:[#allocation23_spill] sm:$0xff]  ;;  %v5545_v46 = vld [vmem:[#allocation17_spill] sm:$0xff] }
 0xad3   :  { %v3432_v4 = vpop.eup %3431  ;;  %3435 = vpow2.f32 %v2253_v30  ;;  %v5083_v25 = vmul.f32 %v3430_v38, %v4478_v53  ;;  %v2240_v3 = vsub.f32 %v4897_v18, %v2224_v62  ;;  %v2229_v30 = vperm.slane %v5028_v55, 6 }
 0xad4   :  { %3437 = vpow2.f32 %v3023_v10  ;;  %v5087_v48 = vmul.f32 %v3432_v4, %v4418_v32  ;;  %v2251_v34 = vmul.f32 1.442695, %v2241_v44 }
 0xad5   :  { %v2249_v53 = vmul.f32 1.442695, %v2240_v3  ;;  %v5544_v3 = vld [vmem:[#allocation58_spill] sm:$0xff] }
 0xad6   :  { %v3434_v5 = vpop.eup %3433 }
 0xad7   :  { %3064 = vperm.xlu1 %3351, %v5062_v41   ;;  %v5069_v42 = vpop.xlane.xlu0 %2618  ;;  %v5092_v43 = vmul.f32 %v3434_v5, %v5539_v20 }
 0xad8   :  { %3049 = vperm.xlu2 %3350, %v5066_v16   ;;  %v2625_v17 = vperm.slane %v5069_v42, 4  ;;  %v2626_v23 = vperm.slane %v5069_v42, 5  ;;  %v2627_v32 = vperm.slane %v5069_v42, 6  ;;  %v2622_v20 = vperm.slane %v5069_v42, 1 }
 0xad9   :  { %2292 = vperm.xlu0 %3346, %v5072_v15   ;;  %v3436_v18 = vpop.eup %3435 }
 0xada   :  { %v2641_v40 = vsub.f32 %v4967_v14, %v2625_v17  ;;  %v2642_v14 = vsub.f32 %v4961_v60, %v2626_v23  ;;  %v3438_v27 = vpop.eup %3437  ;;  %v5540_v60 = vld [vmem:[#allocation21_spill] sm:$0xff]  ;;  %v2643_v54 = vsub.f32 %v4976_v0, %v2627_v32  ;;  %v5542_v0 = vld [vmem:[#allocation19_spill] sm:$0xff]  ;;  %v2621_v23 = vperm.slane %v5069_v42, 0 }
 0xadb   :  { %v5099_v50 = vmul.f32 %v3436_v18, %v5540_v60  ;;  %v5106_v33 = vmul.f32 %v3438_v27, %v4455_v19  ;;  %v2245_v19 = vsub.f32 %v4913_v7, %v2229_v30  ;;  %v5547_v30 = vld [vmem:[#allocation56_spill] sm:$0xff] }
 0xadc   :  { %v2653_v59 = vmul.f32 1.442695, %v2641_v40  ;;  %v2655_v6 = vmul.f32 1.442695, %v2642_v14  ;;  %v2657_v17 = vmul.f32 1.442695, %v2643_v54  ;;  %v2637_v7 = vsub.f32 %v4952_v35, %v2621_v23 }
 0xadd   :  { %v2259_v55 = vmul.f32 1.442695, %v2245_v19 }
 0xade   :  { %3439 = vpow2.f32 %v2653_v59  ;;  %v5543_v59 = vld [vmem:[#allocation13_spill] sm:$0xff] }
 0xadf   :  { %3067 = vperm.xlu1 %3351, %v5083_v25   ;;  %3441 = vpow2.f32 %v2257_v36 }
 0xae0   :  { %3052 = vperm.xlu2 %3350, %v5087_v48   ;;  %3443 = vpow2.f32 %v2249_v53  ;;  %v2638_v53 = vsub.f32 %v4955_v39, %v2622_v20  ;;  %v2624_v39 = vperm.slane %v5069_v42, 3 }
 0xae1   :  { %2301 = vperm.xlu0 %3346, %v5092_v43   ;;  %3445 = vpow2.f32 %v2655_v6  ;;  %v2623_v6 = vperm.slane %v5069_v42, 2 }
 0xae2   :  { %3447 = vpow2.f32 %v2251_v34  ;;  %v2647_v35 = vmul.f32 1.442695, %v2638_v53  ;;  %v2640_v34 = vsub.f32 %v4964_v63, %v2624_v39  ;;  %v5549_v63 = vld [vmem:[#allocation41_spill] sm:$0xff] }
 0xae3   :  { %3449 = vpow2.f32 %v2657_v17  ;;  %v2639_v27 = vsub.f32 %v4949_v57, %v2623_v6  ;;  %v2628_v57 = vperm.slane %v5069_v42, 7 }
 0xae4   :  { %v3440_v22 = vpop.eup %3439  ;;  %3451 = vpow2.f32 %v2259_v55  ;;  %v2651_v17 = vmul.f32 1.442695, %v2640_v34 }
 0xae5   :  { %v5102_v21 = vmul.f32 %v3440_v22, %v4222_v52  ;;  %v3442_v52 = vpop.eup %3441  ;;  %v5546_v22 = vld [vmem:[#allocation40_spill] sm:$0xff]  ;;  %v2649_v44 = vmul.f32 1.442695, %v2639_v27 }
 0xae6   :  { %v3444_v61 = vpop.eup %3443  ;;  %v5114_v62 = vmul.f32 %v3442_v52, %v5541_v47  ;;  %v5548_v47 = vld [vmem:[#allocation57_spill] sm:$0xff] }
 0xae7   :  { %2289 = vperm.xlu1 %3351, %v5099_v50   ;;  %v3446_v10 = vpop.eup %3445  ;;  %v5118_v38 = vmul.f32 %v3444_v61, %v5542_v0 }
 0xae8   :  { %3061 = vperm.xlu2 %3350, %v5106_v33   ;;  %v5122_v40 = vmul.f32 %v3446_v10, %v4004_v58  ;;  %v3448_v4 = vpop.eup %3447  ;;  %v2645_v58 = vmul.f32 1.442695, %v2637_v7  ;;  %v2644_v10 = vsub.f32 %v4973_v37, %v2628_v57 }
 0xae9   :  { %2690 = vperm.xlu0 %3346, %v5102_v21   ;;  %v3450_v5 = vpop.eup %3449  ;;  %v5129_v2 = vmul.f32 %v3448_v4, %v5543_v59 }
 0xaea   :  { %v5132_v14 = vmul.f32 %v3450_v5, %v5544_v3  ;;  %v3452_v36 = vpop.eup %3451  ;;  %3453 = vpow2.f32 %v2645_v58  ;;  %v2659_v0 = vmul.f32 1.442695, %v2644_v10  ;;  %v5550_v5 = vld [vmem:[#allocation59_spill] sm:$0xff] }
 0xaeb   :  { %v5139_v18 = vmul.f32 %v3452_v36, %v5545_v46  ;;  %3455 = vpow2.f32 %v2647_v35 }
 0xaec   :  { %3457 = vpow2.f32 %v2649_v44 }
 0xaed   :  { %3459 = vpow2.f32 %v2651_v17 }
 0xaee   :  { %3461 = vpow2.f32 %v2659_v0 }
 0xaef   :  { %2295 = vperm.xlu1 %3351, %v5114_v62  }
 0xaf0   :  { %2283 = vperm.xlu2 %3350, %v5118_v38   ;;  %v3454_v32 = vpop.eup %3453 }
 0xaf1   :  { %2693 = vperm.xlu0 %3346, %v5122_v40   ;;  %v5145_v60 = vmul.f32 %v3454_v32, %v5546_v22  ;;  %v3456_v54 = vpop.eup %3455 }
 0xaf2   :  { %v5151_v52 = vmul.f32 %v3456_v54, %v5547_v30  ;;  %v3458_v61 = vpop.eup %3457 }
 0xaf3   :  { %v5157_v19 = vmul.f32 %v3458_v61, %v5548_v47  ;;  %v3460_v55 = vpop.eup %3459 }
 0xaf4   :  { %v5161_v23 = vmul.f32 %v3460_v55, %v5549_v63  ;;  %v3462_v4 = vpop.eup %3461 }
 0xaf5   :  { %v5165_v42 = vmul.f32 %v3462_v4, %v5550_v5 }
 0xaf8   :  { %2286 = vperm.xlu2 %3350, %v5129_v2  }
 0xaf9   :  { %2696 = vperm.xlu0 %3346, %v5132_v14  }
 0xb00   :  { %2298 = vperm.xlu2 %3350, %v5139_v18  }
 0xb08   :  { %2678 = vperm.xlu2 %3350, %v5145_v60  }
 0xb10   :  { %2681 = vperm.xlu2 %3350, %v5151_v52  }
 0xb18   :  { %2684 = vperm.xlu2 %3350, %v5157_v19  }
 0xb20   :  { %2687 = vperm.xlu2 %3350, %v5161_v23  }
 0xb28   :  { %2699 = vperm.xlu2 %3350, %v5165_v42  }
 0xb29   :  { %v2281_v3 = vpop.permute.xlu0 %2280 }
 0xb2a   :  { %v3047_v37 = vpop.permute.xlu2 %3046 }
 0xb2b   :  { %v3069_v46 = vperm.slane %v3047_v37, %v4106_v8 }
 0xb32   :  { %v3050_v7 = vpop.permute.xlu2 %3049 }
 0xb33   :  { %v3070_v36 = vperm.slane %v3050_v7, %v4106_v8 }
 0xb35   :  { %v3077_v27 = vsel %vm568_vm11, %v3070_v36, %v3069_v46 }
 0xb3a   :  { %v3053_v59 = vpop.permute.xlu2 %3052 }
 0xb3b   :  { %v3071_v53 = vperm.slane %v3053_v59, %v4106_v8 }
 0xb3d   :  { %v3078_v44 = vsel %vm570_vm12, %v3071_v53, %v3077_v27 }
 0xb41   :  { %v3056_v58 = vpop.permute.xlu1 %3055 }
 0xb42   :  { %v3062_v20 = vpop.permute.xlu2 %3061  ;;  %v3072_v35 = vperm.slane %v3056_v58, %v4106_v8  ;;  %v2303_v58 = vperm.slane %v2281_v3, %v4106_v8 }
 0xb43   :  { %v3059_v6 = vpop.permute.xlu0 %3058  ;;  %v3074_v17 = vperm.slane %v3062_v20, %v4106_v8 }
 0xb44   :  { %v3073_v39 = vperm.slane %v3059_v6, %v4106_v8  ;;  %v3079_v54 = vsel %vm572_vm13, %v3072_v35, %v3078_v44 }
 0xb46   :  { %v3080_v34 = vsel %vm574_vm14, %v3073_v39, %v3079_v54 }
 0xb47   :  { %v3081_v61 = vsel %vm576_vm15, %v3074_v17, %v3080_v34 }
 0xb49   :  { %v3065_v32 = vpop.permute.xlu1 %3064 }
 0xb4a   :  { %v2284_v22 = vpop.permute.xlu2 %2283  ;;  %v3075_v30 = vperm.slane %v3065_v32, %v4106_v8 }
 0xb4b   :  { %v2293_v4 = vpop.permute.xlu0 %2292  ;;  %v2304_v37 = vperm.slane %v2284_v22, %v4106_v8 }
 0xb4c   :  { %v3082_v0 = vsel %vm578_vm1, %v3075_v30, %v3081_v61  ;;  %v2307_v35 = vperm.slane %v2293_v4, %v4106_v8 }
 0xb4d   :  { %v2311_v36 = vsel %vm568_vm11, %v2304_v37, %v2303_v58 }
 0xb51   :  { %v3068_v57 = vpop.permute.xlu1 %3067 }
 0xb52   :  { %v3076_v10 = vperm.slane %v3068_v57, %v4106_v8  ;;  %v2287_v47 = vpop.permute.xlu2 %2286 }
 0xb53   :  { %v2305_v59 = vperm.slane %v2287_v47, %v4106_v8  ;;  %v2302_v6 = vpop.permute.xlu0 %2301 }
 0xb54   :  { %v3083_v55 = vsel %vm580_vm3, %v3076_v10, %v3082_v0  ;;  %v2310_v3 = vperm.slane %v2302_v6, %v4106_v8 }
 0xb55   :  { %v3085_v63 = vsel %vm583_vm4, %v3083_v55, 0.0  ;;  %v2312_v53 = vsel %vm570_vm12, %v2305_v59, %v2311_v36 }
 0xb56   :  { %3086 = vadd.xlane.f32.xlu1 %v3085_v63 }
 0xb59   :  { %v2290_v5 = vpop.permute.xlu1 %2289 }
 0xb5a   :  { %v2299_v7 = vpop.permute.xlu2 %2298  ;;  %v2306_v20 = vperm.slane %v2290_v5, %v4106_v8 }
 0xb5b   :  { %v2309_v44 = vperm.slane %v2299_v7, %v4106_v8  ;;  %v2691_v61 = vpop.permute.xlu0 %2690 }
 0xb5c   :  { %v2313_v46 = vsel %vm572_vm13, %v2306_v20, %v2312_v53  ;;  %v2705_v7 = vperm.slane %v2691_v61, %v4106_v8 }
 0xb5d   :  { %v2314_v39 = vsel %vm574_vm14, %v2307_v35, %v2313_v46 }
 0xb61   :  { %v2296_v32 = vpop.permute.xlu1 %2295 }
 0xb62   :  { %v2308_v27 = vperm.slane %v2296_v32, %v4106_v8  ;;  %v2679_v22 = vpop.permute.xlu2 %2678 }
 0xb63   :  { %v2694_v47 = vpop.permute.xlu0 %2693  ;;  %v2701_v63 = vperm.slane %v2679_v22, %v4106_v8 }
 0xb64   :  { %v2315_v54 = vsel %vm576_vm15, %v2308_v27, %v2314_v39  ;;  %v2706_v36 = vperm.slane %v2694_v47, %v4106_v8 }
 0xb65   :  { %v2316_v34 = vsel %vm578_vm1, %v2309_v44, %v2315_v54 }
 0xb66   :  { %v2317_v30 = vsel %vm580_vm3, %v2310_v3, %v2316_v34 }
 0xb67   :  { %v2319_v17 = vsel %vm583_vm4, %v2317_v30, 0.0 }
 0xb68   :  { %2320 = vadd.xlane.f32.xlu0 %v2319_v17 }
 0xb6a   :  { %v2682_v57 = vpop.permute.xlu2 %2681 }
 0xb6b   :  { %v2702_v0 = vperm.slane %v2682_v57, %v4106_v8  ;;  %v2697_v53 = vpop.permute.xlu0 %2696 }
 0xb6c   :  { %v2707_v35 = vperm.slane %v2697_v53, %v4106_v8 }
 0xb6d   :  { %v2709_v5 = vsel %vm568_vm11, %v2702_v0, %v2701_v63 }
 0xb72   :  { %v2685_v10 = vpop.permute.xlu2 %2684 }
 0xb73   :  { %v2703_v55 = vperm.slane %v2685_v10, %v4106_v8 }
 0xb75   :  { %v2710_v59 = vsel %vm570_vm12, %v2703_v55, %v2709_v5 }
 0xb7a   :  { %v2688_v4 = vpop.permute.xlu2 %2687 }
 0xb7b   :  { %v2704_v37 = vperm.slane %v2688_v4, %v4106_v8 }
 0xb7d   :  { %v2711_v58 = vsel %vm572_vm13, %v2704_v37, %v2710_v59 }
 0xb7e   :  { %v2712_v20 = vsel %vm574_vm14, %v2705_v7, %v2711_v58 }
 0xb7f   :  { %v2713_v46 = vsel %vm576_vm15, %v2706_v36, %v2712_v20 }
 0xb80   :  { %v2714_v27 = vsel %vm578_vm1, %v2707_v35, %v2713_v46 }
 0xb82   :  { %v2700_v6 = vpop.permute.xlu2 %2699 }
 0xb83   :  { %v2708_v32 = vperm.slane %v2700_v6, %v4106_v8 }
 0xb85   :  { %v2715_v22 = vsel %vm580_vm3, %v2708_v32, %v2714_v27 }
 0xb86   :  { %v2717_v44 = vsel %vm583_vm4, %v2715_v22, 0.0 }
 0xb87   :  { %2718 = vadd.xlane.f32.xlu2 %v2717_v44 }
 0xbc9   :  { %v3087_v39 = vpop.xlane.xlu1 %3086 }
 0xbca   :  { %v3088_v3 = vmax.f32 %v3087_v39, 1e-30 }
 0xbcc   :  { %3463 = vrcp.f32 %v3088_v3 }
 0xbd2   :  { %v3464_v54 = vpop.eup %3463 }
 0xbd3   :  { %v3091_v34 = vperm.slane %v3464_v54, 0  ;;  %v3093_v30 = vperm.slane %v3464_v54, 2  ;;  %v3092_v17 = vperm.slane %v3464_v54, 1  ;;  %v3095_v57 = vperm.slane %v3464_v54, 4 }
 0xbd4   :  { %v3094_v0 = vperm.slane %v3464_v54, 3  ;;  %v3096_v55 = vperm.slane %v3464_v54, 5  ;;  %v3097_v46 = vperm.slane %v3464_v54, 6 }
 0xbd5   :  { %v3107_v61 = vmul.f32 %v3091_v34, %v5050_v12  ;;  %v3109_v10 = vmul.f32 %v3093_v30, %v5087_v48  ;;  %v3108_v47 = vmul.f32 %v3092_v17, %v5066_v16  ;;  %v3111_v37 = vmul.f32 %v3095_v57, %v5055_v56 }
 0xbd6   :  { %v3110_v20 = vmul.f32 %v3094_v0, %v5046_v13  ;;  %v3112_v36 = vmul.f32 %v3096_v55, %v5106_v33  ;;  %v3113_v56 = vmul.f32 %v3097_v46, %v5062_v41  ;;  %v3098_v41 = vperm.slane %v3464_v54, 7 }
 0xbd7   :  { %v3115_v63 = vpack.c.bf16 %v3107_v61, %v3107_v61  ;;  %v3117_v4 = vpack.c.bf16 %v3109_v10, %v3109_v10  ;;  %v3116_v5 = vpack.c.bf16 %v3108_v47, %v3108_v47  ;;  %v3119_v16 = vpack.c.bf16 %v3111_v37, %v3111_v37 }
 0xbd8   :  { %v3118_v53 = vpack.c.bf16 %v3110_v20, %v3110_v20  ;;  %v3120_v35 = vpack.c.bf16 %v3112_v36, %v3112_v36  ;;  %v3121_v33 = vpack.c.bf16 %v3113_v56, %v3113_v56 }
 0xbd9   :  { %v3132_v7 = vunpack.c.l.b16 %v3115_v63  ;;  %v3134_v59 = vunpack.c.l.b16 %v3117_v4  ;;  %v3133_v58 = vunpack.c.l.b16 %v3116_v5  ;;  %v3136_v6 = vunpack.c.l.b16 %v3119_v16 }
 0xbda   :  { %v3135_v32 = vunpack.c.l.b16 %v3118_v53  ;;  %v3137_v27 = vunpack.c.l.b16 %v3120_v35  ;;  %v3138_v17 = vunpack.c.l.b16 %v3121_v33  ;;  %v3114_v63 = vmul.f32 %v3098_v41, %v5083_v25 }
 0xbdb   :  { %3141 = vperm.xlu1 %3351, %v3132_v7   ;;  %3147 = vperm.xlu0 %3346, %v3134_v59   ;;  %v2321_v12 = vpop.xlane.xlu0 %2320 }
 0xbdc   :  { %v2322_v48 = vmax.f32 %v2321_v12, 1e-30  ;;  %3144 = vperm.xlu2 %3350, %v3133_v58  }
 0xbde   :  { %3465 = vrcp.f32 %v2322_v48 }
 0xbe3   :  { %3153 = vperm.xlu1 %3351, %v3136_v6   ;;  %3150 = vperm.xlu0 %3346, %v3135_v32  }
 0xbe4   :  { %v5223_v13 = vpop.eup %3465  ;;  %3156 = vperm.xlu2 %3350, %v3137_v27  }
 0xbe5   :  { %v2326_v22 = vperm.slane %v5223_v13, 1  ;;  %v2325_v44 = vperm.slane %v5223_v13, 0  ;;  %v2329_v39 = vperm.slane %v5223_v13, 4  ;;  %v2327_v30 = vperm.slane %v5223_v13, 2 }
 0xbe6   :  { %v2328_v5 = vperm.slane %v5223_v13, 3 }
 0xbe7   :  { %v2342_v3 = vmul.f32 %v2326_v22, %v5118_v38  ;;  %v2341_v34 = vmul.f32 %v2325_v44, %v5033_v31  ;;  %v2345_v10 = vmul.f32 %v2329_v39, %v5072_v15  ;;  %v2343_v55 = vmul.f32 %v2327_v30, %v5129_v2 }
 0xbe8   :  { %v3122_v31 = vpack.c.bf16 %v3114_v63, %v3114_v63  ;;  %v2344_v15 = vmul.f32 %v2328_v5, %v5099_v50 }
 0xbe9   :  { %v2350_v57 = vpack.c.bf16 %v2342_v3, %v2342_v3  ;;  %v2349_v61 = vpack.c.bf16 %v2341_v34, %v2341_v34  ;;  %v2353_v38 = vpack.c.bf16 %v2345_v10, %v2345_v10  ;;  %v2351_v4 = vpack.c.bf16 %v2343_v55, %v2343_v55 }
 0xbea   :  { %v3139_v7 = vunpack.c.l.b16 %v3122_v31  ;;  %v2352_v59 = vpack.c.bf16 %v2344_v15, %v2344_v15  ;;  %v2332_v55 = vperm.slane %v5223_v13, 7 }
 0xbeb   :  { %3159 = vperm.xlu0 %3346, %v3138_v17   ;;  %v2367_v47 = vunpack.c.l.b16 %v2350_v57  ;;  %v2366_v0 = vunpack.c.l.b16 %v2349_v61  ;;  %v2370_v54 = vunpack.c.l.b16 %v2353_v38  ;;  %v2368_v37 = vunpack.c.l.b16 %v2351_v4 }
 0xbec   :  { %v2369_v20 = vunpack.c.l.b16 %v2352_v59 }
 0xbed   :  { %2378 = vperm.xlu1 %3351, %v2367_v47   ;;  %2375 = vperm.xlu2 %3350, %v2366_v0   ;;  %v2331_v47 = vperm.slane %v5223_v13, 6  ;;  %v2330_v0 = vperm.slane %v5223_v13, 5 }
 0xbef   :  { %v2347_v4 = vmul.f32 %v2331_v47, %v5139_v18 }
 0xbf1   :  { %v2355_v31 = vpack.c.bf16 %v2347_v4, %v2347_v4 }
 0xbf3   :  { %2387 = vperm.xlu0 %3346, %v2370_v54  }
 0xbf5   :  { %2381 = vperm.xlu1 %3351, %v2368_v37   ;;  %3162 = vperm.xlu2 %3350, %v3139_v7   ;;  %v2372_v37 = vunpack.c.l.b16 %v2355_v31 }
 0xbfa   :  { %v2719_v58 = vpop.xlane.xlu2 %2718 }
 0xbfb   :  { %v2720_v2 = vmax.f32 %v2719_v58, 1e-30 }
 0xbfd   :  { %3467 = vrcp.f32 %v2720_v2  ;;  %2384 = vperm.xlu2 %3350, %v2369_v20  }
 0xc03   :  { %v3468_v25 = vpop.eup %3467 }
 0xc04   :  { %v2726_v36 = vperm.slane %v3468_v25, 3  ;;  %v2724_v12 = vperm.slane %v3468_v25, 1  ;;  %v2723_v48 = vperm.slane %v3468_v25, 0  ;;  %v2728_v16 = vperm.slane %v3468_v25, 5 }
 0xc05   :  { %v2727_v50 = vperm.slane %v3468_v25, 4  ;;  %v2725_v6 = vperm.slane %v3468_v25, 2  ;;  %v2730_v30 = vperm.slane %v3468_v25, 7 }
 0xc06   :  { %v2742_v53 = vmul.f32 %v2726_v36, %v5161_v23  ;;  %v2740_v46 = vmul.f32 %v2724_v12, %v5151_v52  ;;  %v2739_v35 = vmul.f32 %v2723_v48, %v5145_v60  ;;  %v2744_v33 = vmul.f32 %v2728_v16, %v5122_v40 }
 0xc07   :  { %v2743_v3 = vmul.f32 %v2727_v50, %v5102_v21  ;;  %v2741_v34 = vmul.f32 %v2725_v6, %v5157_v19  ;;  %v2729_v60 = vperm.slane %v3468_v25, 6  ;;  %v2746_v40 = vmul.f32 %v2730_v30, %v5165_v42 }
 0xc08   :  { %v2750_v32 = vpack.c.bf16 %v2742_v53, %v2742_v53  ;;  %v2748_v56 = vpack.c.bf16 %v2740_v46, %v2740_v46  ;;  %v2747_v27 = vpack.c.bf16 %v2739_v35, %v2739_v35  ;;  %v2752_v52 = vpack.c.bf16 %v2744_v33, %v2744_v33 }
 0xc09   :  { %v2751_v23 = vpack.c.bf16 %v2743_v3, %v2743_v3  ;;  %v2749_v41 = vpack.c.bf16 %v2741_v34, %v2741_v34  ;;  %v2745_v61 = vmul.f32 %v2729_v60, %v5132_v14  ;;  %v2754_v19 = vpack.c.bf16 %v2746_v40, %v2746_v40 }
 0xc0a   :  { %v2766_v22 = vunpack.c.l.b16 %v2750_v32  ;;  %v2764_v44 = vunpack.c.l.b16 %v2748_v56  ;;  %v2763_v39 = vunpack.c.l.b16 %v2747_v27  ;;  %v2768_v17 = vunpack.c.l.b16 %v2752_v52 }
 0xc0b   :  { %v2767_v57 = vunpack.c.l.b16 %v2751_v23  ;;  %v2765_v10 = vunpack.c.l.b16 %v2749_v41  ;;  %v2753_v21 = vpack.c.bf16 %v2745_v61, %v2745_v61  ;;  %v2770_v38 = vunpack.c.l.b16 %v2754_v19 }
 0xc0c   :  { %2781 = vperm.xlu0 %3346, %v2766_v22   ;;  %2775 = vperm.xlu1 %3351, %v2764_v44   ;;  %v2346_v14 = vmul.f32 %v2330_v0, %v5114_v62  ;;  %v2348_v42 = vmul.f32 %v2332_v55, %v5092_v43 }
 0xc0d   :  { %2772 = vperm.xlu2 %3350, %v2763_v39   ;;  %v2769_v63 = vunpack.c.l.b16 %v2753_v21 }
 0xc0e   :  { %v2354_v5 = vpack.c.bf16 %v2346_v14, %v2346_v14  ;;  %v2356_v54 = vpack.c.bf16 %v2348_v42, %v2348_v42 }
 0xc10   :  { %v2371_v7 = vunpack.c.l.b16 %v2354_v5  ;;  %v2373_v15 = vunpack.c.l.b16 %v2356_v54 }
 0xc14   :  { %2787 = vperm.xlu0 %3346, %v2768_v17   ;;  %2784 = vperm.xlu1 %3351, %v2767_v57  }
 0xc15   :  { %2778 = vperm.xlu2 %3350, %v2765_v10  }
 0xc1c   :  { %2790 = vperm.xlu0 %3346, %v2769_v63   ;;  %2793 = vperm.xlu1 %3351, %v2770_v38  }
 0xc1d   :  { %2812 = vrot.lane.b32.xlu2 %v4737_v28, %s3541_s22 }
 0xc24   :  { %2393 = vperm.xlu0 %3346, %v2372_v37   ;;  %2390 = vperm.xlu1 %3351, %v2371_v7  }
 0xc25   :  { %2396 = vperm.xlu2 %3350, %v2373_v15  }
 0xc36   :  { %v3145_v13 = vpop.permute.xlu2 %3144 }
 0xc37   :  { %v3165_v2 = vperm.slane %v3145_v13, %v4106_v8 }
 0xc3e   :  { %v3157_v18 = vpop.permute.xlu2 %3156 }
 0xc3f   :  { %v3169_v50 = vperm.slane %v3157_v18, %v4106_v8 }
 0xc47   :  { %v2376_v59 = vpop.permute.xlu2 %2375 }
 0xc48   :  { %v2398_v37 = vperm.slane %v2376_v59, %v4106_v8 }
 0xc4d   :  { %v3142_v62 = vpop.permute.xlu1 %3141  ;;  %v3148_v58 = vpop.permute.xlu0 %3147 }
 0xc4e   :  { %v3164_v43 = vperm.slane %v3142_v62, %v4106_v8  ;;  %v3166_v28 = vperm.slane %v3148_v58, %v4106_v8 }
 0xc4f   :  { %v3163_v20 = vpop.permute.xlu2 %3162 }
 0xc50   :  { %v3172_v25 = vsel %vm568_vm11, %v3165_v2, %v3164_v43  ;;  %v3171_v56 = vperm.slane %v3163_v20, %v4106_v8 }
 0xc51   :  { %v3173_v16 = vsel %vm570_vm12, %v3166_v28, %v3172_v25 }
 0xc55   :  { %v3154_v36 = vpop.permute.xlu1 %3153  ;;  %v3151_v12 = vpop.permute.xlu0 %3150 }
 0xc56   :  { %v3167_v48 = vperm.slane %v3151_v12, %v4106_v8  ;;  %v3168_v53 = vperm.slane %v3154_v36, %v4106_v8 }
 0xc57   :  { %v2385_v27 = vpop.permute.xlu2 %2384 }
 0xc58   :  { %v3174_v46 = vsel %vm572_vm13, %v3167_v48, %v3173_v16  ;;  %v2401_v2 = vperm.slane %v2385_v27, %v4106_v8 }
 0xc59   :  { %v3175_v35 = vsel %vm574_vm14, %v3168_v53, %v3174_v46 }
 0xc5a   :  { %v3176_v33 = vsel %vm576_vm15, %v3169_v50, %v3175_v35 }
 0xc5d   :  { %v3160_v6 = vpop.permute.xlu0 %3159 }
 0xc5e   :  { %v3170_v32 = vperm.slane %v3160_v6, %v4106_v8 }
 0xc5f   :  { %v2379_v34 = vpop.permute.xlu1 %2378 }
 0xc60   :  { %v3177_v22 = vsel %vm578_vm1, %v3170_v32, %v3176_v33  ;;  %v2399_v14 = vperm.slane %v2379_v34, %v4106_v8 }
 0xc61   :  { %v3178_v44 = vsel %vm580_vm3, %v3171_v56, %v3177_v22 }
 0xc62   :  { %v3179_v39 = vpack.c.b16 %v3178_v44, %v3178_v44  ;;  %v2406_v18 = vsel %vm568_vm11, %v2399_v14, %v2398_v37 }
 0xc64   :  { %3320 = vmatmul.msk.bf16.vlgmr.msra.gmra.mxu3 %vm583_vm4, %v3179_v39 }
 0xc65   :  { %v2388_v23 = vpop.permute.xlu0 %2387 }
 0xc66   :  { %v2402_v25 = vperm.slane %v2388_v23, %v4106_v8 }
 0xc67   :  { %v2773_v3 = vpop.permute.xlu2 %2772  ;;  %v2382_v60 = vpop.permute.xlu1 %2381 }
 0xc68   :  { %v2795_v40 = vperm.slane %v2773_v3, %v4106_v8  ;;  %v2400_v31 = vperm.slane %v2382_v60, %v4106_v8 }
 0xc6a   :  { %v2407_v58 = vsel %vm570_vm12, %v2400_v31, %v2406_v18 }
 0xc6b   :  { %v2408_v20 = vsel %vm572_vm13, %v2401_v2, %v2407_v58 }
 0xc6c   :  { %v2409_v53 = vsel %vm574_vm14, %v2402_v25, %v2408_v20 }
 0xc6f   :  { %v2779_v52 = vpop.permute.xlu2 %2778 }
 0xc70   :  { %v2797_v47 = vperm.slane %v2779_v52, %v4106_v8  ;;  %v3481_v52 = vld [vmem:[%s5338_s0 + $0x8] sm:$0xff] }
 0xc77   :  { %v2813_v30 = vpop.permute.xlu2 %2812 }
 0xc78   :  { %v2818_v41 = vsel %vm848_vm2, %v2813_v30, 0 }
 0xc79   :  { %2827 = vmatpush.bf16.msra.mxu2 %v2818_v41 }
 0xc7e   :  { %v2782_v17 = vpop.permute.xlu0 %2781  ;;  %v2776_v57 = vpop.permute.xlu1 %2775 }
 0xc7f   :  { %v2796_v61 = vperm.slane %v2776_v57, %v4106_v8  ;;  %v2798_v63 = vperm.slane %v2782_v17, %v4106_v8  ;;  %v2397_v59 = vpop.permute.xlu2 %2396 }
 0xc80   :  { %v2405_v46 = vperm.slane %v2397_v59, %v4106_v8 }
 0xc81   :  { %v2803_v10 = vsel %vm568_vm11, %v2796_v61, %v2795_v40  ;;  %v3482_v61 = vld [vmem:[%s5338_s0] sm:$0xff]  ;;  %s3544_s0 = smov [#allocation5]  }
 0xc82   :  { %v2804_v0 = vsel %vm570_vm12, %v2797_v47, %v2803_v10 }
 0xc83   :  { %v2805_v4 = vsel %vm572_vm13, %v2798_v63, %v2804_v0 }
 0xc86   :  { %v2788_v21 = vpop.permute.xlu0 %2787  ;;  %v2785_v19 = vpop.permute.xlu1 %2784 }
 0xc87   :  { %v2799_v55 = vperm.slane %v2785_v19, %v4106_v8  ;;  %v2800_v38 = vperm.slane %v2788_v21, %v4106_v8 }
 0xc89   :  { %v2806_v42 = vsel %vm574_vm14, %v2799_v55, %v2805_v4 }
 0xc8a   :  { %v2807_v13 = vsel %vm576_vm15, %v2800_v38, %v2806_v42 }
 0xc8e   :  { %v2791_v5 = vpop.permute.xlu0 %2790  ;;  %v2794_v54 = vpop.permute.xlu1 %2793 }
 0xc8f   :  { %v2801_v7 = vperm.slane %v2791_v5, %v4106_v8  ;;  %v2802_v15 = vperm.slane %v2794_v54, %v4106_v8  ;;  %v3483_v5 = vld [vmem:[%s5339_s1] sm:$0x3f]  ;;  %s3280_s1 = sshll.u32 %s3544_s0, 4  ;;  %s3281_s1 = int_to_ptr.vmem [resolvable:$true] %s3280_s1 }
 0xc91   :  { %v2808_v62 = vsel %vm578_vm1, %v2801_v7, %v2807_v13 }
 0xc92   :  { %v2809_v43 = vsel %vm580_vm3, %v2802_v15, %v2808_v62 }
 0xc93   :  { %v2810_v28 = vpack.c.b16 %v2809_v43, %v2809_v43 }
 0xc95   :  { %3319 = vmatmul.msk.bf16.vlgmr.msra.gmra.mxu2 %vm583_vm4, %v2810_v28 }
 0xc96   :  { %v2394_v36 = vpop.permute.xlu0 %2393  ;;  %v2391_v12 = vpop.permute.xlu1 %2390 }
 0xc97   :  { %v2404_v48 = vperm.slane %v2394_v36, %v4106_v8  ;;  %v2403_v16 = vperm.slane %v2391_v12, %v4106_v8  ;;  %v3480_v8 = vld [vmem:[%s5340_s2 + $0x8] ss:$0 sm:$0xff] }
 0xc99   :  { %v2410_v35 = vsel %vm576_vm15, %v2403_v16, %v2409_v53 }
 0xc9a   :  { %v2411_v50 = vsel %vm578_vm1, %v2404_v48, %v2410_v35 }
 0xc9b   :  { %v2412_v6 = vsel %vm580_vm3, %v2405_v46, %v2411_v50 }
 0xc9c   :  { %v2413_v32 = vpack.c.b16 %v2412_v6, %v2412_v6 }
 0xc9e   :  { %3318 = vmatmul.msk.bf16.vlgmr.msrb.gmra.mxu1 %vm583_vm4, %v2413_v32 }
 0xce7   :  { %v3195_v56 = vpop.f32.mrf.mxu3 }
 0xce8   :  { %v3196_v3 = vadd.f32 %v3480_v8, %v3195_v56 }
 0xcef   :  { %v3197_v27 = vpop.f32.mrf.mxu3 }
 0xd18   :  { %v2829_v33 = vpop.f32.mrf.mxu2 }
 0xd19   :  { %v2830_v22 = vadd.f32 %v2829_v33, %v1354_v49 }
 0xd1b   :  { %v3237_v44 = vmax.f32 %v2830_v22, 0.0  ;;  %v2429_v39 = vpop.f32.mrf.mxu1 }
 0xd1c   :  { %v2430_v34 = vadd.f32 %v2429_v39, %v788_v9 }
 0xd1d   :  { %v3238_v23 = vadd.f32 %v3481_v52, %v3237_v44 }
 0xd1e   :  { %v3199_v60 = vadd.f32 %v3196_v3, %v2430_v34 }
 0xd1f   :  { %v3239_v30 = vmul.f32 0.5, %v3238_v23 }
 0xd20   :  { %v3200_v41 = vmax.f32 %v3199_v60, 0.0  ;;  %v2831_v17 = vpop.f32.mrf.mxu2 }
 0xd21   :  { %v3240_v49 = vsel %vm291_vm0, %v3239_v30, 0.0 }
 0xd22   :  { %v3241_v57 = vrot.slane %v3240_v49, 4  ;;  %v3201_v40 = vadd.f32 %v3482_v61, %v3200_v41 }
 0xd23   :  { %v2431_v10 = vpop.f32.mrf.mxu1 }
 0xd24   :  { %v3242_v51 = vadd.f32 %v3241_v57, %v3240_v49  ;;  %v3202_v9 = vmul.f32 0.5, %v3201_v40 }
 0xd26   :  { %v3243_v21 = vrot.slane %v3242_v51, 2  ;;  %v3203_v19 = vsel %vm291_vm0, %v3202_v9, 0.0 }
 0xd27   :  { %v3204_v47 = vrot.slane %v3203_v19, 4 }
 0xd28   :  { %v3244_v0 = vadd.f32 %v3243_v21, %v3242_v51 }
 0xd29   :  { %v3205_v55 = vadd.f32 %v3204_v47, %v3203_v19 }
 0xd2a   :  { %v3245_v63 = vrot.slane %v3244_v0, 1 }
 0xd2b   :  { %v3206_v38 = vrot.slane %v3205_v55, 2 }
 0xd2c   :  { %v3246_v4 = vadd.f32 %v3245_v63, %v3244_v0 }
 0xd2d   :  { %v3207_v14 = vadd.f32 %v3206_v38, %v3205_v55 }
 0xd2e   :  { %v3247_v42 = vmul.f32 %v3246_v4, %v4693_v11 }
 0xd2f   :  { %v3208_v31 = vrot.slane %v3207_v14, 1 }
 0xd30   :  { %v3248_v54 = vmul.f32 %v3483_v5, %v3247_v42 }
 0xd31   :  { %v3209_v37 = vadd.f32 %v3208_v31, %v3207_v14 }
 0xd32   :  { %v3249_v7 = vperm.slane %v3248_v54, 5 }
 0xd33   :  { %v3210_v15 = vmul.f32 %v3209_v37, %v4693_v11 }
 0xd34   :  { %v3250_v13 = vsub.f32 %v3239_v30, %v3249_v7 }
 0xd35   :  { %v3211_v18 = vmul.f32 %v3483_v5, %v3210_v15 }
 0xd36   :  { %v3251_v62 = vmul.f32 %v3250_v13, %v3250_v13  ;;  %v3260_v41 = vmul.f32 %v3250_v13, %v2001_v45 }
 0xd37   :  { %v3212_v58 = vperm.slane %v3211_v18, 2 }
 0xd38   :  { %v3252_v43 = vsel %vm291_vm0, %v3251_v62, 0.0 }
 0xd39   :  { %v3253_v2 = vrot.slane %v3252_v43, 4  ;;  %v3213_v28 = vsub.f32 %v3202_v9, %v3212_v58 }
 0xd3b   :  { %v3254_v20 = vadd.f32 %v3253_v2, %v3252_v43  ;;  %v3214_v59 = vmul.f32 %v3213_v28, %v3213_v28  ;;  %v3223_v10 = vmul.f32 %v3213_v28, %v1962_v26 }
 0xd3d   :  { %v3255_v25 = vrot.slane %v3254_v20, 2  ;;  %v3215_v36 = vsel %vm291_vm0, %v3214_v59, 0.0 }
 0xd3e   :  { %v3216_v12 = vrot.slane %v3215_v36, 4 }
 0xd3f   :  { %v3256_v48 = vadd.f32 %v3255_v25, %v3254_v20 }
 0xd40   :  { %v3217_v16 = vadd.f32 %v3216_v12, %v3215_v36 }
 0xd41   :  { %v3257_v53 = vrot.slane %v3256_v48, 1 }
 0xd42   :  { %v3218_v46 = vrot.slane %v3217_v16, 2 }
 0xd43   :  { %v3258_v35 = vadd.f32 %v3257_v53, %v3256_v48 }
 0xd44   :  { %v3219_v50 = vadd.f32 %v3218_v46, %v3217_v16 }
 0xd45   :  { %v3259_v6 = vmul.f32 %v3258_v35, %v4693_v11 }
 0xd46   :  { %v3220_v32 = vrot.slane %v3219_v50, 1 }
 0xd47   :  { %v3261_v56 = vadd.f32 1e-05, %v3259_v6 }
 0xd48   :  { %v3221_v27 = vadd.f32 %v3220_v32, %v3219_v50 }
 0xd49   :  { %3469 = vrsqrt.f32 %v3261_v56  ;;  %vm3268_vm11 = vweird.f32 %v3261_v56 }
 0xd4a   :  { %v3222_v33 = vmul.f32 %v3221_v27, %v4693_v11 }
 0xd4c   :  { %v3224_v22 = vadd.f32 1e-05, %v3222_v33 }
 0xd4e   :  { %3471 = vrsqrt.f32 %v3224_v22  ;;  %vm3231_vm14 = vweird.f32 %v3224_v22 }
 0xd4f   :  { %v3470_v44 = vpop.eup %3469 }
 0xd50   :  { %v3263_v39 = vmul.f32 %v3470_v44, %v3261_v56  ;;  %vm3269_vm2 = vweird.f32 %v3470_v44 }
 0xd51   :  { %vm3270_vm12 = vmor %vm3268_vm11, %vm3269_vm2 }
 0xd52   :  { %v3264_v8 = vmul.f32 %v3470_v44, %v3263_v39 }
 0xd54   :  { %v3472_v3 = vpop.eup %3471  ;;  %v3265_v34 = vmul.f32 0.5, %v3264_v8 }
 0xd55   :  { %v3226_v52 = vmul.f32 %v3472_v3, %v3224_v22  ;;  %vm3232_vm13 = vweird.f32 %v3472_v3 }
 0xd56   :  { %v3266_v23 = vsub.f32 1.5, %v3265_v34  ;;  %vm3233_vm15 = vmor %vm3231_vm14, %vm3232_vm13 }
 0xd57   :  { %v3227_v60 = vmul.f32 %v3472_v3, %v3226_v52 }
 0xd58   :  { %v3267_v30 = vmul.f32 %v3470_v44, %v3266_v23 }
 0xd59   :  { %v3228_v17 = vmul.f32 0.5, %v3227_v60 }
 0xd5a   :  { %v3271_v49 = vsel %vm3270_vm12, %v3470_v44, %v3267_v30 }
 0xd5b   :  { %v3272_v11 = vmul.f32 %v3271_v49, %v3260_v41  ;;  %v3229_v57 = vsub.f32 1.5, %v3228_v17 }
 0xd5d   :  { %v3273_v61 = vadd.f32 %v3272_v11, %v2015_v29  ;;  %v3230_v40 = vmul.f32 %v3472_v3, %v3229_v57 }
 0xd5f   :  { %3275 = vst.msk [vmem:[#allocation5 + $0x8] sm:$0xff] %vm291_vm0, %v3273_v61  ;;  %v3234_v45 = vsel %vm3233_vm15, %v3472_v3, %v3230_v40 }
 0xd60   :  { %v3235_v51 = vmul.f32 %v3234_v45, %v3223_v10 }
 0xd62   :  { %v3236_v29 = vadd.f32 %v3235_v51, %v1976_v1 }
 0xd64   :  { %3274 = vst.msk [vmem:[#allocation5] sm:$0xff] %vm291_vm0, %v3236_v29 }
 0xd65   :  { %3288 = dma.vmem_to_hbm [thread:$0]  %s3281_s1, 256, %s3283_s9, [#allocation4], %s3545_s25, %s3545_s25, %s3546_s26  }
 0xd66   :  { %3534 = dma.done.wait [#allocation4], 256  }
 0xd67   :  { %3535 = vsyncadd [#allocation4], 4294967040 }
 0xd68   :  { %3293 = vsyncpa [#allocation3], 1 }
 0xd69   :  { %3294 = vsyncpa [#allocation4], 1 }

</bundles_post_ra>
